<compile_context>
chip_gen: v5e
topology: v5e:2x2
jax: 0.10.0
libtpu: 0.0.40
codegen_flags: <defaults>
</compile_context>

<pallas_src>
import functools
import math
from types import SimpleNamespace

import jax
import jax.numpy as jnp
import numpy as np
from jax.experimental import pallas as pl
from jax.experimental.pallas import tpu as pltpu


_CPARAMS = pltpu.CompilerParams(dimension_semantics=("parallel",))


# ---------------------------------------------------------------- kernels ----

def _reduce_init_kernel(x_ref, w_ref, b_ref, sc_ref, xo_ref, fo_ref):
    # y = x @ W + b ; x_out = y ; features_init = contrib_scale * y
    y = jnp.dot(x_ref[...], w_ref[...], preferred_element_type=jnp.float32) + b_ref[...]
    xo_ref[...] = y.astype(xo_ref.dtype)
    fo_ref[...] = (sc_ref[...] * y).astype(fo_ref.dtype)


def _init_features_kernel(x_ref, sc_ref, fo_ref):
    # divide_channels == 1 path: features_init = contrib_scale * x
    fo_ref[...] = (sc_ref[...] * x_ref[...]).astype(fo_ref.dtype)


def _conv_block_kernel(x_ref, f_ref, mask_ref, w1_ref, b1_ref, wc_ref, bm_ref,
                       sc_ref, sd_ref, newf_ref, newx_ref, hp_ref,
                       *, offsets, pad_top, mid, single_matmul):
    """Fused: h = x@W1+b1 ; xl = causal KxK conv(h) + bm ; gate epilogue."""
    x = x_ref[...]                      # (M, C)   M = Tt*Ts (one batch image)
    f = f_ref[...]                      # (M, C)
    m = x.shape[0]

    # 1x1 conv (groups=1) == channel matmul.
    h = jnp.dot(x, w1_ref[...], preferred_element_type=jnp.float32) + b1_ref[...]

    # Zero-padded copy of h in VMEM so every causal tap is a static slice.
    # (Re-zeroed every grid step: scratch is uninitialised and per-core.)
    hp_ref[...] = jnp.zeros(hp_ref.shape, hp_ref.dtype)
    hp_ref[pad_top:pad_top + m, :] = h

    if single_matmul:
        # One K = n_taps*mid contraction instead of n_taps sliver matmuls.
        taps = [hp_ref[pad_top + off:pad_top + off + m, :] for off in offsets]
        tap_cat = jnp.concatenate(taps, axis=-1) * mask_ref[...]
        xl = jnp.dot(tap_cat, wc_ref[...],
                     preferred_element_type=jnp.float32) + bm_ref[...]
    else:
        # Fallback: per-tap accumulation (same math, no lane concat).
        xl = jnp.zeros((m, bm_ref.shape[-1]), jnp.float32) + bm_ref[...]
        for i, off in enumerate(offsets):
            tap = (hp_ref[pad_top + off:pad_top + off + m, :]
                   * mask_ref[:, i * mid:(i + 1) * mid])
            xl = xl + jnp.dot(tap, wc_ref[i * mid:(i + 1) * mid, :],
                              preferred_element_type=jnp.float32)

    # Gate epilogue: features += sc*xl ; x = sd*(x + xl)
    newf_ref[...] = (f + sc_ref[...] * xl).astype(newf_ref.dtype)
    newx_ref[...] = (sd_ref[...] * (x + xl)).astype(newx_ref.dtype)


def _ff_block_kernel(x_ref, f_ref, w1_ref, b1_ref, w2_ref, b2_ref,
                     sc_ref, sd_ref, newf_ref, newx_ref):
    """Fused _FFLayer + gate: xl = relu(x@W1+b1)@W2+b2 ; gate epilogue."""
    x = x_ref[...]
    f = f_ref[...]
    h = jnp.dot(x, w1_ref[...], preferred_element_type=jnp.float32) + b1_ref[...]
    h = jnp.maximum(h, 0.0)
    xl = jnp.dot(h, w2_ref[...], preferred_element_type=jnp.float32) + b2_ref[...]
    newf_ref[...] = (f + sc_ref[...] * xl).astype(newf_ref.dtype)
    newx_ref[...] = (sd_ref[...] * (x + xl)).astype(newx_ref.dtype)


# -------------------------------------------------------------- wrappers ----

def pallas_reduce_init(x3, w, b, sc):
    n, m, cin = x3.shape
    c = w.shape[1]
    return pl.pallas_call(
        _reduce_init_kernel,
        out_shape=(jax.ShapeDtypeStruct((n, m, c), x3.dtype),
                   jax.ShapeDtypeStruct((n, m, c), x3.dtype)),
        grid=(n,),
        in_specs=[pl.BlockSpec((None, m, cin), lambda i: (i, 0, 0)),
                  pl.BlockSpec((cin, c), lambda i: (0, 0)),
                  pl.BlockSpec((1, c), lambda i: (0, 0)),
                  pl.BlockSpec((1, c), lambda i: (0, 0))],
        out_specs=(pl.BlockSpec((None, m, c), lambda i: (i, 0, 0)),
                   pl.BlockSpec((None, m, c), lambda i: (i, 0, 0))),
        compiler_params=_CPARAMS,
    )(x3, w, b, sc)


def pallas_init_features(x3, sc):
    n, m, c = x3.shape
    return pl.pallas_call(
        _init_features_kernel,
        out_shape=jax.ShapeDtypeStruct((n, m, c), x3.dtype),
        grid=(n,),
        in_specs=[pl.BlockSpec((None, m, c), lambda i: (i, 0, 0)),
                  pl.BlockSpec((1, c), lambda i: (0, 0))],
        out_specs=pl.BlockSpec((None, m, c), lambda i: (i, 0, 0)),
        compiler_params=_CPARAMS,
    )(x3, sc)


def pallas_conv_block(x3, f3, bigmask, blk, sc, sd,
                      offsets, pad_top, hp_rows, single_matmul):
    n, m, c = x3.shape
    mid = blk['w1'].shape[1]
    kcols = bigmask.shape[1]          # n_taps * mid
    kernel = functools.partial(_conv_block_kernel, offsets=offsets,
                               pad_top=pad_top, mid=mid,
                               single_matmul=single_matmul)
    return pl.pallas_call(
        kernel,
        out_shape=(jax.ShapeDtypeStruct((n, m, c), x3.dtype),
                   jax.ShapeDtypeStruct((n, m, c), x3.dtype)),
        grid=(n,),
        in_specs=[pl.BlockSpec((None, m, c), lambda i: (i, 0, 0)),      # x
                  pl.BlockSpec((None, m, c), lambda i: (i, 0, 0)),      # features
                  pl.BlockSpec((m, kcols), lambda i: (0, 0)),           # tap mask
                  pl.BlockSpec((c, mid), lambda i: (0, 0)),             # w1
                  pl.BlockSpec((1, mid), lambda i: (0, 0)),             # b1
                  pl.BlockSpec((kcols, c), lambda i: (0, 0)),           # wm_cat
                  pl.BlockSpec((1, c), lambda i: (0, 0)),               # bm
                  pl.BlockSpec((1, c), lambda i: (0, 0)),               # contrib
                  pl.BlockSpec((1, c), lambda i: (0, 0))],              # depth
        out_specs=(pl.BlockSpec((None, m, c), lambda i: (i, 0, 0)),
                   pl.BlockSpec((None, m, c), lambda i: (i, 0, 0))),
        scratch_shapes=[pltpu.VMEM((hp_rows, mid), jnp.float32)],
        input_output_aliases={1: 0, 0: 1},   # features->new_f, x->new_x
        compiler_params=_CPARAMS,
    )(x3, f3, bigmask, blk['w1'], blk['b1'], blk['wm_cat'], blk['bm'], sc, sd)


def pallas_ff_block(x3, f3, blk, sc, sd):
    n, m, c = x3.shape
    ffn = blk['w1'].shape[1]
    return pl.pallas_call(
        _ff_block_kernel,
        out_shape=(jax.ShapeDtypeStruct((n, m, c), x3.dtype),
                   jax.ShapeDtypeStruct((n, m, c), x3.dtype)),
        grid=(n,),
        in_specs=[pl.BlockSpec((None, m, c), lambda i: (i, 0, 0)),
                  pl.BlockSpec((None, m, c), lambda i: (i, 0, 0)),
                  pl.BlockSpec((c, ffn), lambda i: (0, 0)),
                  pl.BlockSpec((1, ffn), lambda i: (0, 0)),
                  pl.BlockSpec((ffn, c), lambda i: (0, 0)),
                  pl.BlockSpec((1, c), lambda i: (0, 0)),
                  pl.BlockSpec((1, c), lambda i: (0, 0)),
                  pl.BlockSpec((1, c), lambda i: (0, 0))],
        out_specs=(pl.BlockSpec((None, m, c), lambda i: (i, 0, 0)),
                   pl.BlockSpec((None, m, c), lambda i: (i, 0, 0))),
        input_output_aliases={1: 0, 0: 1},
        compiler_params=_CPARAMS,
    )(x3, f3, blk['w1'], blk['b1'], blk['w2'], blk['b2'], sc, sd)


# --------------------------------------------------------------- model glue --

def _tap_geometry(tt, ts, k, diltrg, dilsrc, mid):
    """Static tap offsets in flattened (t*Ts+s) space, validity masks, padding."""
    pt = diltrg * (k - 1) // 2
    ps = dilsrc * (k - 1) // 2
    t_idx = np.arange(tt)[:, None]
    s_idx = np.arange(ts)[None, :]
    offsets, masks = [], []
    for kh in range(k // 2 + 1):          # causal: only current / past target rows
        dt = kh * diltrg - pt
        for kw in range(k):
            ds = kw * dilsrc - ps
            offsets.append(dt * ts + ds)
            valid = ((t_idx + dt >= 0) & (t_idx + dt < tt) &
                     (s_idx + ds >= 0) & (s_idx + ds < ts))
            masks.append(valid.reshape(-1).astype(np.float32))
    mask = np.stack(masks, axis=1)                       # (Tt*Ts, n_taps)
    bigmask = np.repeat(mask, mid, axis=1)               # (Tt*Ts, n_taps*mid)
    rup8 = lambda v: ((v + 7) // 8) * 8
    pad_top = rup8(max(0, -min(offsets)))
    pad_bot = rup8(max(0, max(offsets)))
    hp_rows = pad_top + tt * ts + pad_bot
    return tuple(offsets), jnp.asarray(bigmask), pad_top, hp_rows


def pagatenet9_forward(x, params, cfg, single_matmul=True):
    """Input: (N, Tt, Ts, C_in)  ->  Output: (N, Tt, Ts, C_out)."""
    n, tt, ts, cin = x.shape
    m = tt * ts
    sc = params['contrib_scale']          # (1, C)
    sd = params['depth_scale']            # (1, C)
    x3 = x.reshape(n, m, cin)
    if params['reduce_w'] is not None:
        x3, f3 = pallas_reduce_init(x3, params['reduce_w'], params['reduce_b'], sc)
    else:
        f3 = pallas_init_features(x3, sc)
    c = x3.shape[-1]
    offsets, bigmask, pad_top, hp_rows = _tap_geometry(
        tt, ts, cfg.kernel_size, cfg.target_dilation, cfg.source_dilation,
        cfg.reduce_dim)
    for blk in params['blocks']:
        if blk['type'] == 'conv':
            f3, x3 = pallas_conv_block(x3, f3, bigmask, blk, sc, sd,
                                       offsets, pad_top, hp_rows, single_matmul)
        else:
            f3, x3 = pallas_ff_block(x3, f3, blk, sc, sd)
    return f3.reshape(n, tt, ts, c)


# ------------------------------------------------------------------- init ----

def init_params(key, num_init_features, cfg):
    c = num_init_features // cfg.divide_channels
    mid = cfg.reduce_dim
    ffn = cfg.ffn_dim
    k = cfg.kernel_size
    keys = iter(jax.random.split(key, 4 + 4 * cfg.num_layers))

    def xavier(kk, fan_in, fan_out):
        bound = math.sqrt(6.0 / (fan_in + fan_out))
        return jax.random.uniform(kk, (fan_in, fan_out), jnp.float32, -bound, bound)

    params = {}
    if cfg.divide_channels > 1:
        params['reduce_w'] = xavier(next(keys), num_init_features, c)
        params['reduce_b'] = jnp.zeros((1, c), jnp.float32)
    else:
        params['reduce_w'] = None
        params['reduce_b'] = None
    params['contrib_scale'] = jnp.full((1, c), 0.5 ** 0.5, jnp.float32)
    params['depth_scale'] = jnp.full((1, c), 0.5 ** 0.5, jnp.float32)

    blocks = []
    for _ in range(cfg.num_layers):
        # _ConvLayer
        kc1, kc2, kb = jax.random.split(next(keys), 3)
        w1 = xavier(kc1, c, mid)                                   # 1x1 conv weight
        b1 = jnp.zeros((1, mid), jnp.float32)
        bound = 1.0 / math.sqrt(mid * k * k)
        wm = jax.random.uniform(kc2, (k, k, mid, c), jnp.float32, -bound, bound)
        row_mask = (jnp.arange(k) <= k // 2).astype(jnp.float32)[:, None, None, None]
        wm_full = wm * row_mask                                    # causal row mask
        # Pre-reshaped weight stack for the single (n_taps*mid, C) in-kernel matmul,
        # ordered (kh outer, kw inner, cin) to match the tap concatenation.
        wm_cat = wm_full[:k // 2 + 1].reshape((k // 2 + 1) * k * mid, c)
        bm = jax.random.uniform(kb, (1, c), jnp.float32, -bound, bound)
        blocks.append(dict(type='conv', w1=w1, b1=b1,
                           wm_full=wm_full, wm_cat=wm_cat, bm=bm))
        # _FFLayer
        kf1, kf2 = jax.random.split(next(keys), 2)
        blocks.append(dict(type='ff',
                           w1=xavier(kf1, c, ffn), b1=jnp.zeros((1, ffn), jnp.float32),
                           w2=xavier(kf2, ffn, c), b2=jnp.zeros((1, c), jnp.float32)))
    params['blocks'] = blocks
    return params


# -------------------------------------------------------- pure-JAX reference --

def reference_forward(x, params, cfg):
    hp = jax.lax.Precision.HIGHEST
    mm = lambda a, b: jnp.dot(a, b, precision=hp)
    if params['reduce_w'] is not None:
        x = mm(x, params['reduce_w']) + params['reduce_b'][0]
    sc = params['contrib_scale'][0]
    sd = params['depth_scale'][0]
    features = sc * x
    k = cfg.kernel_size
    pt = cfg.target_dilation * (k - 1) // 2
    ps = cfg.source_dilation * (k - 1) // 2
    for blk in params['blocks']:
        if blk['type'] == 'conv':
            h = mm(x, blk['w1']) + blk['b1'][0]
            xl = jax.lax.conv_general_dilated(
                h, blk['wm_full'], window_strides=(1, 1),
                padding=((pt, pt), (ps, ps)),
                rhs_dilation=(cfg.target_dilation, cfg.source_dilation),
                dimension_numbers=('NHWC', 'HWIO', 'NHWC'),
                precision=hp) + blk['bm'][0]
        else:
            hmid = jnp.maximum(mm(x, blk['w1']) + blk['b1'][0], 0.0)
            xl = mm(hmid, blk['w2']) + blk['b2'][0]
        features = features + sc * xl
        x = sd * (x + xl)
    return features


# ------------------------------------------------------------------- main ----

if __name__ == "__main__":
    cfg = SimpleNamespace(
        num_layers=2, kernel_size=3, zero_out_conv_input=False,
        convolution_dropout=0.0, ffn_dim=64, reduce_dim=16,
        conv_stride=1, source_dilation=1, target_dilation=1,
        maintain_resolution=True, conv_bias=True, num_heads=1,
        divide_channels=2)
    num_init_features = 32
    N, Tt, Ts = 2, 8, 8

    key = jax.random.PRNGKey(0)
    kp, kx = jax.random.split(key)
    params = init_params(kp, num_init_features, cfg)
    x = jax.random.normal(kx, (N, Tt, Ts, num_init_features), jnp.float32)

    ref = reference_forward(x, params, cfg)

    def run_and_check(single_matmul):
        @jax.jit
        def run(xin):
            return pagatenet9_forward(xin, params, cfg, single_matmul=single_matmul)
        out = jax.block_until_ready(run(x))
        np.testing.assert_allclose(np.asarray(out), np.asarray(ref),
                                   rtol=1e-2, atol=1e-2)
        return out

    try:
        out = run_and_check(True)        # fused, single K=n_taps*Cmid matmul
    except Exception:
        # Fallback: same fused kernels, per-tap matmul accumulation (no lane concat).
        out = run_and_check(False)

    assert out.shape == (N, Tt, Ts, num_init_features // cfg.divide_channels)
    print("KERNEL_OK")
</pallas_src>

<mosaic_0001>
module attributes {stable_mosaic.version = 11 : i64} {
  func.func @_reduce_init_kernel(%arg0: i32, %arg1: memref<1x64x32xf32, #tpu.memory_space<vmem>>, %arg2: memref<32x16xf32, #tpu.memory_space<vmem>>, %arg3: memref<1x16xf32, #tpu.memory_space<vmem>>, %arg4: memref<1x16xf32, #tpu.memory_space<vmem>>, %arg5: memref<1x64x16xf32, #tpu.memory_space<vmem>>, %arg6: memref<1x64x16xf32, #tpu.memory_space<vmem>>) attributes {dimension_semantics = [#tpu.dimension_semantics<parallel>], iteration_bounds = array<i64: 2>, scalar_prefetch = 0 : i64, scratch_operands = 0 : i64, tpu.core_type = #tpu.core_type<tc>, window_params = [{transform_indices = @transform_0, window_bounds = array<i64: 1, 64, 32>}, {pipeline_mode = #tpu.pipeline_mode<synchronous>, transform_indices = @transform_1, window_bounds = array<i64: 32, 16>}, {pipeline_mode = #tpu.pipeline_mode<synchronous>, transform_indices = @transform_2, window_bounds = array<i64: 1, 16>}, {pipeline_mode = #tpu.pipeline_mode<synchronous>, transform_indices = @transform_3, window_bounds = array<i64: 1, 16>}, {transform_indices = @transform_4, window_bounds = array<i64: 1, 64, 16>}, {transform_indices = @transform_5, window_bounds = array<i64: 1, 64, 16>}]} {
    %c0 = arith.constant 0 : index
    %c0_0 = arith.constant 0 : index
    %c0_1 = arith.constant 0 : index
    %0 = vector.load %arg1[%c0, %c0_0, %c0_1] : memref<1x64x32xf32, #tpu.memory_space<vmem>>, vector<1x64x32xf32>
    %1 = vector.shape_cast %0 : vector<1x64x32xf32> to vector<64x32xf32>
    %c0_2 = arith.constant 0 : index
    %c0_3 = arith.constant 0 : index
    %2 = vector.load %arg2[%c0_2, %c0_3] : memref<32x16xf32, #tpu.memory_space<vmem>>, vector<32x16xf32>
    %cst = arith.constant dense<0.000000e+00> : vector<64x16xf32>
    %3 = tpu.matmul %1, %2, %cst {dimension_numbers = #tpu.dot_dimension_numbers<[1], [0], [0], [1], [0, 0, 1, 1], [], []>} : vector<64x32xf32>, vector<32x16xf32>, vector<64x16xf32> -> vector<64x16xf32>
    %c0_4 = arith.constant 0 : index
    %c0_5 = arith.constant 0 : index
    %4 = vector.load %arg3[%c0_4, %c0_5] : memref<1x16xf32, #tpu.memory_space<vmem>>, vector<1x16xf32>
    %5 = vector.broadcast %4 : vector<1x16xf32> to vector<64x16xf32>
    %6 = arith.addf %3, %5 : vector<64x16xf32>
    %c0_6 = arith.constant 0 : index
    %c0_7 = arith.constant 0 : index
    %c0_8 = arith.constant 0 : index
    %7 = vector.load %arg5[%c0_6, %c0_7, %c0_8] : memref<1x64x16xf32, #tpu.memory_space<vmem>>, vector<1x64x16xf32>
    %8 = vector.shape_cast %7 : vector<1x64x16xf32> to vector<64x16xf32>
    %9 = vector.shape_cast %6 : vector<64x16xf32> to vector<1x64x16xf32>
    tpu.vector_store %arg5[%c0_6, %c0_7, %c0_8], %9 {strides = array<i32>} : memref<1x64x16xf32, #tpu.memory_space<vmem>>, vector<1x64x16xf32>,
    %c0_9 = arith.constant 0 : index
    %c0_10 = arith.constant 0 : index
    %10 = vector.load %arg4[%c0_9, %c0_10] : memref<1x16xf32, #tpu.memory_space<vmem>>, vector<1x16xf32>
    %11 = vector.broadcast %10 : vector<1x16xf32> to vector<64x16xf32>
    %12 = arith.mulf %11, %6 : vector<64x16xf32>
    %c0_11 = arith.constant 0 : index
    %c0_12 = arith.constant 0 : index
    %c0_13 = arith.constant 0 : index
    %13 = vector.load %arg6[%c0_11, %c0_12, %c0_13] : memref<1x64x16xf32, #tpu.memory_space<vmem>>, vector<1x64x16xf32>
    %14 = vector.shape_cast %13 : vector<1x64x16xf32> to vector<64x16xf32>
    %15 = vector.shape_cast %12 : vector<64x16xf32> to vector<1x64x16xf32>
    tpu.vector_store %arg6[%c0_11, %c0_12, %c0_13], %15 {strides = array<i32>} : memref<1x64x16xf32, #tpu.memory_space<vmem>>, vector<1x64x16xf32>,
    return
  }
  func.func @transform_0(%arg0: i32) -> (i32, i32, i32) {
    %c0_i32 = arith.constant 0 : i32
    %c0_i32_0 = arith.constant 0 : i32
    %c0_i32_1 = arith.constant 0 : i32
    return %arg0, %c0_i32, %c0_i32_0 : i32, i32, i32
  }
  func.func @transform_1(%arg0: i32) -> (i32, i32) {
    %c0_i32 = arith.constant 0 : i32
    %c0_i32_0 = arith.constant 0 : i32
    %c0_i32_1 = arith.constant 0 : i32
    return %c0_i32, %c0_i32_0 : i32, i32
  }
  func.func @transform_2(%arg0: i32) -> (i32, i32) {
    %c0_i32 = arith.constant 0 : i32
    %c0_i32_0 = arith.constant 0 : i32
    %c0_i32_1 = arith.constant 0 : i32
    return %c0_i32, %c0_i32_0 : i32, i32
  }
  func.func @transform_3(%arg0: i32) -> (i32, i32) {
    %c0_i32 = arith.constant 0 : i32
    %c0_i32_0 = arith.constant 0 : i32
    %c0_i32_1 = arith.constant 0 : i32
    return %c0_i32, %c0_i32_0 : i32, i32
  }
  func.func @transform_4(%arg0: i32) -> (i32, i32, i32) {
    %c0_i32 = arith.constant 0 : i32
    %c0_i32_0 = arith.constant 0 : i32
    %c0_i32_1 = arith.constant 0 : i32
    return %arg0, %c0_i32, %c0_i32_0 : i32, i32, i32
  }
  func.func @transform_5(%arg0: i32) -> (i32, i32, i32) {
    %c0_i32 = arith.constant 0 : i32
    %c0_i32_0 = arith.constant 0 : i32
    %c0_i32_1 = arith.constant 0 : i32
    return %arg0, %c0_i32, %c0_i32_0 : i32, i32, i32
  }
}

module attributes {stable_mosaic.version = 11 : i64} {
  func.func @_conv_block_kernel(%arg0: i32, %arg1: memref<1x64x16xf32, #tpu.memory_space<vmem>>, %arg2: memref<1x64x16xf32, #tpu.memory_space<vmem>>, %arg3: memref<64x96xf32, #tpu.memory_space<vmem>>, %arg4: memref<16x16xf32, #tpu.memory_space<vmem>>, %arg5: memref<1x16xf32, #tpu.memory_space<vmem>>, %arg6: memref<96x16xf32, #tpu.memory_space<vmem>>, %arg7: memref<1x16xf32, #tpu.memory_space<vmem>>, %arg8: memref<1x16xf32, #tpu.memory_space<vmem>>, %arg9: memref<1x16xf32, #tpu.memory_space<vmem>>, %arg10: memref<1x64x16xf32, #tpu.memory_space<vmem>>, %arg11: memref<1x64x16xf32, #tpu.memory_space<vmem>>, %arg12: memref<88x16xf32, #tpu.memory_space<vmem>>) attributes {dimension_semantics = [#tpu.dimension_semantics<parallel>], iteration_bounds = array<i64: 2>, scalar_prefetch = 0 : i64, scratch_operands = 1 : i64, tpu.core_type = #tpu.core_type<tc>, window_params = [{transform_indices = @transform_0, window_bounds = array<i64: 1, 64, 16>}, {transform_indices = @transform_1, window_bounds = array<i64: 1, 64, 16>}, {pipeline_mode = #tpu.pipeline_mode<synchronous>, transform_indices = @transform_2, window_bounds = array<i64: 64, 96>}, {pipeline_mode = #tpu.pipeline_mode<synchronous>, transform_indices = @transform_3, window_bounds = array<i64: 16, 16>}, {pipeline_mode = #tpu.pipeline_mode<synchronous>, transform_indices = @transform_4, window_bounds = array<i64: 1, 16>}, {pipeline_mode = #tpu.pipeline_mode<synchronous>, transform_indices = @transform_5, window_bounds = array<i64: 96, 16>}, {pipeline_mode = #tpu.pipeline_mode<synchronous>, transform_indices = @transform_6, window_bounds = array<i64: 1, 16>}, {pipeline_mode = #tpu.pipeline_mode<synchronous>, transform_indices = @transform_7, window_bounds = array<i64: 1, 16>}, {pipeline_mode = #tpu.pipeline_mode<synchronous>, transform_indices = @transform_8, window_bounds = array<i64: 1, 16>}, {transform_indices = @transform_9, window_bounds = array<i64: 1, 64, 16>}, {transform_indices = @transform_10, window_bounds = array<i64: 1, 64, 16>}]} {
    %c0 = arith.constant 0 : index
    %c0_0 = arith.constant 0 : index
    %c0_1 = arith.constant 0 : index
    %0 = vector.load %arg1[%c0, %c0_0, %c0_1] : memref<1x64x16xf32, #tpu.memory_space<vmem>>, vector<1x64x16xf32>
    %1 = vector.shape_cast %0 : vector<1x64x16xf32> to vector<64x16xf32>
    %c0_2 = arith.constant 0 : index
    %c0_3 = arith.constant 0 : index
    %c0_4 = arith.constant 0 : index
    %2 = vector.load %arg2[%c0_2, %c0_3, %c0_4] : memref<1x64x16xf32, #tpu.memory_space<vmem>>, vector<1x64x16xf32>
    %3 = vector.shape_cast %2 : vector<1x64x16xf32> to vector<64x16xf32>
    %c0_5 = arith.constant 0 : index
    %c0_6 = arith.constant 0 : index
    %4 = vector.load %arg4[%c0_5, %c0_6] : memref<16x16xf32, #tpu.memory_space<vmem>>, vector<16x16xf32>
    %cst = arith.constant dense<0.000000e+00> : vector<64x16xf32>
    %5 = tpu.matmul %1, %4, %cst {dimension_numbers = #tpu.dot_dimension_numbers<[1], [0], [0], [1], [0, 0, 1, 1], [], []>} : vector<64x16xf32>, vector<16x16xf32>, vector<64x16xf32> -> vector<64x16xf32>
    %c0_7 = arith.constant 0 : index
    %c0_8 = arith.constant 0 : index
    %6 = vector.load %arg5[%c0_7, %c0_8] : memref<1x16xf32, #tpu.memory_space<vmem>>, vector<1x16xf32>
    %7 = vector.broadcast %6 : vector<1x16xf32> to vector<64x16xf32>
    %8 = arith.addf %5, %7 : vector<64x16xf32>
    %cst_9 = arith.constant 0.000000e+00 : f32
    %9 = vector.broadcast %cst_9 : f32 to vector<88x16xf32>
    %c0_10 = arith.constant 0 : index
    %c0_11 = arith.constant 0 : index
    %10 = vector.load %arg12[%c0_10, %c0_11] : memref<88x16xf32, #tpu.memory_space<vmem>>, vector<88x16xf32>
    tpu.vector_store %arg12[%c0_10, %c0_11], %9 {strides = array<i32>} : memref<88x16xf32, #tpu.memory_space<vmem>>, vector<88x16xf32>,
    %c16 = arith.constant 16 : index
    %c0_12 = arith.constant 0 : index
    %11 = vector.load %arg12[%c16, %c0_12] : memref<88x16xf32, #tpu.memory_space<vmem>>, vector<64x16xf32>
    tpu.vector_store %arg12[%c16, %c0_12], %8 {strides = array<i32>} : memref<88x16xf32, #tpu.memory_space<vmem>>, vector<64x16xf32>,
    %c7 = arith.constant 7 : index
    %c0_13 = arith.constant 0 : index
    %12 = vector.load %arg12[%c7, %c0_13] : memref<88x16xf32, #tpu.memory_space<vmem>>, vector<64x16xf32>
    %c8 = arith.constant 8 : index
    %c0_14 = arith.constant 0 : index
    %13 = vector.load %arg12[%c8, %c0_14] : memref<88x16xf32, #tpu.memory_space<vmem>>, vector<64x16xf32>
    %c9 = arith.constant 9 : index
    %c0_15 = arith.constant 0 : index
    %14 = vector.load %arg12[%c9, %c0_15] : memref<88x16xf32, #tpu.memory_space<vmem>>, vector<64x16xf32>
    %c15 = arith.constant 15 : index
    %c0_16 = arith.constant 0 : index
    %15 = vector.load %arg12[%c15, %c0_16] : memref<88x16xf32, #tpu.memory_space<vmem>>, vector<64x16xf32>
    %c16_17 = arith.constant 16 : index
    %c0_18 = arith.constant 0 : index
    %16 = vector.load %arg12[%c16_17, %c0_18] : memref<88x16xf32, #tpu.memory_space<vmem>>, vector<64x16xf32>
    %c17 = arith.constant 17 : index
    %c0_19 = arith.constant 0 : index
    %17 = vector.load %arg12[%c17, %c0_19] : memref<88x16xf32, #tpu.memory_space<vmem>>, vector<64x16xf32>
    %18 = tpu.concatenate %12, %13, %14, %15, %16, %17 in 1 : vector<64x16xf32>, vector<64x16xf32>, vector<64x16xf32>, vector<64x16xf32>, vector<64x16xf32>, vector<64x16xf32> -> vector<64x96xf32>
    %c0_20 = arith.constant 0 : index
    %c0_21 = arith.constant 0 : index
    %19 = vector.load %arg3[%c0_20, %c0_21] : memref<64x96xf32, #tpu.memory_space<vmem>>, vector<64x96xf32>
    %20 = arith.mulf %18, %19 : vector<64x96xf32>
    %c0_22 = arith.constant 0 : index
    %c0_23 = arith.constant 0 : index
    %21 = vector.load %arg6[%c0_22, %c0_23] : memref<96x16xf32, #tpu.memory_space<vmem>>, vector<96x16xf32>
    %cst_24 = arith.constant dense<0.000000e+00> : vector<64x16xf32>
    %22 = tpu.matmul %20, %21, %cst_24 {dimension_numbers = #tpu.dot_dimension_numbers<[1], [0], [0], [1], [0, 0, 1, 1], [], []>} : vector<64x96xf32>, vector<96x16xf32>, vector<64x16xf32> -> vector<64x16xf32>
    %c0_25 = arith.constant 0 : index
    %c0_26 = arith.constant 0 : index
    %23 = vector.load %arg7[%c0_25, %c0_26] : memref<1x16xf32, #tpu.memory_space<vmem>>, vector<1x16xf32>
    %24 = vector.broadcast %23 : vector<1x16xf32> to vector<64x16xf32>
    %25 = arith.addf %22, %24 : vector<64x16xf32>
    %c0_27 = arith.constant 0 : index
    %c0_28 = arith.constant 0 : index
    %26 = vector.load %arg8[%c0_27, %c0_28] : memref<1x16xf32, #tpu.memory_space<vmem>>, vector<1x16xf32>
    %27 = vector.broadcast %26 : vector<1x16xf32> to vector<64x16xf32>
    %28 = arith.mulf %27, %25 : vector<64x16xf32>
    %29 = arith.addf %3, %28 : vector<64x16xf32>
    %c0_29 = arith.constant 0 : index
    %c0_30 = arith.constant 0 : index
    %c0_31 = arith.constant 0 : index
    %30 = vector.load %arg10[%c0_29, %c0_30, %c0_31] : memref<1x64x16xf32, #tpu.memory_space<vmem>>, vector<1x64x16xf32>
    %31 = vector.shape_cast %30 : vector<1x64x16xf32> to vector<64x16xf32>
    %32 = vector.shape_cast %29 : vector<64x16xf32> to vector<1x64x16xf32>
    tpu.vector_store %arg10[%c0_29, %c0_30, %c0_31], %32 {strides = array<i32>} : memref<1x64x16xf32, #tpu.memory_space<vmem>>, vector<1x64x16xf32>,
    %c0_32 = arith.constant 0 : index
    %c0_33 = arith.constant 0 : index
    %33 = vector.load %arg9[%c0_32, %c0_33] : memref<1x16xf32, #tpu.memory_space<vmem>>, vector<1x16xf32>
    %34 = arith.addf %1, %25 : vector<64x16xf32>
    %35 = vector.broadcast %33 : vector<1x16xf32> to vector<64x16xf32>
    %36 = arith.mulf %35, %34 : vector<64x16xf32>
    %c0_34 = arith.constant 0 : index
    %c0_35 = arith.constant 0 : index
    %c0_36 = arith.constant 0 : index
    %37 = vector.load %arg11[%c0_34, %c0_35, %c0_36] : memref<1x64x16xf32, #tpu.memory_space<vmem>>, vector<1x64x16xf32>
    %38 = vector.shape_cast %37 : vector<1x64x16xf32> to vector<64x16xf32>
    %39 = vector.shape_cast %36 : vector<64x16xf32> to vector<1x64x16xf32>
    tpu.vector_store %arg11[%c0_34, %c0_35, %c0_36], %39 {strides = array<i32>} : memref<1x64x16xf32, #tpu.memory_space<vmem>>, vector<1x64x16xf32>,
    return
  }
  func.func @transform_0(%arg0: i32) -> (i32, i32, i32) {
    %c0_i32 = arith.constant 0 : i32
    %c0_i32_0 = arith.constant 0 : i32
    %c0_i32_1 = arith.constant 0 : i32
    return %arg0, %c0_i32, %c0_i32_0 : i32, i32, i32
  }
  func.func @transform_1(%arg0: i32) -> (i32, i32, i32) {
    %c0_i32 = arith.constant 0 : i32
    %c0_i32_0 = arith.constant 0 : i32
    %c0_i32_1 = arith.constant 0 : i32
    return %arg0, %c0_i32, %c0_i32_0 : i32, i32, i32
  }
  func.func @transform_2(%arg0: i32) -> (i32, i32) {
    %c0_i32 = arith.constant 0 : i32
    %c0_i32_0 = arith.constant 0 : i32
    %c0_i32_1 = arith.constant 0 : i32
    return %c0_i32, %c0_i32_0 : i32, i32
  }
  func.func @transform_3(%arg0: i32) -> (i32, i32) {
    %c0_i32 = arith.constant 0 : i32
    %c0_i32_0 = arith.constant 0 : i32
    %c0_i32_1 = arith.constant 0 : i32
    return %c0_i32, %c0_i32_0 : i32, i32
  }
  func.func @transform_4(%arg0: i32) -> (i32, i32) {
    %c0_i32 = arith.constant 0 : i32
    %c0_i32_0 = arith.constant 0 : i32
    %c0_i32_1 = arith.constant 0 : i32
    return %c0_i32, %c0_i32_0 : i32, i32
  }
  func.func @transform_5(%arg0: i32) -> (i32, i32) {
    %c0_i32 = arith.constant 0 : i32
    %c0_i32_0 = arith.constant 0 : i32
    %c0_i32_1 = arith.constant 0 : i32
    return %c0_i32, %c0_i32_0 : i32, i32
  }
  func.func @transform_6(%arg0: i32) -> (i32, i32) {
    %c0_i32 = arith.constant 0 : i32
    %c0_i32_0 = arith.constant 0 : i32
    %c0_i32_1 = arith.constant 0 : i32
    return %c0_i32, %c0_i32_0 : i32, i32
  }
  func.func @transform_7(%arg0: i32) -> (i32, i32) {
    %c0_i32 = arith.constant 0 : i32
    %c0_i32_0 = arith.constant 0 : i32
    %c0_i32_1 = arith.constant 0 : i32
    return %c0_i32, %c0_i32_0 : i32, i32
  }
  func.func @transform_8(%arg0: i32) -> (i32, i32) {
    %c0_i32 = arith.constant 0 : i32
    %c0_i32_0 = arith.constant 0 : i32
    %c0_i32_1 = arith.constant 0 : i32
    return %c0_i32, %c0_i32_0 : i32, i32
  }
  func.func @transform_9(%arg0: i32) -> (i32, i32, i32) {
    %c0_i32 = arith.constant 0 : i32
    %c0_i32_0 = arith.constant 0 : i32
    %c0_i32_1 = arith.constant 0 : i32
    return %arg0, %c0_i32, %c0_i32_0 : i32, i32, i32
  }
  func.func @transform_10(%arg0: i32) -> (i32, i32, i32) {
    %c0_i32 = arith.constant 0 : i32
    %c0_i32_0 = arith.constant 0 : i32
    %c0_i32_1 = arith.constant 0 : i32
    return %arg0, %c0_i32, %c0_i32_0 : i32, i32, i32
  }
}

module attributes {stable_mosaic.version = 11 : i64} {
  func.func @_ff_block_kernel(%arg0: i32, %arg1: memref<1x64x16xf32, #tpu.memory_space<vmem>>, %arg2: memref<1x64x16xf32, #tpu.memory_space<vmem>>, %arg3: memref<16x64xf32, #tpu.memory_space<vmem>>, %arg4: memref<1x64xf32, #tpu.memory_space<vmem>>, %arg5: memref<64x16xf32, #tpu.memory_space<vmem>>, %arg6: memref<1x16xf32, #tpu.memory_space<vmem>>, %arg7: memref<1x16xf32, #tpu.memory_space<vmem>>, %arg8: memref<1x16xf32, #tpu.memory_space<vmem>>, %arg9: memref<1x64x16xf32, #tpu.memory_space<vmem>>, %arg10: memref<1x64x16xf32, #tpu.memory_space<vmem>>) attributes {dimension_semantics = [#tpu.dimension_semantics<parallel>], iteration_bounds = array<i64: 2>, scalar_prefetch = 0 : i64, scratch_operands = 0 : i64, tpu.core_type = #tpu.core_type<tc>, window_params = [{transform_indices = @transform_0, window_bounds = array<i64: 1, 64, 16>}, {transform_indices = @transform_1, window_bounds = array<i64: 1, 64, 16>}, {pipeline_mode = #tpu.pipeline_mode<synchronous>, transform_indices = @transform_2, window_bounds = array<i64: 16, 64>}, {pipeline_mode = #tpu.pipeline_mode<synchronous>, transform_indices = @transform_3, window_bounds = array<i64: 1, 64>}, {pipeline_mode = #tpu.pipeline_mode<synchronous>, transform_indices = @transform_4, window_bounds = array<i64: 64, 16>}, {pipeline_mode = #tpu.pipeline_mode<synchronous>, transform_indices = @transform_5, window_bounds = array<i64: 1, 16>}, {pipeline_mode = #tpu.pipeline_mode<synchronous>, transform_indices = @transform_6, window_bounds = array<i64: 1, 16>}, {pipeline_mode = #tpu.pipeline_mode<synchronous>, transform_indices = @transform_7, window_bounds = array<i64: 1, 16>}, {transform_indices = @transform_8, window_bounds = array<i64: 1, 64, 16>}, {transform_indices = @transform_9, window_bounds = array<i64: 1, 64, 16>}]} {
    %c0 = arith.constant 0 : index
    %c0_0 = arith.constant 0 : index
    %c0_1 = arith.constant 0 : index
    %0 = vector.load %arg1[%c0, %c0_0, %c0_1] : memref<1x64x16xf32, #tpu.memory_space<vmem>>, vector<1x64x16xf32>
    %1 = vector.shape_cast %0 : vector<1x64x16xf32> to vector<64x16xf32>
    %c0_2 = arith.constant 0 : index
    %c0_3 = arith.constant 0 : index
    %c0_4 = arith.constant 0 : index
    %2 = vector.load %arg2[%c0_2, %c0_3, %c0_4] : memref<1x64x16xf32, #tpu.memory_space<vmem>>, vector<1x64x16xf32>
    %3 = vector.shape_cast %2 : vector<1x64x16xf32> to vector<64x16xf32>
    %c0_5 = arith.constant 0 : index
    %c0_6 = arith.constant 0 : index
    %4 = vector.load %arg3[%c0_5, %c0_6] : memref<16x64xf32, #tpu.memory_space<vmem>>, vector<16x64xf32>
    %cst = arith.constant dense<0.000000e+00> : vector<64x64xf32>
    %5 = tpu.matmul %1, %4, %cst {dimension_numbers = #tpu.dot_dimension_numbers<[1], [0], [0], [1], [0, 0, 1, 1], [], []>} : vector<64x16xf32>, vector<16x64xf32>, vector<64x64xf32> -> vector<64x64xf32>
    %c0_7 = arith.constant 0 : index
    %c0_8 = arith.constant 0 : index
    %6 = vector.load %arg4[%c0_7, %c0_8] : memref<1x64xf32, #tpu.memory_space<vmem>>, vector<1x64xf32>
    %7 = vector.broadcast %6 : vector<1x64xf32> to vector<64x64xf32>
    %8 = arith.addf %5, %7 : vector<64x64xf32>
    %cst_9 = arith.constant 0.000000e+00 : f32
    %9 = vector.broadcast %cst_9 : f32 to vector<64x64xf32>
    %10 = arith.maximumf %8, %9 : vector<64x64xf32>
    %c0_10 = arith.constant 0 : index
    %c0_11 = arith.constant 0 : index
    %11 = vector.load %arg5[%c0_10, %c0_11] : memref<64x16xf32, #tpu.memory_space<vmem>>, vector<64x16xf32>
    %cst_12 = arith.constant dense<0.000000e+00> : vector<64x16xf32>
    %12 = tpu.matmul %10, %11, %cst_12 {dimension_numbers = #tpu.dot_dimension_numbers<[1], [0], [0], [1], [0, 0, 1, 1], [], []>} : vector<64x64xf32>, vector<64x16xf32>, vector<64x16xf32> -> vector<64x16xf32>
    %c0_13 = arith.constant 0 : index
    %c0_14 = arith.constant 0 : index
    %13 = vector.load %arg6[%c0_13, %c0_14] : memref<1x16xf32, #tpu.memory_space<vmem>>, vector<1x16xf32>
    %14 = vector.broadcast %13 : vector<1x16xf32> to vector<64x16xf32>
    %15 = arith.addf %12, %14 : vector<64x16xf32>
    %c0_15 = arith.constant 0 : index
    %c0_16 = arith.constant 0 : index
    %16 = vector.load %arg7[%c0_15, %c0_16] : memref<1x16xf32, #tpu.memory_space<vmem>>, vector<1x16xf32>
    %17 = vector.broadcast %16 : vector<1x16xf32> to vector<64x16xf32>
    %18 = arith.mulf %17, %15 : vector<64x16xf32>
    %19 = arith.addf %3, %18 : vector<64x16xf32>
    %c0_17 = arith.constant 0 : index
    %c0_18 = arith.constant 0 : index
    %c0_19 = arith.constant 0 : index
    %20 = vector.load %arg9[%c0_17, %c0_18, %c0_19] : memref<1x64x16xf32, #tpu.memory_space<vmem>>, vector<1x64x16xf32>
    %21 = vector.shape_cast %20 : vector<1x64x16xf32> to vector<64x16xf32>
    %22 = vector.shape_cast %19 : vector<64x16xf32> to vector<1x64x16xf32>
    tpu.vector_store %arg9[%c0_17, %c0_18, %c0_19], %22 {strides = array<i32>} : memref<1x64x16xf32, #tpu.memory_space<vmem>>, vector<1x64x16xf32>,
    %c0_20 = arith.constant 0 : index
    %c0_21 = arith.constant 0 : index
    %23 = vector.load %arg8[%c0_20, %c0_21] : memref<1x16xf32, #tpu.memory_space<vmem>>, vector<1x16xf32>
    %24 = arith.addf %1, %15 : vector<64x16xf32>
    %25 = vector.broadcast %23 : vector<1x16xf32> to vector<64x16xf32>
    %26 = arith.mulf %25, %24 : vector<64x16xf32>
    %c0_22 = arith.constant 0 : index
    %c0_23 = arith.constant 0 : index
    %c0_24 = arith.constant 0 : index
    %27 = vector.load %arg10[%c0_22, %c0_23, %c0_24] : memref<1x64x16xf32, #tpu.memory_space<vmem>>, vector<1x64x16xf32>
    %28 = vector.shape_cast %27 : vector<1x64x16xf32> to vector<64x16xf32>
    %29 = vector.shape_cast %26 : vector<64x16xf32> to vector<1x64x16xf32>
    tpu.vector_store %arg10[%c0_22, %c0_23, %c0_24], %29 {strides = array<i32>} : memref<1x64x16xf32, #tpu.memory_space<vmem>>, vector<1x64x16xf32>,
    return
  }
  func.func @transform_0(%arg0: i32) -> (i32, i32, i32) {
    %c0_i32 = arith.constant 0 : i32
    %c0_i32_0 = arith.constant 0 : i32
    %c0_i32_1 = arith.constant 0 : i32
    return %arg0, %c0_i32, %c0_i32_0 : i32, i32, i32
  }
  func.func @transform_1(%arg0: i32) -> (i32, i32, i32) {
    %c0_i32 = arith.constant 0 : i32
    %c0_i32_0 = arith.constant 0 : i32
    %c0_i32_1 = arith.constant 0 : i32
    return %arg0, %c0_i32, %c0_i32_0 : i32, i32, i32
  }
  func.func @transform_2(%arg0: i32) -> (i32, i32) {
    %c0_i32 = arith.constant 0 : i32
    %c0_i32_0 = arith.constant 0 : i32
    %c0_i32_1 = arith.constant 0 : i32
    return %c0_i32, %c0_i32_0 : i32, i32
  }
  func.func @transform_3(%arg0: i32) -> (i32, i32) {
    %c0_i32 = arith.constant 0 : i32
    %c0_i32_0 = arith.constant 0 : i32
    %c0_i32_1 = arith.constant 0 : i32
    return %c0_i32, %c0_i32_0 : i32, i32
  }
  func.func @transform_4(%arg0: i32) -> (i32, i32) {
    %c0_i32 = arith.constant 0 : i32
    %c0_i32_0 = arith.constant 0 : i32
    %c0_i32_1 = arith.constant 0 : i32
    return %c0_i32, %c0_i32_0 : i32, i32
  }
  func.func @transform_5(%arg0: i32) -> (i32, i32) {
    %c0_i32 = arith.constant 0 : i32
    %c0_i32_0 = arith.constant 0 : i32
    %c0_i32_1 = arith.constant 0 : i32
    return %c0_i32, %c0_i32_0 : i32, i32
  }
  func.func @transform_6(%arg0: i32) -> (i32, i32) {
    %c0_i32 = arith.constant 0 : i32
    %c0_i32_0 = arith.constant 0 : i32
    %c0_i32_1 = arith.constant 0 : i32
    return %c0_i32, %c0_i32_0 : i32, i32
  }
  func.func @transform_7(%arg0: i32) -> (i32, i32) {
    %c0_i32 = arith.constant 0 : i32
    %c0_i32_0 = arith.constant 0 : i32
    %c0_i32_1 = arith.constant 0 : i32
    return %c0_i32, %c0_i32_0 : i32, i32
  }
  func.func @transform_8(%arg0: i32) -> (i32, i32, i32) {
    %c0_i32 = arith.constant 0 : i32
    %c0_i32_0 = arith.constant 0 : i32
    %c0_i32_1 = arith.constant 0 : i32
    return %arg0, %c0_i32, %c0_i32_0 : i32, i32, i32
  }
  func.func @transform_9(%arg0: i32) -> (i32, i32, i32) {
    %c0_i32 = arith.constant 0 : i32
    %c0_i32_0 = arith.constant 0 : i32
    %c0_i32_1 = arith.constant 0 : i32
    return %arg0, %c0_i32, %c0_i32_0 : i32, i32, i32
  }
}

module attributes {stable_mosaic.version = 11 : i64} {
  func.func @_ff_block_kernel(%arg0: i32, %arg1: memref<1x64x16xf32, #tpu.memory_space<vmem>>, %arg2: memref<1x64x16xf32, #tpu.memory_space<vmem>>, %arg3: memref<16x64xf32, #tpu.memory_space<vmem>>, %arg4: memref<1x64xf32, #tpu.memory_space<vmem>>, %arg5: memref<64x16xf32, #tpu.memory_space<vmem>>, %arg6: memref<1x16xf32, #tpu.memory_space<vmem>>, %arg7: memref<1x16xf32, #tpu.memory_space<vmem>>, %arg8: memref<1x16xf32, #tpu.memory_space<vmem>>, %arg9: memref<1x64x16xf32, #tpu.memory_space<vmem>>, %arg10: memref<1x64x16xf32, #tpu.memory_space<vmem>>) attributes {dimension_semantics = [#tpu.dimension_semantics<parallel>], iteration_bounds = array<i64: 2>, scalar_prefetch = 0 : i64, scratch_operands = 0 : i64, tpu.core_type = #tpu.core_type<tc>, window_params = [{transform_indices = @transform_0, window_bounds = array<i64: 1, 64, 16>}, {transform_indices = @transform_1, window_bounds = array<i64: 1, 64, 16>}, {pipeline_mode = #tpu.pipeline_mode<synchronous>, transform_indices = @transform_2, window_bounds = array<i64: 16, 64>}, {pipeline_mode = #tpu.pipeline_mode<synchronous>, transform_indices = @transform_3, window_bounds = array<i64: 1, 64>}, {pipeline_mode = #tpu.pipeline_mode<synchronous>, transform_indices = @transform_4, window_bounds = array<i64: 64, 16>}, {pipeline_mode = #tpu.pipeline_mode<synchronous>, transform_indices = @transform_5, window_bounds = array<i64: 1, 16>}, {pipeline_mode = #tpu.pipeline_mode<synchronous>, transform_indices = @transform_6, window_bounds = array<i64: 1, 16>}, {pipeline_mode = #tpu.pipeline_mode<synchronous>, transform_indices = @transform_7, window_bounds = array<i64: 1, 16>}, {transform_indices = @transform_8, window_bounds = array<i64: 1, 64, 16>}, {transform_indices = @transform_9, window_bounds = array<i64: 1, 64, 16>}]} {
    %c0 = arith.constant 0 : index
    %c0_0 = arith.constant 0 : index
    %c0_1 = arith.constant 0 : index
    %0 = vector.load %arg1[%c0, %c0_0, %c0_1] : memref<1x64x16xf32, #tpu.memory_space<vmem>>, vector<1x64x16xf32>
    %1 = vector.shape_cast %0 : vector<1x64x16xf32> to vector<64x16xf32>
    %c0_2 = arith.constant 0 : index
    %c0_3 = arith.constant 0 : index
    %c0_4 = arith.constant 0 : index
    %2 = vector.load %arg2[%c0_2, %c0_3, %c0_4] : memref<1x64x16xf32, #tpu.memory_space<vmem>>, vector<1x64x16xf32>
    %3 = vector.shape_cast %2 : vector<1x64x16xf32> to vector<64x16xf32>
    %c0_5 = arith.constant 0 : index
    %c0_6 = arith.constant 0 : index
    %4 = vector.load %arg3[%c0_5, %c0_6] : memref<16x64xf32, #tpu.memory_space<vmem>>, vector<16x64xf32>
    %cst = arith.constant dense<0.000000e+00> : vector<64x64xf32>
    %5 = tpu.matmul %1, %4, %cst {dimension_numbers = #tpu.dot_dimension_numbers<[1], [0], [0], [1], [0, 0, 1, 1], [], []>} : vector<64x16xf32>, vector<16x64xf32>, vector<64x64xf32> -> vector<64x64xf32>
    %c0_7 = arith.constant 0 : index
    %c0_8 = arith.constant 0 : index
    %6 = vector.load %arg4[%c0_7, %c0_8] : memref<1x64xf32, #tpu.memory_space<vmem>>, vector<1x64xf32>
    %7 = vector.broadcast %6 : vector<1x64xf32> to vector<64x64xf32>
    %8 = arith.addf %5, %7 : vector<64x64xf32>
    %cst_9 = arith.constant 0.000000e+00 : f32
    %9 = vector.broadcast %cst_9 : f32 to vector<64x64xf32>
    %10 = arith.maximumf %8, %9 : vector<64x64xf32>
    %c0_10 = arith.constant 0 : index
    %c0_11 = arith.constant 0 : index
    %11 = vector.load %arg5[%c0_10, %c0_11] : memref<64x16xf32, #tpu.memory_space<vmem>>, vector<64x16xf32>
    %cst_12 = arith.constant dense<0.000000e+00> : vector<64x16xf32>
    %12 = tpu.matmul %10, %11, %cst_12 {dimension_numbers = #tpu.dot_dimension_numbers<[1], [0], [0], [1], [0, 0, 1, 1], [], []>} : vector<64x64xf32>, vector<64x16xf32>, vector<64x16xf32> -> vector<64x16xf32>
    %c0_13 = arith.constant 0 : index
    %c0_14 = arith.constant 0 : index
    %13 = vector.load %arg6[%c0_13, %c0_14] : memref<1x16xf32, #tpu.memory_space<vmem>>, vector<1x16xf32>
    %14 = vector.broadcast %13 : vector<1x16xf32> to vector<64x16xf32>
    %15 = arith.addf %12, %14 : vector<64x16xf32>
    %c0_15 = arith.constant 0 : index
    %c0_16 = arith.constant 0 : index
    %16 = vector.load %arg7[%c0_15, %c0_16] : memref<1x16xf32, #tpu.memory_space<vmem>>, vector<1x16xf32>
    %17 = vector.broadcast %16 : vector<1x16xf32> to vector<64x16xf32>
    %18 = arith.mulf %17, %15 : vector<64x16xf32>
    %19 = arith.addf %3, %18 : vector<64x16xf32>
    %c0_17 = arith.constant 0 : index
    %c0_18 = arith.constant 0 : index
    %c0_19 = arith.constant 0 : index
    %20 = vector.load %arg9[%c0_17, %c0_18, %c0_19] : memref<1x64x16xf32, #tpu.memory_space<vmem>>, vector<1x64x16xf32>
    %21 = vector.shape_cast %20 : vector<1x64x16xf32> to vector<64x16xf32>
    %22 = vector.shape_cast %19 : vector<64x16xf32> to vector<1x64x16xf32>
    tpu.vector_store %arg9[%c0_17, %c0_18, %c0_19], %22 {strides = array<i32>} : memref<1x64x16xf32, #tpu.memory_space<vmem>>, vector<1x64x16xf32>,
    %c0_20 = arith.constant 0 : index
    %c0_21 = arith.constant 0 : index
    %23 = vector.load %arg8[%c0_20, %c0_21] : memref<1x16xf32, #tpu.memory_space<vmem>>, vector<1x16xf32>
    %24 = arith.addf %1, %15 : vector<64x16xf32>
    %25 = vector.broadcast %23 : vector<1x16xf32> to vector<64x16xf32>
    %26 = arith.mulf %25, %24 : vector<64x16xf32>
    %c0_22 = arith.constant 0 : index
    %c0_23 = arith.constant 0 : index
    %c0_24 = arith.constant 0 : index
    %27 = vector.load %arg10[%c0_22, %c0_23, %c0_24] : memref<1x64x16xf32, #tpu.memory_space<vmem>>, vector<1x64x16xf32>
    %28 = vector.shape_cast %27 : vector<1x64x16xf32> to vector<64x16xf32>
    %29 = vector.shape_cast %26 : vector<64x16xf32> to vector<1x64x16xf32>
    tpu.vector_store %arg10[%c0_22, %c0_23, %c0_24], %29 {strides = array<i32>} : memref<1x64x16xf32, #tpu.memory_space<vmem>>, vector<1x64x16xf32>,
    return
  }
  func.func @transform_0(%arg0: i32) -> (i32, i32, i32) {
    %c0_i32 = arith.constant 0 : i32
    %c0_i32_0 = arith.constant 0 : i32
    %c0_i32_1 = arith.constant 0 : i32
    return %arg0, %c0_i32, %c0_i32_0 : i32, i32, i32
  }
  func.func @transform_1(%arg0: i32) -> (i32, i32, i32) {
    %c0_i32 = arith.constant 0 : i32
    %c0_i32_0 = arith.constant 0 : i32
    %c0_i32_1 = arith.constant 0 : i32
    return %arg0, %c0_i32, %c0_i32_0 : i32, i32, i32
  }
  func.func @transform_2(%arg0: i32) -> (i32, i32) {
    %c0_i32 = arith.constant 0 : i32
    %c0_i32_0 = arith.constant 0 : i32
    %c0_i32_1 = arith.constant 0 : i32
    return %c0_i32, %c0_i32_0 : i32, i32
  }
  func.func @transform_3(%arg0: i32) -> (i32, i32) {
    %c0_i32 = arith.constant 0 : i32
    %c0_i32_0 = arith.constant 0 : i32
    %c0_i32_1 = arith.constant 0 : i32
    return %c0_i32, %c0_i32_0 : i32, i32
  }
  func.func @transform_4(%arg0: i32) -> (i32, i32) {
    %c0_i32 = arith.constant 0 : i32
    %c0_i32_0 = arith.constant 0 : i32
    %c0_i32_1 = arith.constant 0 : i32
    return %c0_i32, %c0_i32_0 : i32, i32
  }
  func.func @transform_5(%arg0: i32) -> (i32, i32) {
    %c0_i32 = arith.constant 0 : i32
    %c0_i32_0 = arith.constant 0 : i32
    %c0_i32_1 = arith.constant 0 : i32
    return %c0_i32, %c0_i32_0 : i32, i32
  }
  func.func @transform_6(%arg0: i32) -> (i32, i32) {
    %c0_i32 = arith.constant 0 : i32
    %c0_i32_0 = arith.constant 0 : i32
    %c0_i32_1 = arith.constant 0 : i32
    return %c0_i32, %c0_i32_0 : i32, i32
  }
  func.func @transform_7(%arg0: i32) -> (i32, i32) {
    %c0_i32 = arith.constant 0 : i32
    %c0_i32_0 = arith.constant 0 : i32
    %c0_i32_1 = arith.constant 0 : i32
    return %c0_i32, %c0_i32_0 : i32, i32
  }
  func.func @transform_8(%arg0: i32) -> (i32, i32, i32) {
    %c0_i32 = arith.constant 0 : i32
    %c0_i32_0 = arith.constant 0 : i32
    %c0_i32_1 = arith.constant 0 : i32
    return %arg0, %c0_i32, %c0_i32_0 : i32, i32, i32
  }
  func.func @transform_9(%arg0: i32) -> (i32, i32, i32) {
    %c0_i32 = arith.constant 0 : i32
    %c0_i32_0 = arith.constant 0 : i32
    %c0_i32_1 = arith.constant 0 : i32
    return %arg0, %c0_i32, %c0_i32_0 : i32, i32, i32
  }
}

module attributes {stable_mosaic.version = 11 : i64} {
  func.func @_reduce_init_kernel(%arg0: i32, %arg1: memref<1x64x32xf32, #tpu.memory_space<vmem>>, %arg2: memref<32x16xf32, #tpu.memory_space<vmem>>, %arg3: memref<1x16xf32, #tpu.memory_space<vmem>>, %arg4: memref<1x16xf32, #tpu.memory_space<vmem>>, %arg5: memref<1x64x16xf32, #tpu.memory_space<vmem>>, %arg6: memref<1x64x16xf32, #tpu.memory_space<vmem>>) attributes {dimension_semantics = [#tpu.dimension_semantics<parallel>], iteration_bounds = array<i64: 2>, scalar_prefetch = 0 : i64, scratch_operands = 0 : i64, tpu.core_type = #tpu.core_type<tc>, window_params = [{transform_indices = @transform_0, window_bounds = array<i64: 1, 64, 32>}, {pipeline_mode = #tpu.pipeline_mode<synchronous>, transform_indices = @transform_1, window_bounds = array<i64: 32, 16>}, {pipeline_mode = #tpu.pipeline_mode<synchronous>, transform_indices = @transform_2, window_bounds = array<i64: 1, 16>}, {pipeline_mode = #tpu.pipeline_mode<synchronous>, transform_indices = @transform_3, window_bounds = array<i64: 1, 16>}, {transform_indices = @transform_4, window_bounds = array<i64: 1, 64, 16>}, {transform_indices = @transform_5, window_bounds = array<i64: 1, 64, 16>}]} {
    %c0 = arith.constant 0 : index
    %c0_0 = arith.constant 0 : index
    %c0_1 = arith.constant 0 : index
    %0 = vector.load %arg1[%c0, %c0_0, %c0_1] : memref<1x64x32xf32, #tpu.memory_space<vmem>>, vector<1x64x32xf32>
    %1 = vector.shape_cast %0 : vector<1x64x32xf32> to vector<64x32xf32>
    %c0_2 = arith.constant 0 : index
    %c0_3 = arith.constant 0 : index
    %2 = vector.load %arg2[%c0_2, %c0_3] : memref<32x16xf32, #tpu.memory_space<vmem>>, vector<32x16xf32>
    %cst = arith.constant dense<0.000000e+00> : vector<64x16xf32>
    %3 = tpu.matmul %1, %2, %cst {dimension_numbers = #tpu.dot_dimension_numbers<[1], [0], [0], [1], [0, 0, 1, 1], [], []>} : vector<64x32xf32>, vector<32x16xf32>, vector<64x16xf32> -> vector<64x16xf32>
    %c0_4 = arith.constant 0 : index
    %c0_5 = arith.constant 0 : index
    %4 = vector.load %arg3[%c0_4, %c0_5] : memref<1x16xf32, #tpu.memory_space<vmem>>, vector<1x16xf32>
    %5 = vector.broadcast %4 : vector<1x16xf32> to vector<64x16xf32>
    %6 = arith.addf %3, %5 : vector<64x16xf32>
    %c0_6 = arith.constant 0 : index
    %c0_7 = arith.constant 0 : index
    %c0_8 = arith.constant 0 : index
    %7 = vector.load %arg5[%c0_6, %c0_7, %c0_8] : memref<1x64x16xf32, #tpu.memory_space<vmem>>, vector<1x64x16xf32>
    %8 = vector.shape_cast %7 : vector<1x64x16xf32> to vector<64x16xf32>
    %9 = vector.shape_cast %6 : vector<64x16xf32> to vector<1x64x16xf32>
    tpu.vector_store %arg5[%c0_6, %c0_7, %c0_8], %9 {strides = array<i32>} : memref<1x64x16xf32, #tpu.memory_space<vmem>>, vector<1x64x16xf32>,
    %c0_9 = arith.constant 0 : index
    %c0_10 = arith.constant 0 : index
    %10 = vector.load %arg4[%c0_9, %c0_10] : memref<1x16xf32, #tpu.memory_space<vmem>>, vector<1x16xf32>
    %11 = vector.broadcast %10 : vector<1x16xf32> to vector<64x16xf32>
    %12 = arith.mulf %11, %6 : vector<64x16xf32>
    %c0_11 = arith.constant 0 : index
    %c0_12 = arith.constant 0 : index
    %c0_13 = arith.constant 0 : index
    %13 = vector.load %arg6[%c0_11, %c0_12, %c0_13] : memref<1x64x16xf32, #tpu.memory_space<vmem>>, vector<1x64x16xf32>
    %14 = vector.shape_cast %13 : vector<1x64x16xf32> to vector<64x16xf32>
    %15 = vector.shape_cast %12 : vector<64x16xf32> to vector<1x64x16xf32>
    tpu.vector_store %arg6[%c0_11, %c0_12, %c0_13], %15 {strides = array<i32>} : memref<1x64x16xf32, #tpu.memory_space<vmem>>, vector<1x64x16xf32>,
    return
  }
  func.func @transform_0(%arg0: i32) -> (i32, i32, i32) {
    %c0_i32 = arith.constant 0 : i32
    %c0_i32_0 = arith.constant 0 : i32
    %c0_i32_1 = arith.constant 0 : i32
    return %arg0, %c0_i32, %c0_i32_0 : i32, i32, i32
  }
  func.func @transform_1(%arg0: i32) -> (i32, i32) {
    %c0_i32 = arith.constant 0 : i32
    %c0_i32_0 = arith.constant 0 : i32
    %c0_i32_1 = arith.constant 0 : i32
    return %c0_i32, %c0_i32_0 : i32, i32
  }
  func.func @transform_2(%arg0: i32) -> (i32, i32) {
    %c0_i32 = arith.constant 0 : i32
    %c0_i32_0 = arith.constant 0 : i32
    %c0_i32_1 = arith.constant 0 : i32
    return %c0_i32, %c0_i32_0 : i32, i32
  }
  func.func @transform_3(%arg0: i32) -> (i32, i32) {
    %c0_i32 = arith.constant 0 : i32
    %c0_i32_0 = arith.constant 0 : i32
    %c0_i32_1 = arith.constant 0 : i32
    return %c0_i32, %c0_i32_0 : i32, i32
  }
  func.func @transform_4(%arg0: i32) -> (i32, i32, i32) {
    %c0_i32 = arith.constant 0 : i32
    %c0_i32_0 = arith.constant 0 : i32
    %c0_i32_1 = arith.constant 0 : i32
    return %arg0, %c0_i32, %c0_i32_0 : i32, i32, i32
  }
  func.func @transform_5(%arg0: i32) -> (i32, i32, i32) {
    %c0_i32 = arith.constant 0 : i32
    %c0_i32_0 = arith.constant 0 : i32
    %c0_i32_1 = arith.constant 0 : i32
    return %arg0, %c0_i32, %c0_i32_0 : i32, i32, i32
  }
}

module attributes {stable_mosaic.version = 11 : i64} {
  func.func @_ff_block_kernel(%arg0: i32, %arg1: memref<1x64x16xf32, #tpu.memory_space<vmem>>, %arg2: memref<1x64x16xf32, #tpu.memory_space<vmem>>, %arg3: memref<16x64xf32, #tpu.memory_space<vmem>>, %arg4: memref<1x64xf32, #tpu.memory_space<vmem>>, %arg5: memref<64x16xf32, #tpu.memory_space<vmem>>, %arg6: memref<1x16xf32, #tpu.memory_space<vmem>>, %arg7: memref<1x16xf32, #tpu.memory_space<vmem>>, %arg8: memref<1x16xf32, #tpu.memory_space<vmem>>, %arg9: memref<1x64x16xf32, #tpu.memory_space<vmem>>, %arg10: memref<1x64x16xf32, #tpu.memory_space<vmem>>) attributes {dimension_semantics = [#tpu.dimension_semantics<parallel>], iteration_bounds = array<i64: 2>, scalar_prefetch = 0 : i64, scratch_operands = 0 : i64, tpu.core_type = #tpu.core_type<tc>, window_params = [{transform_indices = @transform_0, window_bounds = array<i64: 1, 64, 16>}, {transform_indices = @transform_1, window_bounds = array<i64: 1, 64, 16>}, {pipeline_mode = #tpu.pipeline_mode<synchronous>, transform_indices = @transform_2, window_bounds = array<i64: 16, 64>}, {pipeline_mode = #tpu.pipeline_mode<synchronous>, transform_indices = @transform_3, window_bounds = array<i64: 1, 64>}, {pipeline_mode = #tpu.pipeline_mode<synchronous>, transform_indices = @transform_4, window_bounds = array<i64: 64, 16>}, {pipeline_mode = #tpu.pipeline_mode<synchronous>, transform_indices = @transform_5, window_bounds = array<i64: 1, 16>}, {pipeline_mode = #tpu.pipeline_mode<synchronous>, transform_indices = @transform_6, window_bounds = array<i64: 1, 16>}, {pipeline_mode = #tpu.pipeline_mode<synchronous>, transform_indices = @transform_7, window_bounds = array<i64: 1, 16>}, {transform_indices = @transform_8, window_bounds = array<i64: 1, 64, 16>}, {transform_indices = @transform_9, window_bounds = array<i64: 1, 64, 16>}]} {
    %c0 = arith.constant 0 : index
    %c0_0 = arith.constant 0 : index
    %c0_1 = arith.constant 0 : index
    %0 = vector.load %arg1[%c0, %c0_0, %c0_1] : memref<1x64x16xf32, #tpu.memory_space<vmem>>, vector<1x64x16xf32>
    %1 = vector.shape_cast %0 : vector<1x64x16xf32> to vector<64x16xf32>
    %c0_2 = arith.constant 0 : index
    %c0_3 = arith.constant 0 : index
    %c0_4 = arith.constant 0 : index
    %2 = vector.load %arg2[%c0_2, %c0_3, %c0_4] : memref<1x64x16xf32, #tpu.memory_space<vmem>>, vector<1x64x16xf32>
    %3 = vector.shape_cast %2 : vector<1x64x16xf32> to vector<64x16xf32>
    %c0_5 = arith.constant 0 : index
    %c0_6 = arith.constant 0 : index
    %4 = vector.load %arg3[%c0_5, %c0_6] : memref<16x64xf32, #tpu.memory_space<vmem>>, vector<16x64xf32>
    %cst = arith.constant dense<0.000000e+00> : vector<64x64xf32>
    %5 = tpu.matmul %1, %4, %cst {dimension_numbers = #tpu.dot_dimension_numbers<[1], [0], [0], [1], [0, 0, 1, 1], [], []>} : vector<64x16xf32>, vector<16x64xf32>, vector<64x64xf32> -> vector<64x64xf32>
    %c0_7 = arith.constant 0 : index
    %c0_8 = arith.constant 0 : index
    %6 = vector.load %arg4[%c0_7, %c0_8] : memref<1x64xf32, #tpu.memory_space<vmem>>, vector<1x64xf32>
    %7 = vector.broadcast %6 : vector<1x64xf32> to vector<64x64xf32>
    %8 = arith.addf %5, %7 : vector<64x64xf32>
    %cst_9 = arith.constant 0.000000e+00 : f32
    %9 = vector.broadcast %cst_9 : f32 to vector<64x64xf32>
    %10 = arith.maximumf %8, %9 : vector<64x64xf32>
    %c0_10 = arith.constant 0 : index
    %c0_11 = arith.constant 0 : index
    %11 = vector.load %arg5[%c0_10, %c0_11] : memref<64x16xf32, #tpu.memory_space<vmem>>, vector<64x16xf32>
    %cst_12 = arith.constant dense<0.000000e+00> : vector<64x16xf32>
    %12 = tpu.matmul %10, %11, %cst_12 {dimension_numbers = #tpu.dot_dimension_numbers<[1], [0], [0], [1], [0, 0, 1, 1], [], []>} : vector<64x64xf32>, vector<64x16xf32>, vector<64x16xf32> -> vector<64x16xf32>
    %c0_13 = arith.constant 0 : index
    %c0_14 = arith.constant 0 : index
    %13 = vector.load %arg6[%c0_13, %c0_14] : memref<1x16xf32, #tpu.memory_space<vmem>>, vector<1x16xf32>
    %14 = vector.broadcast %13 : vector<1x16xf32> to vector<64x16xf32>
    %15 = arith.addf %12, %14 : vector<64x16xf32>
    %c0_15 = arith.constant 0 : index
    %c0_16 = arith.constant 0 : index
    %16 = vector.load %arg7[%c0_15, %c0_16] : memref<1x16xf32, #tpu.memory_space<vmem>>, vector<1x16xf32>
    %17 = vector.broadcast %16 : vector<1x16xf32> to vector<64x16xf32>
    %18 = arith.mulf %17, %15 : vector<64x16xf32>
    %19 = arith.addf %3, %18 : vector<64x16xf32>
    %c0_17 = arith.constant 0 : index
    %c0_18 = arith.constant 0 : index
    %c0_19 = arith.constant 0 : index
    %20 = vector.load %arg9[%c0_17, %c0_18, %c0_19] : memref<1x64x16xf32, #tpu.memory_space<vmem>>, vector<1x64x16xf32>
    %21 = vector.shape_cast %20 : vector<1x64x16xf32> to vector<64x16xf32>
    %22 = vector.shape_cast %19 : vector<64x16xf32> to vector<1x64x16xf32>
    tpu.vector_store %arg9[%c0_17, %c0_18, %c0_19], %22 {strides = array<i32>} : memref<1x64x16xf32, #tpu.memory_space<vmem>>, vector<1x64x16xf32>,
    %c0_20 = arith.constant 0 : index
    %c0_21 = arith.constant 0 : index
    %23 = vector.load %arg8[%c0_20, %c0_21] : memref<1x16xf32, #tpu.memory_space<vmem>>, vector<1x16xf32>
    %24 = arith.addf %1, %15 : vector<64x16xf32>
    %25 = vector.broadcast %23 : vector<1x16xf32> to vector<64x16xf32>
    %26 = arith.mulf %25, %24 : vector<64x16xf32>
    %c0_22 = arith.constant 0 : index
    %c0_23 = arith.constant 0 : index
    %c0_24 = arith.constant 0 : index
    %27 = vector.load %arg10[%c0_22, %c0_23, %c0_24] : memref<1x64x16xf32, #tpu.memory_space<vmem>>, vector<1x64x16xf32>
    %28 = vector.shape_cast %27 : vector<1x64x16xf32> to vector<64x16xf32>
    %29 = vector.shape_cast %26 : vector<64x16xf32> to vector<1x64x16xf32>
    tpu.vector_store %arg10[%c0_22, %c0_23, %c0_24], %29 {strides = array<i32>} : memref<1x64x16xf32, #tpu.memory_space<vmem>>, vector<1x64x16xf32>,
    return
  }
  func.func @transform_0(%arg0: i32) -> (i32, i32, i32) {
    %c0_i32 = arith.constant 0 : i32
    %c0_i32_0 = arith.constant 0 : i32
    %c0_i32_1 = arith.constant 0 : i32
    return %arg0, %c0_i32, %c0_i32_0 : i32, i32, i32
  }
  func.func @transform_1(%arg0: i32) -> (i32, i32, i32) {
    %c0_i32 = arith.constant 0 : i32
    %c0_i32_0 = arith.constant 0 : i32
    %c0_i32_1 = arith.constant 0 : i32
    return %arg0, %c0_i32, %c0_i32_0 : i32, i32, i32
  }
  func.func @transform_2(%arg0: i32) -> (i32, i32) {
    %c0_i32 = arith.constant 0 : i32
    %c0_i32_0 = arith.constant 0 : i32
    %c0_i32_1 = arith.constant 0 : i32
    return %c0_i32, %c0_i32_0 : i32, i32
  }
  func.func @transform_3(%arg0: i32) -> (i32, i32) {
    %c0_i32 = arith.constant 0 : i32
    %c0_i32_0 = arith.constant 0 : i32
    %c0_i32_1 = arith.constant 0 : i32
    return %c0_i32, %c0_i32_0 : i32, i32
  }
  func.func @transform_4(%arg0: i32) -> (i32, i32) {
    %c0_i32 = arith.constant 0 : i32
    %c0_i32_0 = arith.constant 0 : i32
    %c0_i32_1 = arith.constant 0 : i32
    return %c0_i32, %c0_i32_0 : i32, i32
  }
  func.func @transform_5(%arg0: i32) -> (i32, i32) {
    %c0_i32 = arith.constant 0 : i32
    %c0_i32_0 = arith.constant 0 : i32
    %c0_i32_1 = arith.constant 0 : i32
    return %c0_i32, %c0_i32_0 : i32, i32
  }
  func.func @transform_6(%arg0: i32) -> (i32, i32) {
    %c0_i32 = arith.constant 0 : i32
    %c0_i32_0 = arith.constant 0 : i32
    %c0_i32_1 = arith.constant 0 : i32
    return %c0_i32, %c0_i32_0 : i32, i32
  }
  func.func @transform_7(%arg0: i32) -> (i32, i32) {
    %c0_i32 = arith.constant 0 : i32
    %c0_i32_0 = arith.constant 0 : i32
    %c0_i32_1 = arith.constant 0 : i32
    return %c0_i32, %c0_i32_0 : i32, i32
  }
  func.func @transform_8(%arg0: i32) -> (i32, i32, i32) {
    %c0_i32 = arith.constant 0 : i32
    %c0_i32_0 = arith.constant 0 : i32
    %c0_i32_1 = arith.constant 0 : i32
    return %arg0, %c0_i32, %c0_i32_0 : i32, i32, i32
  }
  func.func @transform_9(%arg0: i32) -> (i32, i32, i32) {
    %c0_i32 = arith.constant 0 : i32
    %c0_i32_0 = arith.constant 0 : i32
    %c0_i32_1 = arith.constant 0 : i32
    return %arg0, %c0_i32, %c0_i32_0 : i32, i32, i32
  }
}

module attributes {stable_mosaic.version = 11 : i64} {
  func.func @_conv_block_kernel(%arg0: i32, %arg1: memref<1x64x16xf32, #tpu.memory_space<vmem>>, %arg2: memref<1x64x16xf32, #tpu.memory_space<vmem>>, %arg3: memref<64x96xf32, #tpu.memory_space<vmem>>, %arg4: memref<16x16xf32, #tpu.memory_space<vmem>>, %arg5: memref<1x16xf32, #tpu.memory_space<vmem>>, %arg6: memref<96x16xf32, #tpu.memory_space<vmem>>, %arg7: memref<1x16xf32, #tpu.memory_space<vmem>>, %arg8: memref<1x16xf32, #tpu.memory_space<vmem>>, %arg9: memref<1x16xf32, #tpu.memory_space<vmem>>, %arg10: memref<1x64x16xf32, #tpu.memory_space<vmem>>, %arg11: memref<1x64x16xf32, #tpu.memory_space<vmem>>, %arg12: memref<88x16xf32, #tpu.memory_space<vmem>>) attributes {dimension_semantics = [#tpu.dimension_semantics<parallel>], iteration_bounds = array<i64: 2>, scalar_prefetch = 0 : i64, scratch_operands = 1 : i64, tpu.core_type = #tpu.core_type<tc>, window_params = [{transform_indices = @transform_0, window_bounds = array<i64: 1, 64, 16>}, {transform_indices = @transform_1, window_bounds = array<i64: 1, 64, 16>}, {pipeline_mode = #tpu.pipeline_mode<synchronous>, transform_indices = @transform_2, window_bounds = array<i64: 64, 96>}, {pipeline_mode = #tpu.pipeline_mode<synchronous>, transform_indices = @transform_3, window_bounds = array<i64: 16, 16>}, {pipeline_mode = #tpu.pipeline_mode<synchronous>, transform_indices = @transform_4, window_bounds = array<i64: 1, 16>}, {pipeline_mode = #tpu.pipeline_mode<synchronous>, transform_indices = @transform_5, window_bounds = array<i64: 96, 16>}, {pipeline_mode = #tpu.pipeline_mode<synchronous>, transform_indices = @transform_6, window_bounds = array<i64: 1, 16>}, {pipeline_mode = #tpu.pipeline_mode<synchronous>, transform_indices = @transform_7, window_bounds = array<i64: 1, 16>}, {pipeline_mode = #tpu.pipeline_mode<synchronous>, transform_indices = @transform_8, window_bounds = array<i64: 1, 16>}, {transform_indices = @transform_9, window_bounds = array<i64: 1, 64, 16>}, {transform_indices = @transform_10, window_bounds = array<i64: 1, 64, 16>}]} {
    %c0 = arith.constant 0 : index
    %c0_0 = arith.constant 0 : index
    %c0_1 = arith.constant 0 : index
    %0 = vector.load %arg1[%c0, %c0_0, %c0_1] : memref<1x64x16xf32, #tpu.memory_space<vmem>>, vector<1x64x16xf32>
    %1 = vector.shape_cast %0 : vector<1x64x16xf32> to vector<64x16xf32>
    %c0_2 = arith.constant 0 : index
    %c0_3 = arith.constant 0 : index
    %c0_4 = arith.constant 0 : index
    %2 = vector.load %arg2[%c0_2, %c0_3, %c0_4] : memref<1x64x16xf32, #tpu.memory_space<vmem>>, vector<1x64x16xf32>
    %3 = vector.shape_cast %2 : vector<1x64x16xf32> to vector<64x16xf32>
    %c0_5 = arith.constant 0 : index
    %c0_6 = arith.constant 0 : index
    %4 = vector.load %arg4[%c0_5, %c0_6] : memref<16x16xf32, #tpu.memory_space<vmem>>, vector<16x16xf32>
    %cst = arith.constant dense<0.000000e+00> : vector<64x16xf32>
    %5 = tpu.matmul %1, %4, %cst {dimension_numbers = #tpu.dot_dimension_numbers<[1], [0], [0], [1], [0, 0, 1, 1], [], []>} : vector<64x16xf32>, vector<16x16xf32>, vector<64x16xf32> -> vector<64x16xf32>
    %c0_7 = arith.constant 0 : index
    %c0_8 = arith.constant 0 : index
    %6 = vector.load %arg5[%c0_7, %c0_8] : memref<1x16xf32, #tpu.memory_space<vmem>>, vector<1x16xf32>
    %7 = vector.broadcast %6 : vector<1x16xf32> to vector<64x16xf32>
    %8 = arith.addf %5, %7 : vector<64x16xf32>
    %cst_9 = arith.constant 0.000000e+00 : f32
    %9 = vector.broadcast %cst_9 : f32 to vector<88x16xf32>
    %c0_10 = arith.constant 0 : index
    %c0_11 = arith.constant 0 : index
    %10 = vector.load %arg12[%c0_10, %c0_11] : memref<88x16xf32, #tpu.memory_space<vmem>>, vector<88x16xf32>
    tpu.vector_store %arg12[%c0_10, %c0_11], %9 {strides = array<i32>} : memref<88x16xf32, #tpu.memory_space<vmem>>, vector<88x16xf32>,
    %c16 = arith.constant 16 : index
    %c0_12 = arith.constant 0 : index
    %11 = vector.load %arg12[%c16, %c0_12] : memref<88x16xf32, #tpu.memory_space<vmem>>, vector<64x16xf32>
    tpu.vector_store %arg12[%c16, %c0_12], %8 {strides = array<i32>} : memref<88x16xf32, #tpu.memory_space<vmem>>, vector<64x16xf32>,
    %cst_13 = arith.constant 0.000000e+00 : f32
    %12 = vector.broadcast %cst_13 : f32 to vector<64x16xf32>
    %c0_14 = arith.constant 0 : index
    %c0_15 = arith.constant 0 : index
    %13 = vector.load %arg7[%c0_14, %c0_15] : memref<1x16xf32, #tpu.memory_space<vmem>>, vector<1x16xf32>
    %14 = vector.broadcast %13 : vector<1x16xf32> to vector<64x16xf32>
    %15 = arith.addf %12, %14 : vector<64x16xf32>
    %c7 = arith.constant 7 : index
    %c0_16 = arith.constant 0 : index
    %16 = vector.load %arg12[%c7, %c0_16] : memref<88x16xf32, #tpu.memory_space<vmem>>, vector<64x16xf32>
    %c0_17 = arith.constant 0 : index
    %c0_18 = arith.constant 0 : index
    %17 = vector.load %arg3[%c0_17, %c0_18] : memref<64x96xf32, #tpu.memory_space<vmem>>, vector<64x16xf32>
    %18 = arith.mulf %16, %17 : vector<64x16xf32>
    %c0_19 = arith.constant 0 : index
    %c0_20 = arith.constant 0 : index
    %19 = vector.load %arg6[%c0_19, %c0_20] : memref<96x16xf32, #tpu.memory_space<vmem>>, vector<16x16xf32>
    %cst_21 = arith.constant dense<0.000000e+00> : vector<64x16xf32>
    %20 = tpu.matmul %18, %19, %cst_21 {dimension_numbers = #tpu.dot_dimension_numbers<[1], [0], [0], [1], [0, 0, 1, 1], [], []>} : vector<64x16xf32>, vector<16x16xf32>, vector<64x16xf32> -> vector<64x16xf32>
    %21 = arith.addf %15, %20 : vector<64x16xf32>
    %c8 = arith.constant 8 : index
    %c0_22 = arith.constant 0 : index
    %22 = vector.load %arg12[%c8, %c0_22] : memref<88x16xf32, #tpu.memory_space<vmem>>, vector<64x16xf32>
    %c0_23 = arith.constant 0 : index
    %c16_24 = arith.constant 16 : index
    %23 = vector.load %arg3[%c0_23, %c16_24] : memref<64x96xf32, #tpu.memory_space<vmem>>, vector<64x16xf32>
    %24 = arith.mulf %22, %23 : vector<64x16xf32>
    %c16_25 = arith.constant 16 : index
    %c0_26 = arith.constant 0 : index
    %25 = vector.load %arg6[%c16_25, %c0_26] : memref<96x16xf32, #tpu.memory_space<vmem>>, vector<16x16xf32>
    %cst_27 = arith.constant dense<0.000000e+00> : vector<64x16xf32>
    %26 = tpu.matmul %24, %25, %cst_27 {dimension_numbers = #tpu.dot_dimension_numbers<[1], [0], [0], [1], [0, 0, 1, 1], [], []>} : vector<64x16xf32>, vector<16x16xf32>, vector<64x16xf32> -> vector<64x16xf32>
    %27 = arith.addf %21, %26 : vector<64x16xf32>
    %c9 = arith.constant 9 : index
    %c0_28 = arith.constant 0 : index
    %28 = vector.load %arg12[%c9, %c0_28] : memref<88x16xf32, #tpu.memory_space<vmem>>, vector<64x16xf32>
    %c0_29 = arith.constant 0 : index
    %c32 = arith.constant 32 : index
    %29 = vector.load %arg3[%c0_29, %c32] : memref<64x96xf32, #tpu.memory_space<vmem>>, vector<64x16xf32>
    %30 = arith.mulf %28, %29 : vector<64x16xf32>
    %c32_30 = arith.constant 32 : index
    %c0_31 = arith.constant 0 : index
    %31 = vector.load %arg6[%c32_30, %c0_31] : memref<96x16xf32, #tpu.memory_space<vmem>>, vector<16x16xf32>
    %cst_32 = arith.constant dense<0.000000e+00> : vector<64x16xf32>
    %32 = tpu.matmul %30, %31, %cst_32 {dimension_numbers = #tpu.dot_dimension_numbers<[1], [0], [0], [1], [0, 0, 1, 1], [], []>} : vector<64x16xf32>, vector<16x16xf32>, vector<64x16xf32> -> vector<64x16xf32>
    %33 = arith.addf %27, %32 : vector<64x16xf32>
    %c15 = arith.constant 15 : index
    %c0_33 = arith.constant 0 : index
    %34 = vector.load %arg12[%c15, %c0_33] : memref<88x16xf32, #tpu.memory_space<vmem>>, vector<64x16xf32>
    %c0_34 = arith.constant 0 : index
    %c48 = arith.constant 48 : index
    %35 = vector.load %arg3[%c0_34, %c48] : memref<64x96xf32, #tpu.memory_space<vmem>>, vector<64x16xf32>
    %36 = arith.mulf %34, %35 : vector<64x16xf32>
    %c48_35 = arith.constant 48 : index
    %c0_36 = arith.constant 0 : index
    %37 = vector.load %arg6[%c48_35, %c0_36] : memref<96x16xf32, #tpu.memory_space<vmem>>, vector<16x16xf32>
    %cst_37 = arith.constant dense<0.000000e+00> : vector<64x16xf32>
    %38 = tpu.matmul %36, %37, %cst_37 {dimension_numbers = #tpu.dot_dimension_numbers<[1], [0], [0], [1], [0, 0, 1, 1], [], []>} : vector<64x16xf32>, vector<16x16xf32>, vector<64x16xf32> -> vector<64x16xf32>
    %39 = arith.addf %33, %38 : vector<64x16xf32>
    %c16_38 = arith.constant 16 : index
    %c0_39 = arith.constant 0 : index
    %40 = vector.load %arg12[%c16_38, %c0_39] : memref<88x16xf32, #tpu.memory_space<vmem>>, vector<64x16xf32>
    %c0_40 = arith.constant 0 : index
    %c64 = arith.constant 64 : index
    %41 = vector.load %arg3[%c0_40, %c64] : memref<64x96xf32, #tpu.memory_space<vmem>>, vector<64x16xf32>
    %42 = arith.mulf %40, %41 : vector<64x16xf32>
    %c64_41 = arith.constant 64 : index
    %c0_42 = arith.constant 0 : index
    %43 = vector.load %arg6[%c64_41, %c0_42] : memref<96x16xf32, #tpu.memory_space<vmem>>, vector<16x16xf32>
    %cst_43 = arith.constant dense<0.000000e+00> : vector<64x16xf32>
    %44 = tpu.matmul %42, %43, %cst_43 {dimension_numbers = #tpu.dot_dimension_numbers<[1], [0], [0], [1], [0, 0, 1, 1], [], []>} : vector<64x16xf32>, vector<16x16xf32>, vector<64x16xf32> -> vector<64x16xf32>
    %45 = arith.addf %39, %44 : vector<64x16xf32>
    %c17 = arith.constant 17 : index
    %c0_44 = arith.constant 0 : index
    %46 = vector.load %arg12[%c17, %c0_44] : memref<88x16xf32, #tpu.memory_space<vmem>>, vector<64x16xf32>
    %c0_45 = arith.constant 0 : index
    %c80 = arith.constant 80 : index
    %47 = vector.load %arg3[%c0_45, %c80] : memref<64x96xf32, #tpu.memory_space<vmem>>, vector<64x16xf32>
    %48 = arith.mulf %46, %47 : vector<64x16xf32>
    %c80_46 = arith.constant 80 : index
    %c0_47 = arith.constant 0 : index
    %49 = vector.load %arg6[%c80_46, %c0_47] : memref<96x16xf32, #tpu.memory_space<vmem>>, vector<16x16xf32>
    %cst_48 = arith.constant dense<0.000000e+00> : vector<64x16xf32>
    %50 = tpu.matmul %48, %49, %cst_48 {dimension_numbers = #tpu.dot_dimension_numbers<[1], [0], [0], [1], [0, 0, 1, 1], [], []>} : vector<64x16xf32>, vector<16x16xf32>, vector<64x16xf32> -> vector<64x16xf32>
    %51 = arith.addf %45, %50 : vector<64x16xf32>
    %c0_49 = arith.constant 0 : index
    %c0_50 = arith.constant 0 : index
    %52 = vector.load %arg8[%c0_49, %c0_50] : memref<1x16xf32, #tpu.memory_space<vmem>>, vector<1x16xf32>
    %53 = vector.broadcast %52 : vector<1x16xf32> to vector<64x16xf32>
    %54 = arith.mulf %53, %51 : vector<64x16xf32>
    %55 = arith.addf %3, %54 : vector<64x16xf32>
    %c0_51 = arith.constant 0 : index
    %c0_52 = arith.constant 0 : index
    %c0_53 = arith.constant 0 : index
    %56 = vector.load %arg10[%c0_51, %c0_52, %c0_53] : memref<1x64x16xf32, #tpu.memory_space<vmem>>, vector<1x64x16xf32>
    %57 = vector.shape_cast %56 : vector<1x64x16xf32> to vector<64x16xf32>
    %58 = vector.shape_cast %55 : vector<64x16xf32> to vector<1x64x16xf32>
    tpu.vector_store %arg10[%c0_51, %c0_52, %c0_53], %58 {strides = array<i32>} : memref<1x64x16xf32, #tpu.memory_space<vmem>>, vector<1x64x16xf32>,
    %c0_54 = arith.constant 0 : index
    %c0_55 = arith.constant 0 : index
    %59 = vector.load %arg9[%c0_54, %c0_55] : memref<1x16xf32, #tpu.memory_space<vmem>>, vector<1x16xf32>
    %60 = arith.addf %1, %51 : vector<64x16xf32>
    %61 = vector.broadcast %59 : vector<1x16xf32> to vector<64x16xf32>
    %62 = arith.mulf %61, %60 : vector<64x16xf32>
    %c0_56 = arith.constant 0 : index
    %c0_57 = arith.constant 0 : index
    %c0_58 = arith.constant 0 : index
    %63 = vector.load %arg11[%c0_56, %c0_57, %c0_58] : memref<1x64x16xf32, #tpu.memory_space<vmem>>, vector<1x64x16xf32>
    %64 = vector.shape_cast %63 : vector<1x64x16xf32> to vector<64x16xf32>
    %65 = vector.shape_cast %62 : vector<64x16xf32> to vector<1x64x16xf32>
    tpu.vector_store %arg11[%c0_56, %c0_57, %c0_58], %65 {strides = array<i32>} : memref<1x64x16xf32, #tpu.memory_space<vmem>>, vector<1x64x16xf32>,
    return
  }
  func.func @transform_0(%arg0: i32) -> (i32, i32, i32) {
    %c0_i32 = arith.constant 0 : i32
    %c0_i32_0 = arith.constant 0 : i32
    %c0_i32_1 = arith.constant 0 : i32
    return %arg0, %c0_i32, %c0_i32_0 : i32, i32, i32
  }
  func.func @transform_1(%arg0: i32) -> (i32, i32, i32) {
    %c0_i32 = arith.constant 0 : i32
    %c0_i32_0 = arith.constant 0 : i32
    %c0_i32_1 = arith.constant 0 : i32
    return %arg0, %c0_i32, %c0_i32_0 : i32, i32, i32
  }
  func.func @transform_2(%arg0: i32) -> (i32, i32) {
    %c0_i32 = arith.constant 0 : i32
    %c0_i32_0 = arith.constant 0 : i32
    %c0_i32_1 = arith.constant 0 : i32
    return %c0_i32, %c0_i32_0 : i32, i32
  }
  func.func @transform_3(%arg0: i32) -> (i32, i32) {
    %c0_i32 = arith.constant 0 : i32
    %c0_i32_0 = arith.constant 0 : i32
    %c0_i32_1 = arith.constant 0 : i32
    return %c0_i32, %c0_i32_0 : i32, i32
  }
  func.func @transform_4(%arg0: i32) -> (i32, i32) {
    %c0_i32 = arith.constant 0 : i32
    %c0_i32_0 = arith.constant 0 : i32
    %c0_i32_1 = arith.constant 0 : i32
    return %c0_i32, %c0_i32_0 : i32, i32
  }
  func.func @transform_5(%arg0: i32) -> (i32, i32) {
    %c0_i32 = arith.constant 0 : i32
    %c0_i32_0 = arith.constant 0 : i32
    %c0_i32_1 = arith.constant 0 : i32
    return %c0_i32, %c0_i32_0 : i32, i32
  }
  func.func @transform_6(%arg0: i32) -> (i32, i32) {
    %c0_i32 = arith.constant 0 : i32
    %c0_i32_0 = arith.constant 0 : i32
    %c0_i32_1 = arith.constant 0 : i32
    return %c0_i32, %c0_i32_0 : i32, i32
  }
  func.func @transform_7(%arg0: i32) -> (i32, i32) {
    %c0_i32 = arith.constant 0 : i32
    %c0_i32_0 = arith.constant 0 : i32
    %c0_i32_1 = arith.constant 0 : i32
    return %c0_i32, %c0_i32_0 : i32, i32
  }
  func.func @transform_8(%arg0: i32) -> (i32, i32) {
    %c0_i32 = arith.constant 0 : i32
    %c0_i32_0 = arith.constant 0 : i32
    %c0_i32_1 = arith.constant 0 : i32
    return %c0_i32, %c0_i32_0 : i32, i32
  }
  func.func @transform_9(%arg0: i32) -> (i32, i32, i32) {
    %c0_i32 = arith.constant 0 : i32
    %c0_i32_0 = arith.constant 0 : i32
    %c0_i32_1 = arith.constant 0 : i32
    return %arg0, %c0_i32, %c0_i32_0 : i32, i32, i32
  }
  func.func @transform_10(%arg0: i32) -> (i32, i32, i32) {
    %c0_i32 = arith.constant 0 : i32
    %c0_i32_0 = arith.constant 0 : i32
    %c0_i32_1 = arith.constant 0 : i32
    return %arg0, %c0_i32, %c0_i32_0 : i32, i32, i32
  }
}

module attributes {stable_mosaic.version = 11 : i64} {
  func.func @_ff_block_kernel(%arg0: i32, %arg1: memref<1x64x16xf32, #tpu.memory_space<vmem>>, %arg2: memref<1x64x16xf32, #tpu.memory_space<vmem>>, %arg3: memref<16x64xf32, #tpu.memory_space<vmem>>, %arg4: memref<1x64xf32, #tpu.memory_space<vmem>>, %arg5: memref<64x16xf32, #tpu.memory_space<vmem>>, %arg6: memref<1x16xf32, #tpu.memory_space<vmem>>, %arg7: memref<1x16xf32, #tpu.memory_space<vmem>>, %arg8: memref<1x16xf32, #tpu.memory_space<vmem>>, %arg9: memref<1x64x16xf32, #tpu.memory_space<vmem>>, %arg10: memref<1x64x16xf32, #tpu.memory_space<vmem>>) attributes {dimension_semantics = [#tpu.dimension_semantics<parallel>], iteration_bounds = array<i64: 2>, scalar_prefetch = 0 : i64, scratch_operands = 0 : i64, tpu.core_type = #tpu.core_type<tc>, window_params = [{transform_indices = @transform_0, window_bounds = array<i64: 1, 64, 16>}, {transform_indices = @transform_1, window_bounds = array<i64: 1, 64, 16>}, {pipeline_mode = #tpu.pipeline_mode<synchronous>, transform_indices = @transform_2, window_bounds = array<i64: 16, 64>}, {pipeline_mode = #tpu.pipeline_mode<synchronous>, transform_indices = @transform_3, window_bounds = array<i64: 1, 64>}, {pipeline_mode = #tpu.pipeline_mode<synchronous>, transform_indices = @transform_4, window_bounds = array<i64: 64, 16>}, {pipeline_mode = #tpu.pipeline_mode<synchronous>, transform_indices = @transform_5, window_bounds = array<i64: 1, 16>}, {pipeline_mode = #tpu.pipeline_mode<synchronous>, transform_indices = @transform_6, window_bounds = array<i64: 1, 16>}, {pipeline_mode = #tpu.pipeline_mode<synchronous>, transform_indices = @transform_7, window_bounds = array<i64: 1, 16>}, {transform_indices = @transform_8, window_bounds = array<i64: 1, 64, 16>}, {transform_indices = @transform_9, window_bounds = array<i64: 1, 64, 16>}]} {
    %c0 = arith.constant 0 : index
    %c0_0 = arith.constant 0 : index
    %c0_1 = arith.constant 0 : index
    %0 = vector.load %arg1[%c0, %c0_0, %c0_1] : memref<1x64x16xf32, #tpu.memory_space<vmem>>, vector<1x64x16xf32>
    %1 = vector.shape_cast %0 : vector<1x64x16xf32> to vector<64x16xf32>
    %c0_2 = arith.constant 0 : index
    %c0_3 = arith.constant 0 : index
    %c0_4 = arith.constant 0 : index
    %2 = vector.load %arg2[%c0_2, %c0_3, %c0_4] : memref<1x64x16xf32, #tpu.memory_space<vmem>>, vector<1x64x16xf32>
    %3 = vector.shape_cast %2 : vector<1x64x16xf32> to vector<64x16xf32>
    %c0_5 = arith.constant 0 : index
    %c0_6 = arith.constant 0 : index
    %4 = vector.load %arg3[%c0_5, %c0_6] : memref<16x64xf32, #tpu.memory_space<vmem>>, vector<16x64xf32>
    %cst = arith.constant dense<0.000000e+00> : vector<64x64xf32>
    %5 = tpu.matmul %1, %4, %cst {dimension_numbers = #tpu.dot_dimension_numbers<[1], [0], [0], [1], [0, 0, 1, 1], [], []>} : vector<64x16xf32>, vector<16x64xf32>, vector<64x64xf32> -> vector<64x64xf32>
    %c0_7 = arith.constant 0 : index
    %c0_8 = arith.constant 0 : index
    %6 = vector.load %arg4[%c0_7, %c0_8] : memref<1x64xf32, #tpu.memory_space<vmem>>, vector<1x64xf32>
    %7 = vector.broadcast %6 : vector<1x64xf32> to vector<64x64xf32>
    %8 = arith.addf %5, %7 : vector<64x64xf32>
    %cst_9 = arith.constant 0.000000e+00 : f32
    %9 = vector.broadcast %cst_9 : f32 to vector<64x64xf32>
    %10 = arith.maximumf %8, %9 : vector<64x64xf32>
    %c0_10 = arith.constant 0 : index
    %c0_11 = arith.constant 0 : index
    %11 = vector.load %arg5[%c0_10, %c0_11] : memref<64x16xf32, #tpu.memory_space<vmem>>, vector<64x16xf32>
    %cst_12 = arith.constant dense<0.000000e+00> : vector<64x16xf32>
    %12 = tpu.matmul %10, %11, %cst_12 {dimension_numbers = #tpu.dot_dimension_numbers<[1], [0], [0], [1], [0, 0, 1, 1], [], []>} : vector<64x64xf32>, vector<64x16xf32>, vector<64x16xf32> -> vector<64x16xf32>
    %c0_13 = arith.constant 0 : index
    %c0_14 = arith.constant 0 : index
    %13 = vector.load %arg6[%c0_13, %c0_14] : memref<1x16xf32, #tpu.memory_space<vmem>>, vector<1x16xf32>
    %14 = vector.broadcast %13 : vector<1x16xf32> to vector<64x16xf32>
    %15 = arith.addf %12, %14 : vector<64x16xf32>
    %c0_15 = arith.constant 0 : index
    %c0_16 = arith.constant 0 : index
    %16 = vector.load %arg7[%c0_15, %c0_16] : memref<1x16xf32, #tpu.memory_space<vmem>>, vector<1x16xf32>
    %17 = vector.broadcast %16 : vector<1x16xf32> to vector<64x16xf32>
    %18 = arith.mulf %17, %15 : vector<64x16xf32>
    %19 = arith.addf %3, %18 : vector<64x16xf32>
    %c0_17 = arith.constant 0 : index
    %c0_18 = arith.constant 0 : index
    %c0_19 = arith.constant 0 : index
    %20 = vector.load %arg9[%c0_17, %c0_18, %c0_19] : memref<1x64x16xf32, #tpu.memory_space<vmem>>, vector<1x64x16xf32>
    %21 = vector.shape_cast %20 : vector<1x64x16xf32> to vector<64x16xf32>
    %22 = vector.shape_cast %19 : vector<64x16xf32> to vector<1x64x16xf32>
    tpu.vector_store %arg9[%c0_17, %c0_18, %c0_19], %22 {strides = array<i32>} : memref<1x64x16xf32, #tpu.memory_space<vmem>>, vector<1x64x16xf32>,
    %c0_20 = arith.constant 0 : index
    %c0_21 = arith.constant 0 : index
    %23 = vector.load %arg8[%c0_20, %c0_21] : memref<1x16xf32, #tpu.memory_space<vmem>>, vector<1x16xf32>
    %24 = arith.addf %1, %15 : vector<64x16xf32>
    %25 = vector.broadcast %23 : vector<1x16xf32> to vector<64x16xf32>
    %26 = arith.mulf %25, %24 : vector<64x16xf32>
    %c0_22 = arith.constant 0 : index
    %c0_23 = arith.constant 0 : index
    %c0_24 = arith.constant 0 : index
    %27 = vector.load %arg10[%c0_22, %c0_23, %c0_24] : memref<1x64x16xf32, #tpu.memory_space<vmem>>, vector<1x64x16xf32>
    %28 = vector.shape_cast %27 : vector<1x64x16xf32> to vector<64x16xf32>
    %29 = vector.shape_cast %26 : vector<64x16xf32> to vector<1x64x16xf32>
    tpu.vector_store %arg10[%c0_22, %c0_23, %c0_24], %29 {strides = array<i32>} : memref<1x64x16xf32, #tpu.memory_space<vmem>>, vector<1x64x16xf32>,
    return
  }
  func.func @transform_0(%arg0: i32) -> (i32, i32, i32) {
    %c0_i32 = arith.constant 0 : i32
    %c0_i32_0 = arith.constant 0 : i32
    %c0_i32_1 = arith.constant 0 : i32
    return %arg0, %c0_i32, %c0_i32_0 : i32, i32, i32
  }
  func.func @transform_1(%arg0: i32) -> (i32, i32, i32) {
    %c0_i32 = arith.constant 0 : i32
    %c0_i32_0 = arith.constant 0 : i32
    %c0_i32_1 = arith.constant 0 : i32
    return %arg0, %c0_i32, %c0_i32_0 : i32, i32, i32
  }
  func.func @transform_2(%arg0: i32) -> (i32, i32) {
    %c0_i32 = arith.constant 0 : i32
    %c0_i32_0 = arith.constant 0 : i32
    %c0_i32_1 = arith.constant 0 : i32
    return %c0_i32, %c0_i32_0 : i32, i32
  }
  func.func @transform_3(%arg0: i32) -> (i32, i32) {
    %c0_i32 = arith.constant 0 : i32
    %c0_i32_0 = arith.constant 0 : i32
    %c0_i32_1 = arith.constant 0 : i32
    return %c0_i32, %c0_i32_0 : i32, i32
  }
  func.func @transform_4(%arg0: i32) -> (i32, i32) {
    %c0_i32 = arith.constant 0 : i32
    %c0_i32_0 = arith.constant 0 : i32
    %c0_i32_1 = arith.constant 0 : i32
    return %c0_i32, %c0_i32_0 : i32, i32
  }
  func.func @transform_5(%arg0: i32) -> (i32, i32) {
    %c0_i32 = arith.constant 0 : i32
    %c0_i32_0 = arith.constant 0 : i32
    %c0_i32_1 = arith.constant 0 : i32
    return %c0_i32, %c0_i32_0 : i32, i32
  }
  func.func @transform_6(%arg0: i32) -> (i32, i32) {
    %c0_i32 = arith.constant 0 : i32
    %c0_i32_0 = arith.constant 0 : i32
    %c0_i32_1 = arith.constant 0 : i32
    return %c0_i32, %c0_i32_0 : i32, i32
  }
  func.func @transform_7(%arg0: i32) -> (i32, i32) {
    %c0_i32 = arith.constant 0 : i32
    %c0_i32_0 = arith.constant 0 : i32
    %c0_i32_1 = arith.constant 0 : i32
    return %c0_i32, %c0_i32_0 : i32, i32
  }
  func.func @transform_8(%arg0: i32) -> (i32, i32, i32) {
    %c0_i32 = arith.constant 0 : i32
    %c0_i32_0 = arith.constant 0 : i32
    %c0_i32_1 = arith.constant 0 : i32
    return %arg0, %c0_i32, %c0_i32_0 : i32, i32, i32
  }
  func.func @transform_9(%arg0: i32) -> (i32, i32, i32) {
    %c0_i32 = arith.constant 0 : i32
    %c0_i32_0 = arith.constant 0 : i32
    %c0_i32_1 = arith.constant 0 : i32
    return %arg0, %c0_i32, %c0_i32_0 : i32, i32, i32
  }
}

</mosaic_0001>

<bundles_post_ra>
// kernel: run.5
= control target key start
LH: loop header
LB: loop body
LE: loop exit
PB: predicated region body
PF: predicated region fallthrough
CT: control target
= control target key end

     0   :  { %11 = vsyncpa [#allocation3], 0  ;;  %s896_s0 = inlined_call_operand.hbm [shape: f32[2,64,32], index: 0, kind: input, shape index: {}]   ;;  %s897_s1 = inlined_call_operand.hbm [shape: f32[32,16], index: 1, kind: input, shape index: {}]   ;;  %s898_s2 = inlined_call_operand.vmem [shape: f32[1,16], index: 2, kind: input, shape index: {}]   ;;  %s899_s3 = inlined_call_operand.vmem [shape: f32[1,16], index: 3, kind: input, shape index: {}]   ;;  %s900_s4 = inlined_call_operand.vmem [shape: f32[2,64,16], index: 4, kind: output, shape index: {0}]   ;;  %s901_s5 = inlined_call_operand.vmem [shape: f32[2,64,16], index: 5, kind: output, shape index: {1}]  }
   0x1   :  { %13 = vsyncpa [#allocation3 + $0x1], 0 }
   0x2   :  { %14 = vsyncpa [#allocation5], 0  ;;  %s724_s18 = smov 0   ;;  %s726_s19 = smov 0  }
   0x3   :  { %s728_s20 = smov 0   ;;  %s730_s21 = smov 0  }
   0x4 LB: > { %s743_s22 = sadd.s32 4294967295, %s689_s21   ;;  %p40_p0 = scmp.ne.s32.totalorder %s681_s19, %s677_s18  ;;  %s689_s21 = sphi %s730_s21, %s908_s21   ;;  %s685_s20 = sphi %s728_s20, %s907_s20   ;;  %s681_s19 = sphi %s726_s19, %s906_s19   ;;  %s677_s18 = sphi %s724_s18, %s905_s18  }
   0x5   : > { %p41_p1 = scmp.eq.s32.totalorder %s743_s22, 0  ;;  %p499_p2 = scmp.ge.s32.totalorder %s689_s21, 1 }
   0x6   : > { %p166_p3 = scmp.lt.s32.totalorder %s689_s21, 3  ;;  %s177_s26 = sshll.u32 %s897_s1, 4  ;;  %s178_s26 = int_to_ptr.hbm [resolvable:$true] %s177_s26 }
   0x7   : > { %p751_p4 = por %p41_p1, %p40_p0  ;;  %s691_s28 = smov [#allocation4]  }
   0x8   : > { %p758_p5 = pnand %p499_p2, %p166_p3  ;;  %s179_s29 = sshll.u32 %s691_s28, 4  ;;  %s180_s29 = int_to_ptr.vmem [resolvable:$true] %s179_s29 }
   0x9   : > { %s767_s30 = sadd.s32 1, %s689_s21   ;;  %s692_s6 = smov 128  }
   0xa   : > { %p543_p6 = pneg %p758_p5  ;;  %s693_s7 = smov 8  }
   0xb   : > { %s24_s8 = ssub.s32 %s689_s21, %s767_s30  ;;  %s27_s9 = sadd.s32 1, %s685_s20 }
   0xc   : > { %p544_p7 = pnand %p543_p6, %p41_p1  ;;  %p25_p8 = scmp.eq.s32.totalorder %s24_s8, 0 }
   0xd   : > { %p34_p9 = scmp.ne.s32.totalorder %s685_s20, %s681_s19  ;;  %p35_p10 = scmp.eq.s32.totalorder %s689_s21, 0 }
   0xe   : > { %546 = dma.hbm_to_vmem [thread:$0]  (!%p544_p7), %s178_s26, 512, %s180_s29, [#allocation5], %s692_s6, %s692_s6, %s693_s7  }
   0xf   : > { %p552_p11 = scmp.lt.s32.totalorder %s689_s21, 2  ;;  %p36_p12 = por %p35_p10, %p34_p9 }
  0x10   : > { %s780_s10 = scalar_select %p25_p8, %s685_s20, %s27_s9  }
  0x11   : > { %s199_s11 = sand.u32 1, %s685_s20   ;;  %s522_s13 = sshll.u32 %s689_s21, 6 }
  0x12   : > { %s502_s12 = sshll.u32 %s199_s11, 6  ;;  %s208_s16 = scalar_lea.hbm %s896_s0, %s522_s13 }
  0x13   : > { %s203_s17 = scalar_lea.vmem [#allocation2], %s502_s12  ;;  %s209_s24 = sshll.u32 %s208_s16, 4  ;;  %s210_s24 = int_to_ptr.hbm [resolvable:$true] %s209_s24 }
  0x14   : > { %s211_s18 = sshll.u32 %s203_s17, 4  ;;  %p787_p13 = pnand %p552_p11, %p36_p12  ;;  %s212_s18 = int_to_ptr.vmem [resolvable:$true] %s211_s18 }
  0x15   : > { %s200_s26 = scalar_lea.sflag [#allocation3], %s199_s11  ;;  %s621_s28 = sshra.s32 %s210_s24, 4  ;;  %s622_s28 = int_to_ptr.hbm [resolvable:$true] %s621_s28 }
  0x16   : > { %s623_s29 = scalar_lea.hbm %s622_s28, 64  ;;  %p625_p2 = pneg %p787_p13 }
  0x17   : > { %p624_p0 = scmp.ne.s32.totalorder %s622_s28, %s623_s29  ;;  %s628_s9 = scalar_lea.hbm %s896_s0, 128 }
  0x18   : > { %p629_p7 = scmp.lt.s32.totalorder %s622_s28, %s896_s0  ;;  %p630_p8 = scmp.lt.s32.totalorder %s628_s9, %s623_s29 }
  0x19   : > { %p626_p3 = pnand %p625_p2, %p624_p0 }
  0x1a   : > { %p631_p9 = por %p630_p8, %p629_p7 }
  0x1b   : > { %p627_p6 = pneg %p626_p3 }
  0x1d   : > { %p632_p10 = pnand %p631_p9, %p627_p6 }
  0x1f   : > { %635 = shalt.err (!%p632_p10)
}
  0x20   : > { %550 = dma.hbm_to_vmem [thread:$0]  (!%p787_p13), %s210_s24, 1024, %s212_s18, %s200_s26, %s692_s6, %s692_s6, %s693_s7  }
  0x21   : > { %223 = sbr.rel (%p758_p5) target bundleno = 195 (0xc3), region = 36  ;;  %s225_s11 = sand.u32 (!%p758_p5), 1, %s681_s19  }
  0x22   : > { %s506_s14 = sshll.u32 (!%p758_p5), %s225_s11, 6  ;;  %s226_s15 = scalar_lea.sflag (!%p758_p5), [#allocation3], %s225_s11 }
  0x23   : > { %s807_s16 = scalar_lea.vmem (!%p758_p5), [#allocation2], %s506_s14 }
  0x26   : > { %668 = dma.done.wait (%p751_p4), %s226_s15, 1024  }
  0x27   : > { %670 = vsyncadd (%p751_p4), %s226_s15, 4294966272 }
  0x28   : > { %672 = dma.done.wait (%p41_p1), [#allocation5], 512  }
  0x29   : > { %674 = vsyncadd (%p41_p1), [#allocation5], 4294966784  ;;  %v288_v0 = vld [vmem:[#allocation4 + $0x18] sm:$0xff]  ;;  %v287_v1 = vld [vmem:[#allocation4 + $0x10] sm:$0xff]  ;;  %vm293_vm0 = vcmask 261120   ;;  %p267_p1 = scmp.lt.s32.totalorder %s743_s22, 1 }
  0x2a   : > { %526 = vmatpush.msra.mxu2 %v288_v0  ;;  %527 = vmatpush.msra.mxu3 %v288_v0  ;;  %v286_v2 = vld [vmem:[#allocation4 + $0x8] sm:$0xff]  ;;  %v285_v3 = vld [vmem:[#allocation4] sm:$0xff]  ;;  %v283_v5 = vld [vmem:[%s807_s16 + $0x30] sm:$0xff]  ;;  %vm359_vm1 = vcmask 130048  }
  0x2b   : > { %330 = vmatpush.msra.mxu0 %v288_v0  ;;  %525 = vmatpush.msra.mxu1 %v288_v0  ;;  %v281_v4 = vld [vmem:[%s807_s16 + $0x20] sm:$0xff]  ;;  %v279_v7 = vld [vmem:[%s807_s16 + $0x10] sm:$0xff]  ;;  %v282_v8 = vld [vmem:[%s807_s16 + $0x28] sm:$0xff]  ;;  %s910_s22 = smov (!%p267_p1, %s743_s22), 1 }
  0x2c   : > { %529 = vmatpush.msra.mxu2 %v287_v1  ;;  %530 = vmatpush.msra.mxu3 %v287_v1  ;;  %v277_v6 = vld [vmem:[%s807_s16] sm:$0xff]  ;;  %v284_v9 = vld [vmem:[%s807_s16 + $0x38] sm:$0xff]  ;;  %v278_v10 = vld [vmem:[%s807_s16 + $0x8] sm:$0xff]  ;;  %s523_s23 = sshll.u32 %s910_s22, 6 }
  0x2d   : > { %331 = vmatpush.msra.mxu0 %v287_v1  ;;  %528 = vmatpush.msra.mxu1 %v287_v1  ;;  %v280_v11 = vld [vmem:[%s807_s16 + $0x18] sm:$0xff]  ;;  %v589_v12 = vld [vmem:[%s898_s2] ss:$0 sm:$0xff]  ;;  %s844_s25 = scalar_lea.vmem %s900_s4, %s523_s23  ;;  %s849_s28 = scalar_lea.vmem %s901_s5, %s523_s23 }
  0x2e   : > { %532 = vmatpush.msra.mxu2 %v286_v2  ;;  %533 = vmatpush.msra.mxu3 %v286_v2  ;;  %v590_v13 = vld [vmem:[%s899_s3] ss:$0 sm:$0xff] }
  0x2f   : > { %332 = vmatpush.msra.mxu0 %v286_v2  ;;  %531 = vmatpush.msra.mxu1 %v286_v2 }
  0x30   : > { %535 = vmatpush.msra.mxu2 %v285_v3  ;;  %536 = vmatpush.msra.mxu3 %v285_v3 }
  0x31   : > { %516 = vmatmul.msk.f32.vlgmr.msra.gmra.mxu2 %vm293_vm0, %v281_v4  ;;  %518 = vmatmul.msk.f32.vlgmr.msra.gmra.mxu3 %vm293_vm0, %v283_v5 }
  0x32   : > { %333 = vmatpush.msra.mxu0 %v285_v3  ;;  %534 = vmatpush.msra.mxu1 %v285_v3 }
  0x33   : > { %512 = vmatmul.msk.f32.vlgmr.msra.gmra.mxu0 %vm293_vm0, %v277_v6  ;;  %514 = vmatmul.msk.f32.vlgmr.msra.gmra.mxu1 %vm293_vm0, %v279_v7 }
  0x39   : > { %517 = vmatmul.msk.f32.gmra.mxu2 %vm293_vm0, %v282_v8  ;;  %519 = vmatmul.msk.f32.gmra.mxu3 %vm293_vm0, %v284_v9 }
  0x3b   : > { %513 = vmatmul.msk.f32.gmra.mxu0 %vm293_vm0, %v278_v10  ;;  %515 = vmatmul.msk.f32.gmra.mxu1 %vm293_vm0, %v280_v11 }
  0xb0   : > { %v335_v14 = vpop.f32.mrf.mxu0  ;;  %v341_v15 = vpop.f32.mrf.mxu1 }
  0xb1   : > { %v336_v16 = vadd.f32 %v589_v12, %v335_v14  ;;  %v342_v17 = vadd.f32 %v589_v12, %v341_v15 }
  0xb3   : > { %360 = vst.msk [vmem:[%s844_s25] sm:$0xff] %vm359_vm1, %v336_v16  ;;  %v372_v18 = vmul.f32 %v590_v13, %v336_v16  ;;  %v374_v19 = vmul.f32 %v590_v13, %v342_v17 }
  0xb4   : > { %362 = vst.msk [vmem:[%s844_s25 + $0x10] sm:$0xff] %vm359_vm1, %v342_v17  ;;  %v347_v20 = vpop.f32.mrf.mxu2  ;;  %v353_v21 = vpop.f32.mrf.mxu3 }
  0xb5   : > { %380 = vst.msk [vmem:[%s849_s28] sm:$0xff] %vm359_vm1, %v372_v18  ;;  %v348_v22 = vadd.f32 %v589_v12, %v347_v20  ;;  %v354_v23 = vadd.f32 %v589_v12, %v353_v21 }
  0xb6   : > { %382 = vst.msk [vmem:[%s849_s28 + $0x10] sm:$0xff] %vm359_vm1, %v374_v19 }
  0xb7   : > { %364 = vst.msk [vmem:[%s844_s25 + $0x20] sm:$0xff] %vm359_vm1, %v348_v22  ;;  %v376_v24 = vmul.f32 %v590_v13, %v348_v22  ;;  %v378_v25 = vmul.f32 %v590_v13, %v354_v23 }
  0xb8   : > { %366 = vst.msk [vmem:[%s844_s25 + $0x30] sm:$0xff] %vm359_vm1, %v354_v23  ;;  %v338_v26 = vpop.f32.mrf.mxu0  ;;  %v344_v27 = vpop.f32.mrf.mxu1 }
  0xb9   : > { %384 = vst.msk [vmem:[%s849_s28 + $0x20] sm:$0xff] %vm359_vm1, %v376_v24  ;;  %v339_v28 = vadd.f32 %v589_v12, %v338_v26  ;;  %v345_v29 = vadd.f32 %v589_v12, %v344_v27 }
  0xba   : > { %386 = vst.msk [vmem:[%s849_s28 + $0x30] sm:$0xff] %vm359_vm1, %v378_v25 }
  0xbb   : > { %361 = vst.msk [vmem:[%s844_s25 + $0x8] sm:$0xff] %vm359_vm1, %v339_v28  ;;  %v373_v30 = vmul.f32 %v590_v13, %v339_v28  ;;  %v375_v31 = vmul.f32 %v590_v13, %v345_v29 }
  0xbc   : > { %363 = vst.msk [vmem:[%s844_s25 + $0x18] sm:$0xff] %vm359_vm1, %v345_v29  ;;  %v350_v32 = vpop.f32.mrf.mxu2  ;;  %v356_v33 = vpop.f32.mrf.mxu3 }
  0xbd   : > { %381 = vst.msk [vmem:[%s849_s28 + $0x8] sm:$0xff] %vm359_vm1, %v373_v30  ;;  %v351_v34 = vadd.f32 %v589_v12, %v350_v32  ;;  %v357_v35 = vadd.f32 %v589_v12, %v356_v33 }
  0xbe   : > { %383 = vst.msk [vmem:[%s849_s28 + $0x18] sm:$0xff] %vm359_vm1, %v375_v31 }
  0xbf   : > { %365 = vst.msk [vmem:[%s844_s25 + $0x28] sm:$0xff] %vm359_vm1, %v351_v34  ;;  %v377_v36 = vmul.f32 %v590_v13, %v351_v34  ;;  %v379_v37 = vmul.f32 %v590_v13, %v357_v35 }
  0xc0   : > { %367 = vst.msk [vmem:[%s844_s25 + $0x38] sm:$0xff] %vm359_vm1, %v357_v35 }
  0xc1   : > { %385 = vst.msk [vmem:[%s849_s28 + $0x28] sm:$0xff] %vm359_vm1, %v377_v36 }
  0xc2   : > { %387 = vst.msk [vmem:[%s849_s28 + $0x38] sm:$0xff] %vm359_vm1, %v379_v37 }
  0xc3 PF: > { %p17_p4 = scmp.ge.s32.totalorder %s767_s30, 4   ;;  %s905_s18 = smov %s681_s19 }
  0xc4   : > { %s906_s19 = smov %s685_s20  ;;  %s907_s20 = smov %s780_s10 }
  0xc5   : > { %s908_s21 = smov %s767_s30  ;;  %19 = sbr.rel (!%p17_p4) target bundleno = 4 (0x4), region = 92 }
  0xca   :  { %425 = vsyncpa [#allocation3], 1 }
  0xcb   :  { %427 = vsyncpa [#allocation3 + $0x1], 1 }
  0xcc   :  { %428 = vsyncpa [#allocation5], 1 }

// kernel: run.6
= control target key start
LH: loop header
LB: loop body
LE: loop exit
PB: predicated region body
PF: predicated region fallthrough
CT: control target
= control target key end

     0   :  { %16 = vsyncpa [#allocation4], 0  ;;  %s1665_s0 = inlined_call_operand.vmem [shape: f32[2,64,16], index: 0, kind: input, shape index: {}, may-alias: {0,10}]   ;;  %s1666_s1 = inlined_call_operand.vmem [shape: f32[2,64,16], index: 1, kind: input, shape index: {}, may-alias: {1,9}]   ;;  %s1667_s2 = inlined_call_operand.hbm [shape: f32[64,96], index: 2, kind: input, shape index: {}]   ;;  %s1668_s3 = inlined_call_operand.hbm [shape: f32[16,16], index: 3, kind: input, shape index: {}]   ;;  %s1669_s4 = inlined_call_operand.vmem [shape: f32[1,16], index: 4, kind: input, shape index: {}]   ;;  %s1670_s5 = inlined_call_operand.hbm [shape: f32[96,16], index: 5, kind: input, shape index: {}]   ;;  %s1671_s6 = inlined_call_operand.vmem [shape: f32[1,16], index: 6, kind: input, shape index: {}]   ;;  %s1672_s7 = inlined_call_operand.vmem [shape: f32[1,16], index: 7, kind: input, shape index: {}, may-alias: {7,8}]   ;;  %s1673_s8 = inlined_call_operand.vmem [shape: f32[1,16], index: 8, kind: input, shape index: {}, may-alias: {7,8}]   ;;  %s1674_s9 = inlined_call_operand.vmem [shape: f32[2,64,16], index: 9, kind: output, shape index: {0}, may-alias: {1,9}]   ;;  %s1675_s10 = inlined_call_operand.vmem [shape: f32[2,64,16], index: 10, kind: output, shape index: {1}, may-alias: {0,10}]  }
   0x1   :  { %17 = vsyncpa [#allocation6], 0  ;;  %s1342_s13 = smov 0  }
   0x2 LB: > { %s1348_s14 = sadd.s32 4294967295, %s1274_s13   ;;  %p1054_p0 = scmp.ge.s32.totalorder %s1274_s13, 1  ;;  %s1274_s13 = sphi %s1342_s13, %s23_s13  }
   0x3   : > { %p279_p1 = scmp.lt.s32.totalorder %s1274_s13, 3  ;;  %p1141_p2 = scmp.eq.s32.totalorder %s1348_s14, 0 }
   0x4   : > { %s304_s17 = sshll.u32 %s1668_s3, 4  ;;  %s290_s21 = sshll.u32 %s1667_s2, 4  ;;  %s305_s17 = int_to_ptr.hbm [resolvable:$true] %s304_s17  ;;  %s291_s21 = int_to_ptr.hbm [resolvable:$true] %s290_s21 }
   0x5   : > { %p1356_p3 = pnand %p1054_p0, %p279_p1  ;;  %s1276_s22 = smov [#allocation5]  }
   0x6   : > { %s306_s23 = sshll.u32 %s1276_s22, 4  ;;  %s1277_s24 = smov [#allocation3]   ;;  %s307_s23 = int_to_ptr.vmem [resolvable:$true] %s306_s23 }
   0x7   : > { %p1131_p4 = pneg %p1356_p3  ;;  %s292_s25 = sshll.u32 %s1277_s24, 4  ;;  %s293_s25 = int_to_ptr.vmem [resolvable:$true] %s292_s25 }
   0x8   : > { %s321_s28 = sshll.u32 %s1670_s5, 4  ;;  %s1278_s29 = smov 128   ;;  %s322_s28 = int_to_ptr.hbm [resolvable:$true] %s321_s28 }
   0x9   : > { %p1132_p5 = pnand %p1141_p2, %p1131_p4  ;;  %s1279_s30 = smov 8  }
   0xa   : > { %s1280_s11 = smov [#allocation7]   ;;  %364 = sbr.rel (%p1356_p3) target bundleno = 524 (0x20c), region = 56 }
   0xb   : > { %1137 = dma.hbm_to_vmem [thread:$0]  (!%p1132_p5), %s305_s17, 256, %s307_s23, [#allocation6], %s1278_s29, %s1278_s29, %s1279_s30  }
   0xc   : > { %1134 = dma.hbm_to_vmem [thread:$0]  (!%p1132_p5), %s291_s21, 1024, %s293_s25, [#allocation4], %s1278_s29, %s1278_s29, %s1279_s30  }
   0xd   : > { %s323_s12 = sshll.u32 %s1280_s11, 4  ;;  %s324_s12 = int_to_ptr.vmem [resolvable:$true] %s323_s12 }
   0xe   : > { %1140 = dma.hbm_to_vmem [thread:$0]  (!%p1132_p5), %s322_s28, 1536, %s324_s12, [#allocation6], %s1278_s29, %s1278_s29, %s1279_s30  }
   0xf   : > { %1265 = dma.done.wait (%p1141_p2), [#allocation4], 1024  }
  0x10   : > { %1267 = vsyncadd (%p1141_p2), [#allocation4], 4294966272 }
  0x11   : > { %1269 = dma.done.wait (%p1141_p2), [#allocation6], 1792  }
  0x12   : > { %1271 = vsyncadd (%p1141_p2), [#allocation6], 4294965504  ;;  %p423_p6 = scmp.lt.s32.totalorder %s1348_s14, 1  ;;  %v460_v0 = vld [vmem:[#allocation5 + $0x8] sm:$0xff]  ;;  %v459_v1 = vld [vmem:[#allocation5] sm:$0xff]  ;;  %vm465_vm0 = vcmask 130048  }
  0x13   : > { %504 = vmatpush.msra.mxu0 %v460_v0  ;;  %1093 = vmatpush.msra.mxu3 %v460_v0  ;;  %v1281_v10 = vmov 0.0   ;;  %v1166_v12 = vld [vmem:[%s1669_s4] ss:$0 sm:$0xff]  ;;  %s1283_s21 = smov 32   ;;  %s1284_s22 = smov 64   ;;  %v793_v53 = vld [vmem:[#allocation7 + $0x50] sm:$0xff] }
  0x14   : > { %s1678_s14 = smov (!%p423_p6, %s1348_s14), 1  ;;  %533 = vst.msk [vmem:[#allocation2 + $0x10] sm:$0xff] %vm465_vm0, %v1281_v10  ;;  %s1285_s23 = smov 48   ;;  %v794_v52 = vld [vmem:[#allocation7 + $0x58] sm:$0xff]  ;;  %v792_v56 = vld [vmem:[#allocation7 + $0x48] sm:$0xff]  ;;  %v791_v57 = vld [vmem:[#allocation7 + $0x40] sm:$0xff] }
  0x15   : > { %s1382_s15 = sshll.u32 %s1678_s14, 6  ;;  %505 = vmatpush.msra.mxu0 %v459_v1  ;;  %1094 = vmatpush.msra.mxu3 %v459_v1  ;;  %531 = vst.msk [vmem:[#allocation2] sm:$0xff] %vm465_vm0, %v1281_v10  ;;  %s1282_s14 = smov 16   ;;  %v790_v59 = vld [vmem:[#allocation7 + $0x38] sm:$0xff]  ;;  %v789_v60 = vld [vmem:[#allocation7 + $0x30] sm:$0xff]  ;;  %v788_v62 = vld [vmem:[#allocation7 + $0x28] sm:$0xff] }
  0x16   : > { %s427_s18 = scalar_lea.vmem %s1665_s0, %s1382_s15  ;;  %532 = vst.msk [vmem:[#allocation2 + $0x8] sm:$0xff] %vm465_vm0, %v1281_v10  ;;  %s1286_s24 = smov 80   ;;  %828 = vmatpush.msra.mxu1 %v794_v52  ;;  %1095 = vmatpush.msra.mxu2 %v794_v52  ;;  %v787_v63 = vld [vmem:[#allocation7 + $0x20] sm:$0xff]  ;;  %v786_v0 = vld [vmem:[#allocation7 + $0x18] sm:$0xff]  ;;  %v785_v1 = vld [vmem:[#allocation7 + $0x10] sm:$0xff]  ;;  %vm731_vm1 = vcmask 261120  }
  0x17   : > { %v1388_v2 = vld [vmem:[%s427_s18] sm:$0xff]  ;;  %v1390_v3 = vld [vmem:[%s427_s18 + $0x30] sm:$0xff]  ;;  %v1396_v4 = vld [vmem:[%s427_s18 + $0x8] sm:$0xff]  ;;  %534 = vst.msk [vmem:[#allocation2 + $0x18] sm:$0xff] %vm465_vm0, %v1281_v10  ;;  %1096 = vmatpush.msrb.mxu3 %v794_v52  ;;  %vm740_vm2 = vcmask 392192   ;;  %vm749_vm3 = vcmask 523264   ;;  %s432_s29 = scalar_lea.vmem %s1666_s1, %s1382_s15 }
  0x18   : > { %1071 = vmatmul.msk.f32.vlgmr.msra.gmra.mxu0 %vm465_vm0, %v1388_v2  ;;  %1077 = vmatmul.msk.f32.vlgmr.msra.gmra.mxu3 %vm465_vm0, %v1390_v3  ;;  %v1398_v5 = vld [vmem:[%s427_s18 + $0x38] sm:$0xff]  ;;  %v1404_v6 = vld [vmem:[%s427_s18 + $0x10] sm:$0xff]  ;;  %v1412_v8 = vld [vmem:[%s427_s18 + $0x20] sm:$0xff]  ;;  %535 = vst.msk [vmem:[#allocation2 + $0x20] sm:$0xff] %vm465_vm0, %v1281_v10  ;;  %vm758_vm4 = vcmask 654336   ;;  %vm799_vm5 = vcmask 785408  }
  0x19   : > { %v1408_v7 = vld [vmem:[%s427_s18 + $0x18] sm:$0xff]  ;;  %v1416_v9 = vld [vmem:[%s427_s18 + $0x28] sm:$0xff]  ;;  %536 = vst.msk [vmem:[#allocation2 + $0x28] sm:$0xff] %vm465_vm0, %v1281_v10  ;;  %829 = vmatpush.msra.mxu1 %v793_v53  ;;  %1098 = vmatpush.msrb.mxu3 %v793_v53 }
  0x1a   : > { %537 = vst.msk [vmem:[#allocation2 + $0x30] sm:$0xff] %vm465_vm0, %v1281_v10  ;;  %1097 = vmatpush.msra.mxu2 %v793_v53 }
  0x1b   : > { %538 = vst.msk [vmem:[#allocation2 + $0x38] sm:$0xff] %vm465_vm0, %v1281_v10  ;;  %830 = vmatpush.msra.mxu1 %v792_v56  ;;  %1100 = vmatpush.msrb.mxu3 %v792_v56 }
  0x1c   : > { %539 = vst.msk [vmem:[#allocation2 + $0x40] sm:$0xff] %vm465_vm0, %v1281_v10  ;;  %1099 = vmatpush.msra.mxu2 %v792_v56 }
  0x1d   : > { %540 = vst.msk [vmem:[#allocation2 + $0x48] sm:$0xff] %vm465_vm0, %v1281_v10  ;;  %v558_v11 = vld [vmem:[#allocation2 + $0x8] sm:$0xff]  ;;  %831 = vmatpush.msra.mxu1 %v791_v57  ;;  %1102 = vmatpush.msrb.mxu3 %v791_v57 }
  0x1e   : > { %541 = vst.msk [vmem:[#allocation2 + $0x50] sm:$0xff] %vm465_vm0, %v1281_v10  ;;  %585 = vrot.lane.b32.xlu2 %v558_v11, %s1282_s14  ;;  %1101 = vmatpush.msra.mxu2 %v791_v57  ;;  %v784_v11 = vld [vmem:[#allocation7 + $0x8] sm:$0xff] }
  0x1f   : > { %832 = vmatpush.msra.mxu1 %v790_v59  ;;  %1104 = vmatpush.msrb.mxu3 %v790_v59 }
  0x20   : > { %1072 = vmatmul.msk.f32.gmra.mxu0 %vm465_vm0, %v1396_v4  ;;  %1078 = vmatmul.msk.f32.gmra.mxu3 %vm465_vm0, %v1398_v5 }
  0x21   : > { %1103 = vmatpush.msra.mxu2 %v790_v59  ;;  %833 = vmatpush.msra.mxu1 %v789_v60 }
  0x22   : > { %1106 = vmatpush.msrb.mxu3 %v789_v60 }
  0x23   : > { %1105 = vmatpush.msra.mxu2 %v789_v60  ;;  %834 = vmatpush.msra.mxu1 %v788_v62  ;;  %v774_v60 = vld [vmem:[#allocation3 + $0x38] sm:$0xff] }
  0x24   : > { %1108 = vmatpush.msrb.mxu3 %v788_v62 }
  0x25   : > { %1107 = vmatpush.msra.mxu2 %v788_v62  ;;  %835 = vmatpush.msra.mxu1 %v787_v63 }
  0x26   : > { %1110 = vmatpush.msrb.mxu3 %v787_v63 }
  0x27   : > { %1109 = vmatpush.msra.mxu2 %v787_v63  ;;  %836 = vmatpush.msra.mxu1 %v786_v0 }
  0x28   : > { %1073 = vmatmul.msk.f32.gmra.mxu0 %vm465_vm0, %v1404_v6  ;;  %1112 = vmatpush.msrb.mxu3 %v786_v0 }
  0x29   : > { %1111 = vmatpush.msra.mxu2 %v786_v0  ;;  %837 = vmatpush.msra.mxu1 %v785_v1 }
  0x2a   : > { %1114 = vmatpush.msrb.mxu3 %v785_v1 }
  0x2b   : > { %1113 = vmatpush.msra.mxu2 %v785_v1  ;;  %838 = vmatpush.msra.mxu1 %v784_v11 }
  0x2c   : > { %1116 = vmatpush.msrb.mxu3 %v784_v11 }
  0x2d   : > { %1115 = vmatpush.msra.mxu2 %v784_v11 }
  0x30   : > { %1074 = vmatmul.msk.f32.gmra.mxu0 %vm465_vm0, %v1408_v7 }
  0x38   : > { %1075 = vmatmul.msk.f32.gmra.mxu0 %vm465_vm0, %v1412_v8 }
  0x40   : > { %1076 = vmatmul.msk.f32.gmra.mxu0 %vm465_vm0, %v1416_v9 }
  0x78   : > { %v1489_v51 = vpop.permute.xlu2 %585 }
  0x95   : > { %v507_v13 = vpop.f32.mrf.mxu0 }
  0x96   : > { %v508_v14 = vadd.f32 %v1166_v12, %v507_v13 }
  0x98   : > { %542 = vst.msk [vmem:[#allocation2 + $0x10] sm:$0xff] %vm465_vm0, %v508_v14 }
  0x9b   : > { %v525_v15 = vpop.f32.mrf.mxu3 }
  0x9c   : > { %v526_v16 = vadd.f32 %v1166_v12, %v525_v15 }
  0x9d   : > { %v510_v17 = vpop.f32.mrf.mxu0 }
  0x9e   : > { %548 = vst.msk [vmem:[#allocation2 + $0x40] sm:$0xff] %vm465_vm0, %v526_v16  ;;  %v511_v18 = vadd.f32 %v1166_v12, %v510_v17 }
  0x9f   : > { %v566_v19 = vld [vmem:[#allocation2 + $0x9] sm:$0xff] }
  0xa0   : > { %v559_v20 = vld [vmem:[#allocation2 + $0x10] sm:$0xff]  ;;  %543 = vst.msk [vmem:[#allocation2 + $0x18] sm:$0xff] %vm465_vm0, %v511_v18  ;;  %617 = vrot.lane.b32.xlu0 %v566_v19, %s1283_s21  ;;  %v550_v18 = vld [vmem:[#allocation2 + $0x7] sm:$0xff] }
  0xa1   : > { %587 = vrot.lane.b32.xlu2 %v559_v20, %s1282_s14  ;;  %v1441_v26 = vld [vmem:[#allocation2 + $0xf] sm:$0xff] }
  0xa3   : > { %v528_v21 = vpop.f32.mrf.mxu3 }
  0xa4   : > { %v529_v22 = vadd.f32 %v1166_v12, %v528_v21 }
  0xa5   : > { %v513_v23 = vpop.f32.mrf.mxu0  ;;  %v565_v25 = vld [vmem:[#allocation2 + $0x40] sm:$0xff] }
  0xa6   : > { %549 = vst.msk [vmem:[#allocation2 + $0x48] sm:$0xff] %vm465_vm0, %v529_v22  ;;  %v514_v24 = vadd.f32 %v1166_v12, %v513_v23  ;;  %v723_v22 = vsel %vm465_vm0, %v550_v18, %v1489_v51 }
  0xa7   : > { %v567_v33 = vld [vmem:[#allocation2 + $0x11] sm:$0xff] }
  0xa8   : > { %544 = vst.msk [vmem:[#allocation2 + $0x20] sm:$0xff] %vm465_vm0, %v514_v24  ;;  %649 = vrot.lane.b32.xlu0 %v1441_v26, %s1285_s23  ;;  %v1463_v40 = vld [vmem:[#allocation2 + $0x17] sm:$0xff] }
  0xa9   : > { %686 = vrot.lane.b32.xlu2 %v565_v25, %s1284_s22  ;;  %v560_v42 = vld [vmem:[#allocation2 + $0x18] sm:$0xff] }
  0xad   : > { %v516_v27 = vpop.f32.mrf.mxu0  ;;  %v573_v28 = vld [vmem:[#allocation2 + $0x41] sm:$0xff]  ;;  %v576_v31 = vld [vmem:[#allocation2 + $0x49] sm:$0xff] }
  0xae   : > { %v517_v29 = vadd.f32 %v1166_v12, %v516_v27  ;;  %711 = vrot.lane.b32.xlu1 %v573_v28, %s1286_s24  ;;  %v574_v37 = vld [vmem:[#allocation2 + $0x47] sm:$0xff]  ;;  %v767_v27 = vld [vmem:[#allocation3] sm:$0xff] }
  0xaf   : > { %v575_v39 = vld [vmem:[#allocation2 + $0x48] sm:$0xff]  ;;  %v561_v44 = vld [vmem:[#allocation2 + $0x20] sm:$0xff] }
  0xb0   : > { %545 = vst.msk [vmem:[#allocation2 + $0x28] sm:$0xff] %vm465_vm0, %v517_v29  ;;  %674 = vrot.lane.b32.xlu0 %v559_v20, %s1284_s22  ;;  %v568_v47 = vld [vmem:[#allocation2 + $0x19] sm:$0xff] }
  0xb1   : > { %599 = vrot.lane.b32.xlu2 %v565_v25, %s1282_s14  ;;  %v1505_v13 = vld [vmem:[#allocation2 + $0x1f] sm:$0xff] }
  0xb5   : > { %v519_v30 = vpop.f32.mrf.mxu0 }
  0xb6   : > { %v520_v32 = vadd.f32 %v1166_v12, %v519_v30  ;;  %713 = vrot.lane.b32.xlu1 %v576_v31, %s1286_s24 }
  0xb7   : > { %v1455_v35 = vld [vmem:[#allocation2 + $0x27] sm:$0xff] }
  0xb8   : > { %546 = vst.msk [vmem:[#allocation2 + $0x30] sm:$0xff] %vm465_vm0, %v520_v32  ;;  %699 = vrot.lane.b32.xlu0 %v567_v33, %s1286_s24  ;;  %v562_v38 = vld [vmem:[#allocation2 + $0x28] sm:$0xff] }
  0xb9   : > { %631 = vrot.lane.b32.xlu2 %v573_v28, %s1283_s21  ;;  %v569_v50 = vld [vmem:[#allocation2 + $0x21] sm:$0xff] }
  0xbd   : > { %v522_v34 = vpop.f32.mrf.mxu0 }
  0xbe   : > { %v523_v36 = vadd.f32 %v1166_v12, %v522_v34  ;;  %655 = vrot.lane.b32.xlu1 %v1455_v35, %s1285_s23  ;;  %v783_v12 = vld [vmem:[#allocation7] sm:$0xff] }
  0xbf   : > { %v570_v41 = vld [vmem:[#allocation2 + $0x29] sm:$0xff]  ;;  %839 = vmatpush.msra.mxu1 %v783_v12  ;;  %1118 = vmatpush.msrb.mxu3 %v783_v12 }
  0xc0   : > { %547 = vst.msk [vmem:[#allocation2 + $0x38] sm:$0xff] %vm465_vm0, %v523_v36  ;;  %619 = vrot.lane.b32.xlu0 %v567_v33, %s1283_s21  ;;  %v1474_v45 = vld [vmem:[#allocation2 + $0x2f] sm:$0xff]  ;;  %1117 = vmatpush.msra.mxu2 %v783_v12 }
  0xc1   : > { %663 = vrot.lane.b32.xlu2 %v574_v37, %s1285_s23  ;;  %v563_v48 = vld [vmem:[#allocation2 + $0x30] sm:$0xff] }
  0xc6   : > { %680 = vrot.lane.b32.xlu1 %v562_v38, %s1284_s22 }
  0xc7   : > { %v564_v43 = vld [vmem:[#allocation2 + $0x38] sm:$0xff] }
  0xc8   : > { %651 = vrot.lane.b32.xlu0 %v1463_v40, %s1285_s23  ;;  %v572_v46 = vld [vmem:[#allocation2 + $0x39] sm:$0xff]  ;;  %v571_v54 = vld [vmem:[#allocation2 + $0x31] sm:$0xff] }
  0xc9   : > { %688 = vrot.lane.b32.xlu2 %v575_v39, %s1284_s22  ;;  %v1481_v49 = vld [vmem:[#allocation2 + $0x3f] sm:$0xff]  ;;  %v1496_v58 = vld [vmem:[#allocation2 + $0x37] sm:$0xff] }
  0xce   : > { %593 = vrot.lane.b32.xlu1 %v562_v38, %s1282_s14 }
  0xd0   : > { %676 = vrot.lane.b32.xlu0 %v560_v42, %s1284_s22 }
  0xd1   : > { %705 = vrot.lane.b32.xlu2 %v570_v41, %s1286_s24 }
  0xd6   : > { %625 = vrot.lane.b32.xlu1 %v570_v41, %s1283_s21 }
  0xd8   : > { %591 = vrot.lane.b32.xlu0 %v561_v44, %s1282_s14 }
  0xd9   : > { %597 = vrot.lane.b32.xlu2 %v564_v43, %s1282_s14 }
  0xde   : > { %657 = vrot.lane.b32.xlu1 %v1474_v45, %s1285_s23 }
  0xe0   : > { %701 = vrot.lane.b32.xlu0 %v568_v47, %s1286_s24 }
  0xe1   : > { %629 = vrot.lane.b32.xlu2 %v572_v46, %s1283_s21 }
  0xe6   : > { %682 = vrot.lane.b32.xlu1 %v563_v48, %s1284_s22 }
  0xe8   : > { %623 = vrot.lane.b32.xlu0 %v569_v50, %s1283_s21 }
  0xe9   : > { %661 = vrot.lane.b32.xlu2 %v1481_v49, %s1285_s23 }
  0xee   : > { %595 = vrot.lane.b32.xlu1 %v563_v48, %s1282_s14 }
  0xf0   : > { %621 = vrot.lane.b32.xlu0 %v568_v47, %s1283_s21  ;;  %v773_v47 = vld [vmem:[#allocation3 + $0x30] sm:$0xff] }
  0xf1   : > { %589 = vrot.lane.b32.xlu2 %v560_v42, %s1282_s14  ;;  %s1593_s14 = scalar_lea.vmem %s1675_s10, %s1382_s15 }
  0xf6   : > { %627 = vrot.lane.b32.xlu1 %v571_v54, %s1283_s21  ;;  %s1599_s21 = scalar_lea.vmem %s1674_s9, %s1382_s15 }
  0xf8   : > { %707 = vrot.lane.b32.xlu0 %v571_v54, %s1286_s24 }
  0xf9   : > { %678 = vrot.lane.b32.xlu2 %v561_v44, %s1284_s22 }
  0xfb   : > { %v1494_v55 = vpop.permute.xlu2 %587 }
  0xfc   : > { %v724_v63 = vsel %vm465_vm0, %v1441_v26, %v1494_v55 }
  0xfe   : > { %659 = vrot.lane.b32.xlu1 %v1496_v58, %s1285_s23 }
 0x100   : > { %709 = vrot.lane.b32.xlu0 %v572_v46, %s1286_s24 }
 0x103   : > { %v1501_v61 = vpop.permute.xlu2 %686 }
 0x106   : > { %684 = vrot.lane.b32.xlu1 %v564_v43, %s1284_s22 }
 0x108   : > { %703 = vrot.lane.b32.xlu0 %v569_v50, %s1286_s24 }
 0x10b   : > { %v600_v10 = vpop.permute.xlu2 %599 }
 0x10c   : > { %v730_v53 = vsel %vm465_vm0, %v1481_v49, %v600_v10  ;;  %v768_v10 = vld [vmem:[#allocation3 + $0x8] sm:$0xff] }
 0x10e   : > { %653 = vrot.lane.b32.xlu1 %v1505_v13, %s1285_s23 }
 0x112   : > { %v618_v14 = vpop.permute.xlu0 %617 }
 0x113   : > { %v632_v15 = vpop.permute.xlu2 %631  ;;  %v732_v23 = vsel %vm731_vm1, %v723_v22, %v618_v14 }
 0x114   : > { %v739_v54 = vsel %vm731_vm1, %v730_v53, %v632_v15 }
 0x11a   : > { %v650_v17 = vpop.permute.xlu0 %649 }
 0x11b   : > { %v664_v16 = vpop.permute.xlu2 %663  ;;  %v741_v25 = vsel %vm740_vm2, %v732_v23, %v650_v17 }
 0x11c   : > { %v748_v57 = vsel %vm740_vm2, %v739_v54, %v664_v16 }
 0x120   : > { %v712_v19 = vpop.permute.xlu1 %711 }
 0x122   : > { %v675_v21 = vpop.permute.xlu0 %674 }
 0x123   : > { %v689_v20 = vpop.permute.xlu2 %688  ;;  %v750_v28 = vsel %vm749_vm3, %v741_v25, %v675_v21 }
 0x128   : > { %v714_v24 = vpop.permute.xlu1 %713 }
 0x12a   : > { %v700_v30 = vpop.permute.xlu0 %699 }
 0x12b   : > { %v706_v29 = vpop.permute.xlu2 %705  ;;  %v759_v31 = vsel %vm758_vm4, %v750_v28, %v700_v30  ;;  %v771_v30 = vld [vmem:[#allocation3 + $0x20] sm:$0xff] }
 0x12c   : > { %v775_v32 = vmul.f32 %v767_v27, %v759_v31 }
 0x12e   : > { %1079 = vmatmul.msk.f32.vlgmr.msra.gmra.mxu1 %vm799_vm5, %v775_v32 }
 0x130   : > { %v656_v33 = vpop.permute.xlu1 %655 }
 0x132   : > { %v620_v36 = vpop.permute.xlu0 %619 }
 0x133   : > { %v598_v34 = vpop.permute.xlu2 %597  ;;  %v733_v49 = vsel %vm731_vm1, %v724_v63, %v620_v36 }
 0x134   : > { %v729_v42 = vsel %vm465_vm0, %v1496_v58, %v598_v34  ;;  %v757_v58 = vsel %vm749_vm3, %v748_v57, %v689_v20 }
 0x135   : > { %v766_v62 = vsel %vm758_vm4, %v757_v58, %v714_v24  ;;  %v1579_v58 = vld [vmem:[%s1672_s7] ss:$0 sm:$0xff] }
 0x138   : > { %v681_v37 = vpop.permute.xlu1 %680 }
 0x13a   : > { %v652_v39 = vpop.permute.xlu0 %651 }
 0x13b   : > { %v630_v38 = vpop.permute.xlu2 %629  ;;  %v742_v1 = vsel %vm740_vm2, %v733_v49, %v652_v39 }
 0x13c   : > { %v738_v43 = vsel %vm731_vm1, %v729_v42, %v630_v38  ;;  %v772_v42 = vld [vmem:[#allocation3 + $0x28] sm:$0xff] }
 0x140   : > { %v594_v41 = vpop.permute.xlu1 %593 }
 0x141   : > { %v727_v25 = vsel %vm465_vm0, %v1455_v35, %v594_v41 }
 0x142   : > { %v677_v46 = vpop.permute.xlu0 %676 }
 0x143   : > { %v662_v44 = vpop.permute.xlu2 %661  ;;  %v751_v11 = vsel %vm749_vm3, %v742_v1, %v677_v46  ;;  %v452_v1 = vld [vmem:[%s432_s29 + $0x8] sm:$0xff] }
 0x144   : > { %v747_v48 = vsel %vm740_vm2, %v738_v43, %v662_v44 }
 0x145   : > { %v756_v50 = vsel %vm749_vm3, %v747_v48, %v1501_v61  ;;  %v782_v61 = vmul.f32 %v774_v60, %v766_v62  ;;  %v1585_v62 = vld [vmem:[%s1673_s8] ss:$0 sm:$0xff] }
 0x146   : > { %v765_v51 = vsel %vm758_vm4, %v756_v50, %v712_v19  ;;  %v770_v19 = vld [vmem:[#allocation3 + $0x18] sm:$0xff] }
 0x147   : > { %v781_v52 = vmul.f32 %v773_v47, %v765_v51 }
 0x148   : > { %v626_v56 = vpop.permute.xlu1 %625 }
 0x149   : > { %1085 = vmatmul.msk.f32.vlgmr.msrb.gmra.mxu3 %vm799_vm5, %v781_v52  ;;  %v769_v52 = vld [vmem:[#allocation3 + $0x10] sm:$0xff] }
 0x14a   : > { %v592_v59 = vpop.permute.xlu0 %591 }
 0x14b   : > { %v726_v26 = vsel %vm465_vm0, %v1505_v13, %v592_v59  ;;  %v736_v13 = vsel %vm731_vm1, %v727_v25, %v626_v56 }
 0x150   : > { %v658_v0 = vpop.permute.xlu1 %657 }
 0x151   : > { %1086 = vmatmul.msk.f32.gmra.mxu3 %vm799_vm5, %v782_v61  ;;  %v745_v28 = vsel %vm740_vm2, %v736_v13, %v658_v0  ;;  %v451_v61 = vld [vmem:[%s432_s29] sm:$0xff]  ;;  %v457_v0 = vld [vmem:[%s432_s29 + $0x30] sm:$0xff] }
 0x152   : > { %v702_v12 = vpop.permute.xlu0 %701 }
 0x153   : > { %v760_v14 = vsel %vm758_vm4, %v751_v11, %v702_v12  ;;  %v454_v11 = vld [vmem:[%s432_s29 + $0x18] sm:$0xff] }
 0x154   : > { %v776_v15 = vmul.f32 %v768_v10, %v760_v14  ;;  %v458_v10 = vld [vmem:[%s432_s29 + $0x38] sm:$0xff]  ;;  %v455_v14 = vld [vmem:[%s432_s29 + $0x20] sm:$0xff] }
 0x156   : > { %1080 = vmatmul.msk.f32.gmra.mxu1 %vm799_vm5, %v776_v15  ;;  %v456_v15 = vld [vmem:[%s432_s29 + $0x28] sm:$0xff] }
 0x158   : > { %v683_v16 = vpop.permute.xlu1 %682 }
 0x159   : > { %v754_v31 = vsel %vm749_vm3, %v745_v28, %v683_v16  ;;  %v453_v16 = vld [vmem:[%s432_s29 + $0x10] sm:$0xff] }
 0x15a   : > { %v624_v55 = vpop.permute.xlu0 %623 }
 0x15b   : > { %v735_v17 = vsel %vm731_vm1, %v726_v26, %v624_v55 }
 0x15c   : > { %v744_v18 = vsel %vm740_vm2, %v735_v17, %v656_v33 }
 0x15d   : > { %v753_v20 = vsel %vm749_vm3, %v744_v18, %v681_v37  ;;  %v590_v37 = vpop.permute.xlu2 %589 }
 0x15e   : > { %v762_v21 = vsel %vm758_vm4, %v753_v20, %v706_v29  ;;  %v725_v47 = vsel %vm465_vm0, %v1463_v40, %v590_v37  ;;  %v1570_v40 = vld [vmem:[%s1671_s6] ss:$0 sm:$0xff] }
 0x15f   : > { %v778_v22 = vmul.f32 %v770_v19, %v762_v21 }
 0x160   : > { %v596_v23 = vpop.permute.xlu1 %595 }
 0x161   : > { %1082 = vmatmul.msk.f32.vlgmr.msra.gmra.mxu2 %vm799_vm5, %v778_v22  ;;  %v728_v36 = vsel %vm465_vm0, %v1474_v45, %v596_v23 }
 0x162   : > { %v622_v24 = vpop.permute.xlu0 %621 }
 0x163   : > { %v734_v45 = vsel %vm731_vm1, %v725_v47, %v622_v24 }
 0x165   : > { %v679_v50 = vpop.permute.xlu2 %678 }
 0x168   : > { %v628_v27 = vpop.permute.xlu1 %627 }
 0x169   : > { %v737_v35 = vsel %vm731_vm1, %v728_v36, %v628_v27 }
 0x16a   : > { %v708_v32 = vpop.permute.xlu0 %707 }
 0x16b   : > { %v763_v33 = vsel %vm758_vm4, %v754_v31, %v708_v32 }
 0x16c   : > { %v779_v29 = vmul.f32 %v771_v30, %v763_v33 }
 0x16e   : > { %1083 = vmatmul.msk.f32.gmra.mxu2 %vm799_vm5, %v779_v29 }
 0x170   : > { %v660_v34 = vpop.permute.xlu1 %659 }
 0x171   : > { %v746_v38 = vsel %vm740_vm2, %v737_v35, %v660_v34 }
 0x172   : > { %v710_v39 = vpop.permute.xlu0 %709 }
 0x178   : > { %v685_v41 = vpop.permute.xlu1 %684 }
 0x179   : > { %v755_v43 = vsel %vm749_vm3, %v746_v38, %v685_v41 }
 0x17a   : > { %v764_v44 = vsel %vm758_vm4, %v755_v43, %v710_v39  ;;  %v704_v53 = vpop.permute.xlu0 %703 }
 0x17b   : > { %v780_v46 = vmul.f32 %v772_v42, %v764_v44 }
 0x17d   : > { %1084 = vmatmul.msk.f32.gmra.mxu2 %vm799_vm5, %v780_v46 }
 0x180   : > { %v654_v48 = vpop.permute.xlu1 %653 }
 0x181   : > { %v743_v51 = vsel %vm740_vm2, %v734_v45, %v654_v48 }
 0x182   : > { %v752_v54 = vsel %vm749_vm3, %v743_v51, %v679_v50 }
 0x183   : > { %v761_v56 = vsel %vm758_vm4, %v752_v54, %v704_v53 }
 0x184   : > { %v777_v57 = vmul.f32 %v769_v52, %v761_v56 }
 0x186   : > { %1081 = vmatmul.msk.f32.gmra.mxu1 %vm799_vm5, %v777_v57 }
 0x1ab   : > { %v841_v59 = vpop.f32.mrf.mxu1 }
 0x1ac   : > { %v842_v60 = vadd.f32 %v1570_v40, %v841_v59 }
 0x1ae   : > { %v869_v63 = vmul.f32 %v1579_v58, %v842_v60  ;;  %v894_v49 = vadd.f32 %v842_v60, %v1388_v2 }
 0x1b0   : > { %v877_v12 = vadd.f32 %v869_v63, %v451_v61  ;;  %v905_v2 = vmul.f32 %v1585_v62, %v894_v49 }
 0x1b2   : > { %913 = vst.msk [vmem:[%s1593_s14] sm:$0xff] %vm465_vm0, %v905_v2 }
 0x1b3   : > { %885 = vst.msk [vmem:[%s1599_s21] sm:$0xff] %vm465_vm0, %v877_v12 }
 0x1cc   : > { %v859_v26 = vpop.f32.mrf.mxu3 }
 0x1cd   : > { %v860_v55 = vadd.f32 %v1570_v40, %v859_v26 }
 0x1cf   : > { %v875_v17 = vmul.f32 %v1579_v58, %v860_v55  ;;  %v900_v18 = vadd.f32 %v860_v55, %v1390_v3 }
 0x1d1   : > { %v883_v19 = vadd.f32 %v875_v17, %v457_v0  ;;  %v911_v20 = vmul.f32 %v1585_v62, %v900_v18 }
 0x1d3   : > { %919 = vst.msk [vmem:[%s1593_s14 + $0x30] sm:$0xff] %vm465_vm0, %v911_v20  ;;  %v844_v21 = vpop.f32.mrf.mxu1 }
 0x1d4   : > { %v862_v22 = vpop.f32.mrf.mxu3  ;;  %891 = vst.msk [vmem:[%s1599_s21 + $0x30] sm:$0xff] %vm465_vm0, %v883_v19  ;;  %v845_v23 = vadd.f32 %v1570_v40, %v844_v21 }
 0x1d5   : > { %v863_v24 = vadd.f32 %v1570_v40, %v862_v22 }
 0x1d6   : > { %v870_v25 = vmul.f32 %v1579_v58, %v845_v23  ;;  %v895_v3 = vadd.f32 %v845_v23, %v1396_v4 }
 0x1d7   : > { %v876_v13 = vmul.f32 %v1579_v58, %v863_v24  ;;  %v901_v27 = vadd.f32 %v863_v24, %v1398_v5 }
 0x1d8   : > { %v878_v28 = vadd.f32 %v870_v25, %v452_v1  ;;  %v906_v30 = vmul.f32 %v1585_v62, %v895_v3 }
 0x1d9   : > { %v912_v31 = vmul.f32 %v1585_v62, %v901_v27  ;;  %v884_v32 = vadd.f32 %v876_v13, %v458_v10 }
 0x1da   : > { %914 = vst.msk [vmem:[%s1593_s14 + $0x8] sm:$0xff] %vm465_vm0, %v906_v30 }
 0x1db   : > { %920 = vst.msk [vmem:[%s1593_s14 + $0x38] sm:$0xff] %vm465_vm0, %v912_v31 }
 0x1dc   : > { %886 = vst.msk [vmem:[%s1599_s21 + $0x8] sm:$0xff] %vm465_vm0, %v878_v28 }
 0x1dd   : > { %892 = vst.msk [vmem:[%s1599_s21 + $0x38] sm:$0xff] %vm465_vm0, %v884_v32 }
 0x1e4   : > { %v850_v4 = vpop.f32.mrf.mxu2 }
 0x1e5   : > { %v851_v5 = vadd.f32 %v1570_v40, %v850_v4 }
 0x1e7   : > { %v872_v33 = vmul.f32 %v1579_v58, %v851_v5  ;;  %v897_v29 = vadd.f32 %v851_v5, %v1408_v7 }
 0x1e9   : > { %v880_v34 = vadd.f32 %v872_v33, %v454_v11  ;;  %v908_v36 = vmul.f32 %v1585_v62, %v897_v29 }
 0x1eb   : > { %916 = vst.msk [vmem:[%s1593_s14 + $0x18] sm:$0xff] %vm465_vm0, %v908_v36 }
 0x1ec   : > { %888 = vst.msk [vmem:[%s1599_s21 + $0x18] sm:$0xff] %vm465_vm0, %v880_v34 }
 0x1f1   : > { %v853_v37 = vpop.f32.mrf.mxu2 }
 0x1f2   : > { %v854_v35 = vadd.f32 %v1570_v40, %v853_v37 }
 0x1f4   : > { %v873_v38 = vmul.f32 %v1579_v58, %v854_v35  ;;  %v898_v39 = vadd.f32 %v854_v35, %v1412_v8 }
 0x1f6   : > { %v881_v41 = vadd.f32 %v873_v38, %v455_v14  ;;  %v909_v42 = vmul.f32 %v1585_v62, %v898_v39 }
 0x1f8   : > { %917 = vst.msk [vmem:[%s1593_s14 + $0x20] sm:$0xff] %vm465_vm0, %v909_v42 }
 0x1f9   : > { %889 = vst.msk [vmem:[%s1599_s21 + $0x20] sm:$0xff] %vm465_vm0, %v881_v41 }
 0x200   : > { %v856_v7 = vpop.f32.mrf.mxu2 }
 0x201   : > { %v857_v43 = vadd.f32 %v1570_v40, %v856_v7 }
 0x203   : > { %v874_v44 = vmul.f32 %v1579_v58, %v857_v43  ;;  %v899_v46 = vadd.f32 %v857_v43, %v1416_v9  ;;  %v847_v47 = vpop.f32.mrf.mxu1 }
 0x204   : > { %v848_v8 = vadd.f32 %v1570_v40, %v847_v47 }
 0x205   : > { %v882_v45 = vadd.f32 %v874_v44, %v456_v15  ;;  %v910_v48 = vmul.f32 %v1585_v62, %v899_v46 }
 0x206   : > { %v871_v50 = vmul.f32 %v1579_v58, %v848_v8  ;;  %v896_v51 = vadd.f32 %v848_v8, %v1404_v6 }
 0x207   : > { %918 = vst.msk [vmem:[%s1593_s14 + $0x28] sm:$0xff] %vm465_vm0, %v910_v48 }
 0x208   : > { %v879_v52 = vadd.f32 %v871_v50, %v453_v16  ;;  %890 = vst.msk [vmem:[%s1599_s21 + $0x28] sm:$0xff] %vm465_vm0, %v882_v45  ;;  %v907_v53 = vmul.f32 %v1585_v62, %v896_v51 }
 0x20a   : > { %887 = vst.msk [vmem:[%s1599_s21 + $0x10] sm:$0xff] %vm465_vm0, %v879_v52 }
 0x20b   : > { %915 = vst.msk [vmem:[%s1593_s14 + $0x10] sm:$0xff] %vm465_vm0, %v907_v53 }
 0x20c PF: > { %s23_s13 = sadd.s32 1, %s1274_s13  }
 0x20d   : > { %p20_p7 = scmp.ge.s32.totalorder %s23_s13, 4  }
 0x20f   :  { %22 = sbr.rel (!%p20_p7) target bundleno = 2 (0x2), region = 114 }
 0x214   :  { %958 = vsyncpa [#allocation4], 1 }
 0x215   :  { %960 = vsyncpa [#allocation4 + $0x1], 1 }
 0x216   :  { %961 = vsyncpa [#allocation6], 1 }

// kernel: run.9
= control target key start
LH: loop header
LB: loop body
LE: loop exit
PB: predicated region body
PF: predicated region fallthrough
CT: control target
= control target key end

     0   :  { %15 = vsyncpa [#allocation3], 0  ;;  %s892_s30 = smov 0   ;;  %s1066_s0 = inlined_call_operand.vmem [shape: f32[2,64,16], index: 0, kind: input, shape index: {}, may-alias: {0,9}]   ;;  %s1067_s1 = inlined_call_operand.vmem [shape: f32[2,64,16], index: 1, kind: input, shape index: {}, may-alias: {1,8}]   ;;  %s1068_s2 = inlined_call_operand.vmem [shape: f32[16,64], index: 2, kind: input, shape index: {}]   ;;  %s1069_s3 = inlined_call_operand.vmem [shape: f32[1,64], index: 3, kind: input, shape index: {}]   ;;  %s1070_s4 = inlined_call_operand.hbm [shape: f32[64,16], index: 4, kind: input, shape index: {}]   ;;  %s1071_s5 = inlined_call_operand.vmem [shape: f32[1,16], index: 5, kind: input, shape index: {}]   ;;  %s1072_s6 = inlined_call_operand.vmem [shape: f32[1,16], index: 6, kind: input, shape index: {}, may-alias: {6,7}]   ;;  %s1073_s7 = inlined_call_operand.vmem [shape: f32[1,16], index: 7, kind: input, shape index: {}, may-alias: {6,7}]   ;;  %s1074_s8 = inlined_call_operand.vmem [shape: f32[2,64,16], index: 8, kind: output, shape index: {0}, may-alias: {1,8}]   ;;  %s1075_s9 = inlined_call_operand.vmem [shape: f32[2,64,16], index: 9, kind: output, shape index: {1}, may-alias: {0,9}]  }
   0x1 LB: > { %s273_s12 = sshll.u32 %s1070_s4, 4  ;;  %s725_s13 = sadd.s32 4294967295, %s837_s30   ;;  %s837_s30 = sphi %s892_s30, %s21_s30   ;;  %s274_s12 = int_to_ptr.hbm [resolvable:$true] %s273_s12 }
   0x2   : > { %p727_p0 = scmp.ge.s32.totalorder %s837_s30, 1  ;;  %p256_p1 = scmp.lt.s32.totalorder %s837_s30, 3 }
   0x3   : > { %p780_p2 = scmp.eq.s32.totalorder %s725_s13, 0  ;;  %s839_s14 = smov [#allocation2]  }
   0x4   : > { %p257_p3 = pnand %p727_p0, %p256_p1  ;;  %s275_s15 = sshll.u32 %s839_s14, 4  ;;  %s276_s15 = int_to_ptr.vmem [resolvable:$true] %s275_s15 }
   0x5   : > { %s840_s16 = smov 128   ;;  %s841_s17 = smov 8  }
   0x6   : > { %p776_p4 = pneg %p257_p3  ;;  %316 = sbr.rel (%p257_p3) target bundleno = 344 (0x158), region = 52 }
   0x8   : > { %p777_p5 = pnand %p780_p2, %p776_p4 }
   0xa   : > { %779 = dma.hbm_to_vmem [thread:$0]  (!%p777_p5), %s274_s12, 1024, %s276_s15, [#allocation3], %s840_s16, %s840_s16, %s841_s17  }
   0xb   : > { %832 = dma.done.wait (%p780_p2), [#allocation3], 1024  }
   0xc   : > { %834 = vsyncadd (%p780_p2), [#allocation3], 4294966272  ;;  %p363_p6 = scmp.lt.s32.totalorder %s725_s13, 1  ;;  %v400_v0 = vld [vmem:[%s1068_s2 + $0x8] sm:$0xff]  ;;  %v399_v1 = vld [vmem:[%s1068_s2] sm:$0xff]  ;;  %vm405_vm0 = vcmask 130048  }
   0xd   : > { %444 = vmatpush.msra.mxu0 %v400_v0  ;;  %762 = vmatpush.msra.mxu3 %v400_v0  ;;  %v486_v4 = vld [vmem:[#allocation2 + $0x38] sm:$0xff]  ;;  %v485_v5 = vld [vmem:[#allocation2 + $0x30] sm:$0xff]  ;;  %v484_v6 = vld [vmem:[#allocation2 + $0x28] sm:$0xff]  ;;  %vm491_vm1 = vcmask 523264  }
   0xe   : > { %s1077_s13 = smov (!%p363_p6, %s725_s13), 1  ;;  %524 = vmatpush.msra.mxu1 %v486_v4  ;;  %764 = vmatpush.msra.mxu2 %v486_v4  ;;  %v483_v8 = vld [vmem:[#allocation2 + $0x20] sm:$0xff]  ;;  %v482_v10 = vld [vmem:[#allocation2 + $0x18] sm:$0xff]  ;;  %v481_v15 = vld [vmem:[#allocation2 + $0x10] sm:$0xff] }
   0xf   : > { %s903_s18 = sshll.u32 %s1077_s13, 6  ;;  %445 = vmatpush.msra.mxu0 %v399_v1  ;;  %763 = vmatpush.msra.mxu3 %v399_v1  ;;  %v480_v16 = vld [vmem:[#allocation2 + $0x8] sm:$0xff]  ;;  %v479_v17 = vld [vmem:[#allocation2] sm:$0xff] }
  0x10   : > { %s909_s21 = scalar_lea.vmem %s1066_s0, %s903_s18  ;;  %525 = vmatpush.msra.mxu1 %v485_v5  ;;  %765 = vmatpush.msra.mxu2 %v485_v5  ;;  %v793_v18 = vld [vmem:[%s1069_s3] ss:$0 sm:$0xff]  ;;  %s372_s12 = scalar_lea.vmem %s1067_s1, %s903_s18 }
  0x11   : > { %v918_v2 = vld [vmem:[%s909_s21] sm:$0xff]  ;;  %v923_v3 = vld [vmem:[%s909_s21 + $0x28] sm:$0xff]  ;;  %v931_v9 = vld [vmem:[%s909_s21 + $0x30] sm:$0xff]  ;;  %s994_s20 = scalar_lea.vmem %s1075_s9, %s903_s18  ;;  %s1000_s23 = scalar_lea.vmem %s1074_s8, %s903_s18 }
  0x12   : > { %740 = vmatmul.msk.f32.vlgmr.msra.gmra.mxu0 %vm405_vm0, %v918_v2  ;;  %745 = vmatmul.msk.f32.vlgmr.msra.gmra.mxu3 %vm405_vm0, %v923_v3  ;;  %v928_v7 = vld [vmem:[%s909_s21 + $0x8] sm:$0xff]  ;;  %v938_v11 = vld [vmem:[%s909_s21 + $0x10] sm:$0xff]  ;;  %v941_v12 = vld [vmem:[%s909_s21 + $0x38] sm:$0xff] }
  0x13   : > { %526 = vmatpush.msra.mxu1 %v484_v6  ;;  %766 = vmatpush.msra.mxu2 %v484_v6  ;;  %v948_v13 = vld [vmem:[%s909_s21 + $0x18] sm:$0xff]  ;;  %v953_v14 = vld [vmem:[%s909_s21 + $0x20] sm:$0xff]  ;;  %v392_v51 = vld [vmem:[%s372_s12 + $0x8] sm:$0xff] }
  0x14   : > { %v971_v43 = vld [vmem:[%s1071_s5] ss:$0 sm:$0xff]  ;;  %v393_v52 = vld [vmem:[%s372_s12 + $0x10] sm:$0xff]  ;;  %v394_v53 = vld [vmem:[%s372_s12 + $0x18] sm:$0xff] }
  0x15   : > { %527 = vmatpush.msra.mxu1 %v483_v8  ;;  %767 = vmatpush.msra.mxu2 %v483_v8  ;;  %v980_v44 = vld [vmem:[%s1072_s6] ss:$0 sm:$0xff]  ;;  %v396_v57 = vld [vmem:[%s372_s12 + $0x28] sm:$0xff]  ;;  %v397_v58 = vld [vmem:[%s372_s12 + $0x30] sm:$0xff] }
  0x16   : > { %v986_v47 = vld [vmem:[%s1073_s7] ss:$0 sm:$0xff]  ;;  %v398_v59 = vld [vmem:[%s372_s12 + $0x38] sm:$0xff] }
  0x17   : > { %528 = vmatpush.msra.mxu1 %v482_v10  ;;  %768 = vmatpush.msra.mxu2 %v482_v10  ;;  %v391_v48 = vld [vmem:[%s372_s12] sm:$0xff] }
  0x18   : > { %v395_v54 = vld [vmem:[%s372_s12 + $0x20] sm:$0xff] }
  0x19   : > { %529 = vmatpush.msra.mxu1 %v481_v15  ;;  %769 = vmatpush.msra.mxu2 %v481_v15 }
  0x1a   : > { %741 = vmatmul.msk.f32.gmra.mxu0 %vm405_vm0, %v928_v7  ;;  %746 = vmatmul.msk.f32.gmra.mxu3 %vm405_vm0, %v931_v9 }
  0x1b   : > { %530 = vmatpush.msra.mxu1 %v480_v16  ;;  %770 = vmatpush.msra.mxu2 %v480_v16 }
  0x1d   : > { %531 = vmatpush.msra.mxu1 %v479_v17  ;;  %771 = vmatpush.msra.mxu2 %v479_v17 }
  0x22   : > { %742 = vmatmul.msk.f32.gmra.mxu0 %vm405_vm0, %v938_v11  ;;  %747 = vmatmul.msk.f32.gmra.mxu3 %vm405_vm0, %v941_v12 }
  0x2a   : > { %743 = vmatmul.msk.f32.gmra.mxu0 %vm405_vm0, %v948_v13 }
  0x32   : > { %744 = vmatmul.msk.f32.gmra.mxu0 %vm405_vm0, %v953_v14 }
  0x8f   : > { %v447_v19 = vpop.f32.mrf.mxu0 }
  0x90   : > { %v448_v20 = vadd.f32 %v793_v18, %v447_v19 }
  0x92   : > { %v471_v21 = vmax.f32 %v448_v20, 0.0 }
  0x94   : > { %748 = vmatmul.msk.f32.vlgmr.msra.gmra.mxu1 %vm491_vm1, %v471_v21 }
  0x95   : > { %v462_v31 = vpop.f32.mrf.mxu3 }
  0x96   : > { %v463_v35 = vadd.f32 %v793_v18, %v462_v31 }
  0x97   : > { %v450_v22 = vpop.f32.mrf.mxu0 }
  0x98   : > { %v451_v23 = vadd.f32 %v793_v18, %v450_v22  ;;  %v476_v37 = vmax.f32 %v463_v35, 0.0 }
  0x9a   : > { %v472_v24 = vmax.f32 %v451_v23, 0.0 }
  0x9c   : > { %749 = vmatmul.msk.f32.gmra.mxu1 %vm491_vm1, %v472_v24 }
  0x9d   : > { %v465_v36 = vpop.f32.mrf.mxu3 }
  0x9e   : > { %v466_v38 = vadd.f32 %v793_v18, %v465_v36 }
  0x9f   : > { %v453_v25 = vpop.f32.mrf.mxu0 }
  0xa0   : > { %v454_v26 = vadd.f32 %v793_v18, %v453_v25  ;;  %v477_v39 = vmax.f32 %v466_v38, 0.0 }
  0xa2   : > { %v473_v27 = vmax.f32 %v454_v26, 0.0 }
  0xa4   : > { %750 = vmatmul.msk.f32.gmra.mxu1 %vm491_vm1, %v473_v27 }
  0xa5   : > { %v468_v40 = vpop.f32.mrf.mxu3 }
  0xa6   : > { %v469_v41 = vadd.f32 %v793_v18, %v468_v40 }
  0xa7   : > { %v456_v28 = vpop.f32.mrf.mxu0 }
  0xa8   : > { %v457_v29 = vadd.f32 %v793_v18, %v456_v28  ;;  %v478_v42 = vmax.f32 %v469_v41, 0.0 }
  0xaa   : > { %v474_v30 = vmax.f32 %v457_v29, 0.0 }
  0xac   : > { %751 = vmatmul.msk.f32.gmra.mxu1 %vm491_vm1, %v474_v30 }
  0xaf   : > { %v459_v32 = vpop.f32.mrf.mxu0 }
  0xb0   : > { %v460_v33 = vadd.f32 %v793_v18, %v459_v32 }
  0xb2   : > { %v475_v34 = vmax.f32 %v460_v33, 0.0 }
  0xb4   : > { %752 = vmatmul.msk.f32.vlgmr.msra.gmra.mxu2 %vm491_vm1, %v475_v34 }
  0xbc   : > { %753 = vmatmul.msk.f32.gmra.mxu2 %vm491_vm1, %v476_v37 }
  0xc4   : > { %754 = vmatmul.msk.f32.gmra.mxu2 %vm491_vm1, %v477_v39 }
  0xcc   : > { %755 = vmatmul.msk.f32.gmra.mxu2 %vm491_vm1, %v478_v42 }
 0x111   : > { %v533_v45 = vpop.f32.mrf.mxu1 }
 0x112   : > { %v534_v46 = vadd.f32 %v971_v43, %v533_v45 }
 0x114   : > { %v561_v49 = vmul.f32 %v980_v44, %v534_v46  ;;  %v586_v50 = vadd.f32 %v534_v46, %v918_v2 }
 0x116   : > { %v569_v55 = vadd.f32 %v561_v49, %v391_v48  ;;  %v597_v56 = vmul.f32 %v986_v47, %v586_v50 }
 0x118   : > { %605 = vst.msk [vmem:[%s994_s20] sm:$0xff] %vm405_vm0, %v597_v56 }
 0x119   : > { %v536_v60 = vpop.f32.mrf.mxu1  ;;  %577 = vst.msk [vmem:[%s1000_s23] sm:$0xff] %vm405_vm0, %v569_v55 }
 0x11a   : > { %v537_v61 = vadd.f32 %v971_v43, %v536_v60 }
 0x11c   : > { %v562_v62 = vmul.f32 %v980_v44, %v537_v61  ;;  %v587_v63 = vadd.f32 %v537_v61, %v928_v7 }
 0x11e   : > { %v570_v0 = vadd.f32 %v562_v62, %v392_v51  ;;  %v598_v1 = vmul.f32 %v986_v47, %v587_v63 }
 0x120   : > { %606 = vst.msk [vmem:[%s994_s20 + $0x8] sm:$0xff] %vm405_vm0, %v598_v1 }
 0x121   : > { %v539_v2 = vpop.f32.mrf.mxu1  ;;  %578 = vst.msk [vmem:[%s1000_s23 + $0x8] sm:$0xff] %vm405_vm0, %v570_v0 }
 0x122   : > { %v540_v4 = vadd.f32 %v971_v43, %v539_v2 }
 0x124   : > { %v563_v5 = vmul.f32 %v980_v44, %v540_v4  ;;  %v588_v6 = vadd.f32 %v540_v4, %v938_v11 }
 0x126   : > { %v571_v8 = vadd.f32 %v563_v5, %v393_v52  ;;  %v599_v10 = vmul.f32 %v986_v47, %v588_v6 }
 0x128   : > { %607 = vst.msk [vmem:[%s994_s20 + $0x10] sm:$0xff] %vm405_vm0, %v599_v10 }
 0x129   : > { %v542_v7 = vpop.f32.mrf.mxu1  ;;  %579 = vst.msk [vmem:[%s1000_s23 + $0x10] sm:$0xff] %vm405_vm0, %v571_v8 }
 0x12a   : > { %v543_v15 = vadd.f32 %v971_v43, %v542_v7 }
 0x12c   : > { %v564_v16 = vmul.f32 %v980_v44, %v543_v15  ;;  %v589_v17 = vadd.f32 %v543_v15, %v948_v13 }
 0x12e   : > { %v572_v18 = vadd.f32 %v564_v16, %v394_v53  ;;  %v600_v19 = vmul.f32 %v986_v47, %v589_v17 }
 0x130   : > { %608 = vst.msk [vmem:[%s994_s20 + $0x18] sm:$0xff] %vm405_vm0, %v600_v19 }
 0x131   : > { %580 = vst.msk [vmem:[%s1000_s23 + $0x18] sm:$0xff] %vm405_vm0, %v572_v18 }
 0x137   : > { %v545_v11 = vpop.f32.mrf.mxu2 }
 0x138   : > { %v546_v20 = vadd.f32 %v971_v43, %v545_v11 }
 0x13a   : > { %v565_v21 = vmul.f32 %v980_v44, %v546_v20  ;;  %v590_v22 = vadd.f32 %v546_v20, %v953_v14 }
 0x13c   : > { %v573_v23 = vadd.f32 %v565_v21, %v395_v54  ;;  %v601_v24 = vmul.f32 %v986_v47, %v590_v22 }
 0x13e   : > { %609 = vst.msk [vmem:[%s994_s20 + $0x20] sm:$0xff] %vm405_vm0, %v601_v24 }
 0x13f   : > { %v548_v13 = vpop.f32.mrf.mxu2  ;;  %581 = vst.msk [vmem:[%s1000_s23 + $0x20] sm:$0xff] %vm405_vm0, %v573_v23 }
 0x140   : > { %v549_v25 = vadd.f32 %v971_v43, %v548_v13 }
 0x142   : > { %v566_v26 = vmul.f32 %v980_v44, %v549_v25  ;;  %v591_v27 = vadd.f32 %v549_v25, %v923_v3 }
 0x144   : > { %v574_v28 = vadd.f32 %v566_v26, %v396_v57  ;;  %v602_v29 = vmul.f32 %v986_v47, %v591_v27 }
 0x146   : > { %610 = vst.msk [vmem:[%s994_s20 + $0x28] sm:$0xff] %vm405_vm0, %v602_v29 }
 0x147   : > { %v551_v14 = vpop.f32.mrf.mxu2  ;;  %582 = vst.msk [vmem:[%s1000_s23 + $0x28] sm:$0xff] %vm405_vm0, %v574_v28 }
 0x148   : > { %v552_v30 = vadd.f32 %v971_v43, %v551_v14 }
 0x14a   : > { %v567_v31 = vmul.f32 %v980_v44, %v552_v30  ;;  %v592_v32 = vadd.f32 %v552_v30, %v931_v9 }
 0x14c   : > { %v575_v33 = vadd.f32 %v567_v31, %v397_v58  ;;  %v603_v34 = vmul.f32 %v986_v47, %v592_v32 }
 0x14e   : > { %611 = vst.msk [vmem:[%s994_s20 + $0x30] sm:$0xff] %vm405_vm0, %v603_v34 }
 0x14f   : > { %v554_v3 = vpop.f32.mrf.mxu2  ;;  %583 = vst.msk [vmem:[%s1000_s23 + $0x30] sm:$0xff] %vm405_vm0, %v575_v33 }
 0x150   : > { %v555_v35 = vadd.f32 %v971_v43, %v554_v3 }
 0x152   : > { %v568_v36 = vmul.f32 %v980_v44, %v555_v35  ;;  %v593_v37 = vadd.f32 %v555_v35, %v941_v12 }
 0x154   : > { %v576_v38 = vadd.f32 %v568_v36, %v398_v59  ;;  %v604_v39 = vmul.f32 %v986_v47, %v593_v37 }
 0x156   : > { %584 = vst.msk [vmem:[%s1000_s23 + $0x38] sm:$0xff] %vm405_vm0, %v576_v38 }
 0x157   : > { %612 = vst.msk [vmem:[%s994_s20 + $0x38] sm:$0xff] %vm405_vm0, %v604_v39 }
 0x158 PF: > { %s21_s30 = sadd.s32 1, %s837_s30  }
 0x159   : > { %p18_p7 = scmp.ge.s32.totalorder %s21_s30, 4  }
 0x15b   :  { %20 = sbr.rel (!%p18_p7) target bundleno = 1 (0x1), region = 102 }
 0x160   :  { %650 = vsyncpa [#allocation3], 1 }
 0x161   :  { %652 = vsyncpa [#allocation3 + $0x1], 1 }

// kernel: run.7
= control target key start
LH: loop header
LB: loop body
LE: loop exit
PB: predicated region body
PF: predicated region fallthrough
CT: control target
= control target key end

     0   :  { %15 = vsyncpa [#allocation3], 0  ;;  %s1150_s0 = inlined_call_operand.vmem [shape: f32[2,64,16], index: 0, kind: input, shape index: {}, may-alias: {0,9}]   ;;  %s1151_s1 = inlined_call_operand.vmem [shape: f32[2,64,16], index: 1, kind: input, shape index: {}, may-alias: {1,8}]   ;;  %s1152_s2 = inlined_call_operand.hbm [shape: f32[16,64], index: 2, kind: input, shape index: {}]   ;;  %s1153_s3 = inlined_call_operand.vmem [shape: f32[1,64], index: 3, kind: input, shape index: {}]   ;;  %s1154_s4 = inlined_call_operand.hbm [shape: f32[64,16], index: 4, kind: input, shape index: {}]   ;;  %s1155_s5 = inlined_call_operand.vmem [shape: f32[1,16], index: 5, kind: input, shape index: {}]   ;;  %s1156_s6 = inlined_call_operand.vmem [shape: f32[1,16], index: 6, kind: input, shape index: {}, may-alias: {6,7}]   ;;  %s1157_s7 = inlined_call_operand.vmem [shape: f32[1,16], index: 7, kind: input, shape index: {}, may-alias: {6,7}]   ;;  %s1158_s8 = inlined_call_operand.vmem [shape: f32[2,64,16], index: 8, kind: output, shape index: {0}, may-alias: {1,8}]   ;;  %s1159_s9 = inlined_call_operand.vmem [shape: f32[2,64,16], index: 9, kind: output, shape index: {1}, may-alias: {0,9}]  }
   0x1   :  { %16 = vsyncpa [#allocation5], 0  ;;  %s966_s30 = smov 0  }
   0x2 LB: > { %s268_s12 = sshll.u32 %s1152_s2, 4  ;;  %s752_s13 = sadd.s32 4294967295, %s910_s30   ;;  %s910_s30 = sphi %s966_s30, %s22_s30   ;;  %s269_s12 = int_to_ptr.hbm [resolvable:$true] %s268_s12 }
   0x3   : > { %p754_p0 = scmp.ge.s32.totalorder %s910_s30, 1  ;;  %p257_p1 = scmp.lt.s32.totalorder %s910_s30, 3 }
   0x4   : > { %p816_p2 = scmp.eq.s32.totalorder %s752_s13, 0  ;;  %s912_s15 = smov [#allocation2]  }
   0x5   : > { %p977_p3 = pnand %p754_p0, %p257_p1  ;;  %s270_s16 = sshll.u32 %s912_s15, 4  ;;  %s271_s16 = int_to_ptr.vmem [resolvable:$true] %s270_s16 }
   0x6   : > { %s285_s19 = sshll.u32 %s1154_s4, 4  ;;  %s913_s20 = smov [#allocation4]   ;;  %s286_s19 = int_to_ptr.hbm [resolvable:$true] %s285_s19 }
   0x7   : > { %p809_p4 = pneg %p977_p3  ;;  %s287_s21 = sshll.u32 %s913_s20, 4  ;;  %s288_s21 = int_to_ptr.vmem [resolvable:$true] %s287_s21 }
   0x8   : > { %s914_s22 = smov 128   ;;  %s915_s23 = smov 8  }
   0x9   : > { %p810_p5 = pnand %p816_p2, %p809_p4  ;;  %328 = sbr.rel (%p977_p3) target bundleno = 349 (0x15d), region = 52 }
   0xb   : > { %812 = dma.hbm_to_vmem [thread:$0]  (!%p810_p5), %s269_s12, 256, %s271_s16, [#allocation3], %s914_s22, %s914_s22, %s915_s23  }
   0xc   : > { %815 = dma.hbm_to_vmem [thread:$0]  (!%p810_p5), %s286_s19, 1024, %s288_s21, [#allocation5], %s914_s22, %s914_s22, %s915_s23  }
   0xe   : > { %901 = dma.done.wait (%p816_p2), [#allocation3], 256  }
   0xf   : > { %903 = vsyncadd (%p816_p2), [#allocation3], 4294967040 }
  0x10   : > { %905 = dma.done.wait (%p816_p2), [#allocation5], 1024  }
  0x11   : > { %907 = vsyncadd (%p816_p2), [#allocation5], 4294966272  ;;  %p380_p6 = scmp.lt.s32.totalorder %s752_s13, 1  ;;  %v417_v0 = vld [vmem:[#allocation2 + $0x8] sm:$0xff]  ;;  %v416_v1 = vld [vmem:[#allocation2] sm:$0xff]  ;;  %vm422_vm0 = vcmask 130048  }
  0x12   : > { %461 = vmatpush.msra.mxu0 %v417_v0  ;;  %791 = vmatpush.msra.mxu3 %v417_v0  ;;  %v503_v4 = vld [vmem:[#allocation4 + $0x38] sm:$0xff]  ;;  %v502_v5 = vld [vmem:[#allocation4 + $0x30] sm:$0xff]  ;;  %v501_v6 = vld [vmem:[#allocation4 + $0x28] sm:$0xff]  ;;  %vm508_vm1 = vcmask 523264  }
  0x13   : > { %s1162_s13 = smov (!%p380_p6, %s752_s13), 1  ;;  %541 = vmatpush.msra.mxu1 %v503_v4  ;;  %793 = vmatpush.msra.mxu2 %v503_v4  ;;  %v500_v8 = vld [vmem:[#allocation4 + $0x20] sm:$0xff]  ;;  %v499_v10 = vld [vmem:[#allocation4 + $0x18] sm:$0xff]  ;;  %v498_v15 = vld [vmem:[#allocation4 + $0x10] sm:$0xff] }
  0x14   : > { %s993_s24 = sshll.u32 %s1162_s13, 6  ;;  %462 = vmatpush.msra.mxu0 %v416_v1  ;;  %792 = vmatpush.msra.mxu3 %v416_v1  ;;  %v497_v16 = vld [vmem:[#allocation4 + $0x8] sm:$0xff]  ;;  %v496_v17 = vld [vmem:[#allocation4] sm:$0xff]  ;;  %v832_v18 = vld [vmem:[%s1153_s3] ss:$0 sm:$0xff] }
  0x15   : > { %s999_s27 = scalar_lea.vmem %s1150_s0, %s993_s24  ;;  %542 = vmatpush.msra.mxu1 %v502_v5  ;;  %794 = vmatpush.msra.mxu2 %v502_v5  ;;  %v1055_v43 = vld [vmem:[%s1155_s5] ss:$0 sm:$0xff]  ;;  %s389_s14 = scalar_lea.vmem %s1151_s1, %s993_s24 }
  0x16   : > { %v1002_v2 = vld [vmem:[%s999_s27] sm:$0xff]  ;;  %v1007_v3 = vld [vmem:[%s999_s27 + $0x28] sm:$0xff]  ;;  %v1015_v9 = vld [vmem:[%s999_s27 + $0x30] sm:$0xff]  ;;  %s1078_s21 = scalar_lea.vmem %s1159_s9, %s993_s24  ;;  %s1084_s25 = scalar_lea.vmem %s1158_s8, %s993_s24 }
  0x17   : > { %769 = vmatmul.msk.f32.vlgmr.msra.gmra.mxu0 %vm422_vm0, %v1002_v2  ;;  %774 = vmatmul.msk.f32.vlgmr.msra.gmra.mxu3 %vm422_vm0, %v1007_v3  ;;  %v1012_v7 = vld [vmem:[%s999_s27 + $0x8] sm:$0xff]  ;;  %v1022_v11 = vld [vmem:[%s999_s27 + $0x10] sm:$0xff]  ;;  %v1025_v12 = vld [vmem:[%s999_s27 + $0x38] sm:$0xff] }
  0x18   : > { %543 = vmatpush.msra.mxu1 %v501_v6  ;;  %795 = vmatpush.msra.mxu2 %v501_v6  ;;  %v1032_v13 = vld [vmem:[%s999_s27 + $0x18] sm:$0xff]  ;;  %v1037_v14 = vld [vmem:[%s999_s27 + $0x20] sm:$0xff]  ;;  %v409_v51 = vld [vmem:[%s389_s14 + $0x8] sm:$0xff] }
  0x19   : > { %v1064_v44 = vld [vmem:[%s1156_s6] ss:$0 sm:$0xff]  ;;  %v410_v52 = vld [vmem:[%s389_s14 + $0x10] sm:$0xff]  ;;  %v411_v53 = vld [vmem:[%s389_s14 + $0x18] sm:$0xff] }
  0x1a   : > { %544 = vmatpush.msra.mxu1 %v500_v8  ;;  %796 = vmatpush.msra.mxu2 %v500_v8  ;;  %v1070_v47 = vld [vmem:[%s1157_s7] ss:$0 sm:$0xff]  ;;  %v413_v57 = vld [vmem:[%s389_s14 + $0x28] sm:$0xff]  ;;  %v414_v58 = vld [vmem:[%s389_s14 + $0x30] sm:$0xff] }
  0x1b   : > { %v408_v48 = vld [vmem:[%s389_s14] sm:$0xff]  ;;  %v415_v59 = vld [vmem:[%s389_s14 + $0x38] sm:$0xff] }
  0x1c   : > { %545 = vmatpush.msra.mxu1 %v499_v10  ;;  %797 = vmatpush.msra.mxu2 %v499_v10  ;;  %v412_v54 = vld [vmem:[%s389_s14 + $0x20] sm:$0xff] }
  0x1e   : > { %546 = vmatpush.msra.mxu1 %v498_v15  ;;  %798 = vmatpush.msra.mxu2 %v498_v15 }
  0x1f   : > { %770 = vmatmul.msk.f32.gmra.mxu0 %vm422_vm0, %v1012_v7  ;;  %775 = vmatmul.msk.f32.gmra.mxu3 %vm422_vm0, %v1015_v9 }
  0x20   : > { %547 = vmatpush.msra.mxu1 %v497_v16  ;;  %799 = vmatpush.msra.mxu2 %v497_v16 }
  0x22   : > { %548 = vmatpush.msra.mxu1 %v496_v17  ;;  %800 = vmatpush.msra.mxu2 %v496_v17 }
  0x27   : > { %771 = vmatmul.msk.f32.gmra.mxu0 %vm422_vm0, %v1022_v11  ;;  %776 = vmatmul.msk.f32.gmra.mxu3 %vm422_vm0, %v1025_v12 }
  0x2f   : > { %772 = vmatmul.msk.f32.gmra.mxu0 %vm422_vm0, %v1032_v13 }
  0x37   : > { %773 = vmatmul.msk.f32.gmra.mxu0 %vm422_vm0, %v1037_v14 }
  0x94   : > { %v464_v19 = vpop.f32.mrf.mxu0 }
  0x95   : > { %v465_v20 = vadd.f32 %v832_v18, %v464_v19 }
  0x97   : > { %v488_v21 = vmax.f32 %v465_v20, 0.0 }
  0x99   : > { %777 = vmatmul.msk.f32.vlgmr.msra.gmra.mxu1 %vm508_vm1, %v488_v21 }
  0x9a   : > { %v479_v31 = vpop.f32.mrf.mxu3 }
  0x9b   : > { %v480_v35 = vadd.f32 %v832_v18, %v479_v31 }
  0x9c   : > { %v467_v22 = vpop.f32.mrf.mxu0 }
  0x9d   : > { %v468_v23 = vadd.f32 %v832_v18, %v467_v22  ;;  %v493_v37 = vmax.f32 %v480_v35, 0.0 }
  0x9f   : > { %v489_v24 = vmax.f32 %v468_v23, 0.0 }
  0xa1   : > { %778 = vmatmul.msk.f32.gmra.mxu1 %vm508_vm1, %v489_v24 }
  0xa2   : > { %v482_v36 = vpop.f32.mrf.mxu3 }
  0xa3   : > { %v483_v38 = vadd.f32 %v832_v18, %v482_v36 }
  0xa4   : > { %v470_v25 = vpop.f32.mrf.mxu0 }
  0xa5   : > { %v471_v26 = vadd.f32 %v832_v18, %v470_v25  ;;  %v494_v39 = vmax.f32 %v483_v38, 0.0 }
  0xa7   : > { %v490_v27 = vmax.f32 %v471_v26, 0.0 }
  0xa9   : > { %779 = vmatmul.msk.f32.gmra.mxu1 %vm508_vm1, %v490_v27 }
  0xaa   : > { %v485_v40 = vpop.f32.mrf.mxu3 }
  0xab   : > { %v486_v41 = vadd.f32 %v832_v18, %v485_v40 }
  0xac   : > { %v473_v28 = vpop.f32.mrf.mxu0 }
  0xad   : > { %v474_v29 = vadd.f32 %v832_v18, %v473_v28  ;;  %v495_v42 = vmax.f32 %v486_v41, 0.0 }
  0xaf   : > { %v491_v30 = vmax.f32 %v474_v29, 0.0 }
  0xb1   : > { %780 = vmatmul.msk.f32.gmra.mxu1 %vm508_vm1, %v491_v30 }
  0xb4   : > { %v476_v32 = vpop.f32.mrf.mxu0 }
  0xb5   : > { %v477_v33 = vadd.f32 %v832_v18, %v476_v32 }
  0xb7   : > { %v492_v34 = vmax.f32 %v477_v33, 0.0 }
  0xb9   : > { %781 = vmatmul.msk.f32.vlgmr.msra.gmra.mxu2 %vm508_vm1, %v492_v34 }
  0xc1   : > { %782 = vmatmul.msk.f32.gmra.mxu2 %vm508_vm1, %v493_v37 }
  0xc9   : > { %783 = vmatmul.msk.f32.gmra.mxu2 %vm508_vm1, %v494_v39 }
  0xd1   : > { %784 = vmatmul.msk.f32.gmra.mxu2 %vm508_vm1, %v495_v42 }
 0x116   : > { %v550_v45 = vpop.f32.mrf.mxu1 }
 0x117   : > { %v551_v46 = vadd.f32 %v1055_v43, %v550_v45 }
 0x119   : > { %v578_v49 = vmul.f32 %v1064_v44, %v551_v46  ;;  %v603_v50 = vadd.f32 %v551_v46, %v1002_v2 }
 0x11b   : > { %v586_v55 = vadd.f32 %v578_v49, %v408_v48  ;;  %v614_v56 = vmul.f32 %v1070_v47, %v603_v50 }
 0x11d   : > { %622 = vst.msk [vmem:[%s1078_s21] sm:$0xff] %vm422_vm0, %v614_v56 }
 0x11e   : > { %v553_v60 = vpop.f32.mrf.mxu1  ;;  %594 = vst.msk [vmem:[%s1084_s25] sm:$0xff] %vm422_vm0, %v586_v55 }
 0x11f   : > { %v554_v61 = vadd.f32 %v1055_v43, %v553_v60 }
 0x121   : > { %v579_v62 = vmul.f32 %v1064_v44, %v554_v61  ;;  %v604_v63 = vadd.f32 %v554_v61, %v1012_v7 }
 0x123   : > { %v587_v0 = vadd.f32 %v579_v62, %v409_v51  ;;  %v615_v1 = vmul.f32 %v1070_v47, %v604_v63 }
 0x125   : > { %623 = vst.msk [vmem:[%s1078_s21 + $0x8] sm:$0xff] %vm422_vm0, %v615_v1 }
 0x126   : > { %v556_v2 = vpop.f32.mrf.mxu1  ;;  %595 = vst.msk [vmem:[%s1084_s25 + $0x8] sm:$0xff] %vm422_vm0, %v587_v0 }
 0x127   : > { %v557_v4 = vadd.f32 %v1055_v43, %v556_v2 }
 0x129   : > { %v580_v5 = vmul.f32 %v1064_v44, %v557_v4  ;;  %v605_v6 = vadd.f32 %v557_v4, %v1022_v11 }
 0x12b   : > { %v588_v8 = vadd.f32 %v580_v5, %v410_v52  ;;  %v616_v10 = vmul.f32 %v1070_v47, %v605_v6 }
 0x12d   : > { %624 = vst.msk [vmem:[%s1078_s21 + $0x10] sm:$0xff] %vm422_vm0, %v616_v10 }
 0x12e   : > { %v559_v7 = vpop.f32.mrf.mxu1  ;;  %596 = vst.msk [vmem:[%s1084_s25 + $0x10] sm:$0xff] %vm422_vm0, %v588_v8 }
 0x12f   : > { %v560_v15 = vadd.f32 %v1055_v43, %v559_v7 }
 0x131   : > { %v581_v16 = vmul.f32 %v1064_v44, %v560_v15  ;;  %v606_v17 = vadd.f32 %v560_v15, %v1032_v13 }
 0x133   : > { %v589_v18 = vadd.f32 %v581_v16, %v411_v53  ;;  %v617_v19 = vmul.f32 %v1070_v47, %v606_v17 }
 0x135   : > { %625 = vst.msk [vmem:[%s1078_s21 + $0x18] sm:$0xff] %vm422_vm0, %v617_v19 }
 0x136   : > { %597 = vst.msk [vmem:[%s1084_s25 + $0x18] sm:$0xff] %vm422_vm0, %v589_v18 }
 0x13c   : > { %v562_v11 = vpop.f32.mrf.mxu2 }
 0x13d   : > { %v563_v20 = vadd.f32 %v1055_v43, %v562_v11 }
 0x13f   : > { %v582_v21 = vmul.f32 %v1064_v44, %v563_v20  ;;  %v607_v22 = vadd.f32 %v563_v20, %v1037_v14 }
 0x141   : > { %v590_v23 = vadd.f32 %v582_v21, %v412_v54  ;;  %v618_v24 = vmul.f32 %v1070_v47, %v607_v22 }
 0x143   : > { %626 = vst.msk [vmem:[%s1078_s21 + $0x20] sm:$0xff] %vm422_vm0, %v618_v24 }
 0x144   : > { %v565_v13 = vpop.f32.mrf.mxu2  ;;  %598 = vst.msk [vmem:[%s1084_s25 + $0x20] sm:$0xff] %vm422_vm0, %v590_v23 }
 0x145   : > { %v566_v25 = vadd.f32 %v1055_v43, %v565_v13 }
 0x147   : > { %v583_v26 = vmul.f32 %v1064_v44, %v566_v25  ;;  %v608_v27 = vadd.f32 %v566_v25, %v1007_v3 }
 0x149   : > { %v591_v28 = vadd.f32 %v583_v26, %v413_v57  ;;  %v619_v29 = vmul.f32 %v1070_v47, %v608_v27 }
 0x14b   : > { %627 = vst.msk [vmem:[%s1078_s21 + $0x28] sm:$0xff] %vm422_vm0, %v619_v29 }
 0x14c   : > { %v568_v14 = vpop.f32.mrf.mxu2  ;;  %599 = vst.msk [vmem:[%s1084_s25 + $0x28] sm:$0xff] %vm422_vm0, %v591_v28 }
 0x14d   : > { %v569_v30 = vadd.f32 %v1055_v43, %v568_v14 }
 0x14f   : > { %v584_v31 = vmul.f32 %v1064_v44, %v569_v30  ;;  %v609_v32 = vadd.f32 %v569_v30, %v1015_v9 }
 0x151   : > { %v592_v33 = vadd.f32 %v584_v31, %v414_v58  ;;  %v620_v34 = vmul.f32 %v1070_v47, %v609_v32 }
 0x153   : > { %628 = vst.msk [vmem:[%s1078_s21 + $0x30] sm:$0xff] %vm422_vm0, %v620_v34 }
 0x154   : > { %v571_v3 = vpop.f32.mrf.mxu2  ;;  %600 = vst.msk [vmem:[%s1084_s25 + $0x30] sm:$0xff] %vm422_vm0, %v592_v33 }
 0x155   : > { %v572_v35 = vadd.f32 %v1055_v43, %v571_v3 }
 0x157   : > { %v585_v36 = vmul.f32 %v1064_v44, %v572_v35  ;;  %v610_v37 = vadd.f32 %v572_v35, %v1025_v12 }
 0x159   : > { %v593_v38 = vadd.f32 %v585_v36, %v415_v59  ;;  %v621_v39 = vmul.f32 %v1070_v47, %v610_v37 }
 0x15b   : > { %601 = vst.msk [vmem:[%s1084_s25 + $0x38] sm:$0xff] %vm422_vm0, %v593_v38 }
 0x15c   : > { %629 = vst.msk [vmem:[%s1078_s21 + $0x38] sm:$0xff] %vm422_vm0, %v621_v39 }
 0x15d PF: > { %s22_s30 = sadd.s32 1, %s910_s30  }
 0x15e   : > { %p19_p7 = scmp.ge.s32.totalorder %s22_s30, 4  }
 0x160   :  { %21 = sbr.rel (!%p19_p7) target bundleno = 2 (0x2), region = 106 }
 0x165   :  { %667 = vsyncpa [#allocation3], 1 }
 0x166   :  { %669 = vsyncpa [#allocation3 + $0x1], 1 }
 0x167   :  { %670 = vsyncpa [#allocation5], 1 }

// kernel: run.5
= control target key start
LH: loop header
LB: loop body
LE: loop exit
PB: predicated region body
PF: predicated region fallthrough
CT: control target
= control target key end

     0   :  { %11 = vsyncpa [#allocation3], 0  ;;  %s896_s0 = inlined_call_operand.hbm [shape: f32[2,64,32], index: 0, kind: input, shape index: {}]   ;;  %s897_s1 = inlined_call_operand.hbm [shape: f32[32,16], index: 1, kind: input, shape index: {}]   ;;  %s898_s2 = inlined_call_operand.vmem [shape: f32[1,16], index: 2, kind: input, shape index: {}]   ;;  %s899_s3 = inlined_call_operand.vmem [shape: f32[1,16], index: 3, kind: input, shape index: {}]   ;;  %s900_s4 = inlined_call_operand.vmem [shape: f32[2,64,16], index: 4, kind: output, shape index: {0}]   ;;  %s901_s5 = inlined_call_operand.vmem [shape: f32[2,64,16], index: 5, kind: output, shape index: {1}]  }
   0x1   :  { %13 = vsyncpa [#allocation3 + $0x1], 0 }
   0x2   :  { %14 = vsyncpa [#allocation5], 0  ;;  %s724_s18 = smov 0   ;;  %s726_s19 = smov 0  }
   0x3   :  { %s728_s20 = smov 0   ;;  %s730_s21 = smov 0  }
   0x4 LB: > { %s743_s22 = sadd.s32 4294967295, %s689_s21   ;;  %p40_p0 = scmp.ne.s32.totalorder %s681_s19, %s677_s18  ;;  %s689_s21 = sphi %s730_s21, %s908_s21   ;;  %s685_s20 = sphi %s728_s20, %s907_s20   ;;  %s681_s19 = sphi %s726_s19, %s906_s19   ;;  %s677_s18 = sphi %s724_s18, %s905_s18  }
   0x5   : > { %p41_p1 = scmp.eq.s32.totalorder %s743_s22, 0  ;;  %p499_p2 = scmp.ge.s32.totalorder %s689_s21, 1 }
   0x6   : > { %p166_p3 = scmp.lt.s32.totalorder %s689_s21, 3  ;;  %s177_s26 = sshll.u32 %s897_s1, 4  ;;  %s178_s26 = int_to_ptr.hbm [resolvable:$true] %s177_s26 }
   0x7   : > { %p751_p4 = por %p41_p1, %p40_p0  ;;  %s691_s28 = smov [#allocation4]  }
   0x8   : > { %p758_p5 = pnand %p499_p2, %p166_p3  ;;  %s179_s29 = sshll.u32 %s691_s28, 4  ;;  %s180_s29 = int_to_ptr.vmem [resolvable:$true] %s179_s29 }
   0x9   : > { %s767_s30 = sadd.s32 1, %s689_s21   ;;  %s692_s6 = smov 128  }
   0xa   : > { %p543_p6 = pneg %p758_p5  ;;  %s693_s7 = smov 8  }
   0xb   : > { %s24_s8 = ssub.s32 %s689_s21, %s767_s30  ;;  %s27_s9 = sadd.s32 1, %s685_s20 }
   0xc   : > { %p544_p7 = pnand %p543_p6, %p41_p1  ;;  %p25_p8 = scmp.eq.s32.totalorder %s24_s8, 0 }
   0xd   : > { %p34_p9 = scmp.ne.s32.totalorder %s685_s20, %s681_s19  ;;  %p35_p10 = scmp.eq.s32.totalorder %s689_s21, 0 }
   0xe   : > { %546 = dma.hbm_to_vmem [thread:$0]  (!%p544_p7), %s178_s26, 512, %s180_s29, [#allocation5], %s692_s6, %s692_s6, %s693_s7  }
   0xf   : > { %p552_p11 = scmp.lt.s32.totalorder %s689_s21, 2  ;;  %p36_p12 = por %p35_p10, %p34_p9 }
  0x10   : > { %s780_s10 = scalar_select %p25_p8, %s685_s20, %s27_s9  }
  0x11   : > { %s199_s11 = sand.u32 1, %s685_s20   ;;  %s522_s13 = sshll.u32 %s689_s21, 6 }
  0x12   : > { %s502_s12 = sshll.u32 %s199_s11, 6  ;;  %s208_s16 = scalar_lea.hbm %s896_s0, %s522_s13 }
  0x13   : > { %s203_s17 = scalar_lea.vmem [#allocation2], %s502_s12  ;;  %s209_s24 = sshll.u32 %s208_s16, 4  ;;  %s210_s24 = int_to_ptr.hbm [resolvable:$true] %s209_s24 }
  0x14   : > { %s211_s18 = sshll.u32 %s203_s17, 4  ;;  %p787_p13 = pnand %p552_p11, %p36_p12  ;;  %s212_s18 = int_to_ptr.vmem [resolvable:$true] %s211_s18 }
  0x15   : > { %s200_s26 = scalar_lea.sflag [#allocation3], %s199_s11  ;;  %s621_s28 = sshra.s32 %s210_s24, 4  ;;  %s622_s28 = int_to_ptr.hbm [resolvable:$true] %s621_s28 }
  0x16   : > { %s623_s29 = scalar_lea.hbm %s622_s28, 64  ;;  %p625_p2 = pneg %p787_p13 }
  0x17   : > { %p624_p0 = scmp.ne.s32.totalorder %s622_s28, %s623_s29  ;;  %s628_s9 = scalar_lea.hbm %s896_s0, 128 }
  0x18   : > { %p629_p7 = scmp.lt.s32.totalorder %s622_s28, %s896_s0  ;;  %p630_p8 = scmp.lt.s32.totalorder %s628_s9, %s623_s29 }
  0x19   : > { %p626_p3 = pnand %p625_p2, %p624_p0 }
  0x1a   : > { %p631_p9 = por %p630_p8, %p629_p7 }
  0x1b   : > { %p627_p6 = pneg %p626_p3 }
  0x1d   : > { %p632_p10 = pnand %p631_p9, %p627_p6 }
  0x1f   : > { %635 = shalt.err (!%p632_p10)
}
  0x20   : > { %550 = dma.hbm_to_vmem [thread:$0]  (!%p787_p13), %s210_s24, 1024, %s212_s18, %s200_s26, %s692_s6, %s692_s6, %s693_s7  }
  0x21   : > { %223 = sbr.rel (%p758_p5) target bundleno = 195 (0xc3), region = 36  ;;  %s225_s11 = sand.u32 (!%p758_p5), 1, %s681_s19  }
  0x22   : > { %s506_s14 = sshll.u32 (!%p758_p5), %s225_s11, 6  ;;  %s226_s15 = scalar_lea.sflag (!%p758_p5), [#allocation3], %s225_s11 }
  0x23   : > { %s807_s16 = scalar_lea.vmem (!%p758_p5), [#allocation2], %s506_s14 }
  0x26   : > { %668 = dma.done.wait (%p751_p4), %s226_s15, 1024  }
  0x27   : > { %670 = vsyncadd (%p751_p4), %s226_s15, 4294966272 }
  0x28   : > { %672 = dma.done.wait (%p41_p1), [#allocation5], 512  }
  0x29   : > { %674 = vsyncadd (%p41_p1), [#allocation5], 4294966784  ;;  %v288_v0 = vld [vmem:[#allocation4 + $0x18] sm:$0xff]  ;;  %v287_v1 = vld [vmem:[#allocation4 + $0x10] sm:$0xff]  ;;  %vm293_vm0 = vcmask 261120   ;;  %p267_p1 = scmp.lt.s32.totalorder %s743_s22, 1 }
  0x2a   : > { %526 = vmatpush.msra.mxu2 %v288_v0  ;;  %527 = vmatpush.msra.mxu3 %v288_v0  ;;  %v286_v2 = vld [vmem:[#allocation4 + $0x8] sm:$0xff]  ;;  %v285_v3 = vld [vmem:[#allocation4] sm:$0xff]  ;;  %v283_v5 = vld [vmem:[%s807_s16 + $0x30] sm:$0xff]  ;;  %vm359_vm1 = vcmask 130048  }
  0x2b   : > { %330 = vmatpush.msra.mxu0 %v288_v0  ;;  %525 = vmatpush.msra.mxu1 %v288_v0  ;;  %v281_v4 = vld [vmem:[%s807_s16 + $0x20] sm:$0xff]  ;;  %v279_v7 = vld [vmem:[%s807_s16 + $0x10] sm:$0xff]  ;;  %v282_v8 = vld [vmem:[%s807_s16 + $0x28] sm:$0xff]  ;;  %s910_s22 = smov (!%p267_p1, %s743_s22), 1 }
  0x2c   : > { %529 = vmatpush.msra.mxu2 %v287_v1  ;;  %530 = vmatpush.msra.mxu3 %v287_v1  ;;  %v277_v6 = vld [vmem:[%s807_s16] sm:$0xff]  ;;  %v284_v9 = vld [vmem:[%s807_s16 + $0x38] sm:$0xff]  ;;  %v278_v10 = vld [vmem:[%s807_s16 + $0x8] sm:$0xff]  ;;  %s523_s23 = sshll.u32 %s910_s22, 6 }
  0x2d   : > { %331 = vmatpush.msra.mxu0 %v287_v1  ;;  %528 = vmatpush.msra.mxu1 %v287_v1  ;;  %v280_v11 = vld [vmem:[%s807_s16 + $0x18] sm:$0xff]  ;;  %v589_v12 = vld [vmem:[%s898_s2] ss:$0 sm:$0xff]  ;;  %s844_s25 = scalar_lea.vmem %s900_s4, %s523_s23  ;;  %s849_s28 = scalar_lea.vmem %s901_s5, %s523_s23 }
  0x2e   : > { %532 = vmatpush.msra.mxu2 %v286_v2  ;;  %533 = vmatpush.msra.mxu3 %v286_v2  ;;  %v590_v13 = vld [vmem:[%s899_s3] ss:$0 sm:$0xff] }
  0x2f   : > { %332 = vmatpush.msra.mxu0 %v286_v2  ;;  %531 = vmatpush.msra.mxu1 %v286_v2 }
  0x30   : > { %535 = vmatpush.msra.mxu2 %v285_v3  ;;  %536 = vmatpush.msra.mxu3 %v285_v3 }
  0x31   : > { %516 = vmatmul.msk.f32.vlgmr.msra.gmra.mxu2 %vm293_vm0, %v281_v4  ;;  %518 = vmatmul.msk.f32.vlgmr.msra.gmra.mxu3 %vm293_vm0, %v283_v5 }
  0x32   : > { %333 = vmatpush.msra.mxu0 %v285_v3  ;;  %534 = vmatpush.msra.mxu1 %v285_v3 }
  0x33   : > { %512 = vmatmul.msk.f32.vlgmr.msra.gmra.mxu0 %vm293_vm0, %v277_v6  ;;  %514 = vmatmul.msk.f32.vlgmr.msra.gmra.mxu1 %vm293_vm0, %v279_v7 }
  0x39   : > { %517 = vmatmul.msk.f32.gmra.mxu2 %vm293_vm0, %v282_v8  ;;  %519 = vmatmul.msk.f32.gmra.mxu3 %vm293_vm0, %v284_v9 }
  0x3b   : > { %513 = vmatmul.msk.f32.gmra.mxu0 %vm293_vm0, %v278_v10  ;;  %515 = vmatmul.msk.f32.gmra.mxu1 %vm293_vm0, %v280_v11 }
  0xb0   : > { %v335_v14 = vpop.f32.mrf.mxu0  ;;  %v341_v15 = vpop.f32.mrf.mxu1 }
  0xb1   : > { %v336_v16 = vadd.f32 %v589_v12, %v335_v14  ;;  %v342_v17 = vadd.f32 %v589_v12, %v341_v15 }
  0xb3   : > { %360 = vst.msk [vmem:[%s844_s25] sm:$0xff] %vm359_vm1, %v336_v16  ;;  %v372_v18 = vmul.f32 %v590_v13, %v336_v16  ;;  %v374_v19 = vmul.f32 %v590_v13, %v342_v17 }
  0xb4   : > { %362 = vst.msk [vmem:[%s844_s25 + $0x10] sm:$0xff] %vm359_vm1, %v342_v17  ;;  %v347_v20 = vpop.f32.mrf.mxu2  ;;  %v353_v21 = vpop.f32.mrf.mxu3 }
  0xb5   : > { %380 = vst.msk [vmem:[%s849_s28] sm:$0xff] %vm359_vm1, %v372_v18  ;;  %v348_v22 = vadd.f32 %v589_v12, %v347_v20  ;;  %v354_v23 = vadd.f32 %v589_v12, %v353_v21 }
  0xb6   : > { %382 = vst.msk [vmem:[%s849_s28 + $0x10] sm:$0xff] %vm359_vm1, %v374_v19 }
  0xb7   : > { %364 = vst.msk [vmem:[%s844_s25 + $0x20] sm:$0xff] %vm359_vm1, %v348_v22  ;;  %v376_v24 = vmul.f32 %v590_v13, %v348_v22  ;;  %v378_v25 = vmul.f32 %v590_v13, %v354_v23 }
  0xb8   : > { %366 = vst.msk [vmem:[%s844_s25 + $0x30] sm:$0xff] %vm359_vm1, %v354_v23  ;;  %v338_v26 = vpop.f32.mrf.mxu0  ;;  %v344_v27 = vpop.f32.mrf.mxu1 }
  0xb9   : > { %384 = vst.msk [vmem:[%s849_s28 + $0x20] sm:$0xff] %vm359_vm1, %v376_v24  ;;  %v339_v28 = vadd.f32 %v589_v12, %v338_v26  ;;  %v345_v29 = vadd.f32 %v589_v12, %v344_v27 }
  0xba   : > { %386 = vst.msk [vmem:[%s849_s28 + $0x30] sm:$0xff] %vm359_vm1, %v378_v25 }
  0xbb   : > { %361 = vst.msk [vmem:[%s844_s25 + $0x8] sm:$0xff] %vm359_vm1, %v339_v28  ;;  %v373_v30 = vmul.f32 %v590_v13, %v339_v28  ;;  %v375_v31 = vmul.f32 %v590_v13, %v345_v29 }
  0xbc   : > { %363 = vst.msk [vmem:[%s844_s25 + $0x18] sm:$0xff] %vm359_vm1, %v345_v29  ;;  %v350_v32 = vpop.f32.mrf.mxu2  ;;  %v356_v33 = vpop.f32.mrf.mxu3 }
  0xbd   : > { %381 = vst.msk [vmem:[%s849_s28 + $0x8] sm:$0xff] %vm359_vm1, %v373_v30  ;;  %v351_v34 = vadd.f32 %v589_v12, %v350_v32  ;;  %v357_v35 = vadd.f32 %v589_v12, %v356_v33 }
  0xbe   : > { %383 = vst.msk [vmem:[%s849_s28 + $0x18] sm:$0xff] %vm359_vm1, %v375_v31 }
  0xbf   : > { %365 = vst.msk [vmem:[%s844_s25 + $0x28] sm:$0xff] %vm359_vm1, %v351_v34  ;;  %v377_v36 = vmul.f32 %v590_v13, %v351_v34  ;;  %v379_v37 = vmul.f32 %v590_v13, %v357_v35 }
  0xc0   : > { %367 = vst.msk [vmem:[%s844_s25 + $0x38] sm:$0xff] %vm359_vm1, %v357_v35 }
  0xc1   : > { %385 = vst.msk [vmem:[%s849_s28 + $0x28] sm:$0xff] %vm359_vm1, %v377_v36 }
  0xc2   : > { %387 = vst.msk [vmem:[%s849_s28 + $0x38] sm:$0xff] %vm359_vm1, %v379_v37 }
  0xc3 PF: > { %p17_p4 = scmp.ge.s32.totalorder %s767_s30, 4   ;;  %s905_s18 = smov %s681_s19 }
  0xc4   : > { %s906_s19 = smov %s685_s20  ;;  %s907_s20 = smov %s780_s10 }
  0xc5   : > { %s908_s21 = smov %s767_s30  ;;  %19 = sbr.rel (!%p17_p4) target bundleno = 4 (0x4), region = 92 }
  0xca   :  { %425 = vsyncpa [#allocation3], 1 }
  0xcb   :  { %427 = vsyncpa [#allocation3 + $0x1], 1 }
  0xcc   :  { %428 = vsyncpa [#allocation5], 1 }

// kernel: run.7
= control target key start
LH: loop header
LB: loop body
LE: loop exit
PB: predicated region body
PF: predicated region fallthrough
CT: control target
= control target key end

     0   :  { %15 = vsyncpa [#allocation3], 0  ;;  %s1150_s0 = inlined_call_operand.vmem [shape: f32[2,64,16], index: 0, kind: input, shape index: {}, may-alias: {0,9}]   ;;  %s1151_s1 = inlined_call_operand.vmem [shape: f32[2,64,16], index: 1, kind: input, shape index: {}, may-alias: {1,8}]   ;;  %s1152_s2 = inlined_call_operand.hbm [shape: f32[16,64], index: 2, kind: input, shape index: {}]   ;;  %s1153_s3 = inlined_call_operand.vmem [shape: f32[1,64], index: 3, kind: input, shape index: {}]   ;;  %s1154_s4 = inlined_call_operand.hbm [shape: f32[64,16], index: 4, kind: input, shape index: {}]   ;;  %s1155_s5 = inlined_call_operand.vmem [shape: f32[1,16], index: 5, kind: input, shape index: {}]   ;;  %s1156_s6 = inlined_call_operand.vmem [shape: f32[1,16], index: 6, kind: input, shape index: {}, may-alias: {6,7}]   ;;  %s1157_s7 = inlined_call_operand.vmem [shape: f32[1,16], index: 7, kind: input, shape index: {}, may-alias: {6,7}]   ;;  %s1158_s8 = inlined_call_operand.vmem [shape: f32[2,64,16], index: 8, kind: output, shape index: {0}, may-alias: {1,8}]   ;;  %s1159_s9 = inlined_call_operand.vmem [shape: f32[2,64,16], index: 9, kind: output, shape index: {1}, may-alias: {0,9}]  }
   0x1   :  { %16 = vsyncpa [#allocation5], 0  ;;  %s966_s30 = smov 0  }
   0x2 LB: > { %s268_s12 = sshll.u32 %s1152_s2, 4  ;;  %s752_s13 = sadd.s32 4294967295, %s910_s30   ;;  %s910_s30 = sphi %s966_s30, %s22_s30   ;;  %s269_s12 = int_to_ptr.hbm [resolvable:$true] %s268_s12 }
   0x3   : > { %p754_p0 = scmp.ge.s32.totalorder %s910_s30, 1  ;;  %p257_p1 = scmp.lt.s32.totalorder %s910_s30, 3 }
   0x4   : > { %p816_p2 = scmp.eq.s32.totalorder %s752_s13, 0  ;;  %s912_s15 = smov [#allocation2]  }
   0x5   : > { %p977_p3 = pnand %p754_p0, %p257_p1  ;;  %s270_s16 = sshll.u32 %s912_s15, 4  ;;  %s271_s16 = int_to_ptr.vmem [resolvable:$true] %s270_s16 }
   0x6   : > { %s285_s19 = sshll.u32 %s1154_s4, 4  ;;  %s913_s20 = smov [#allocation4]   ;;  %s286_s19 = int_to_ptr.hbm [resolvable:$true] %s285_s19 }
   0x7   : > { %p809_p4 = pneg %p977_p3  ;;  %s287_s21 = sshll.u32 %s913_s20, 4  ;;  %s288_s21 = int_to_ptr.vmem [resolvable:$true] %s287_s21 }
   0x8   : > { %s914_s22 = smov 128   ;;  %s915_s23 = smov 8  }
   0x9   : > { %p810_p5 = pnand %p816_p2, %p809_p4  ;;  %328 = sbr.rel (%p977_p3) target bundleno = 349 (0x15d), region = 52 }
   0xb   : > { %812 = dma.hbm_to_vmem [thread:$0]  (!%p810_p5), %s269_s12, 256, %s271_s16, [#allocation3], %s914_s22, %s914_s22, %s915_s23  }
   0xc   : > { %815 = dma.hbm_to_vmem [thread:$0]  (!%p810_p5), %s286_s19, 1024, %s288_s21, [#allocation5], %s914_s22, %s914_s22, %s915_s23  }
   0xe   : > { %901 = dma.done.wait (%p816_p2), [#allocation3], 256  }
   0xf   : > { %903 = vsyncadd (%p816_p2), [#allocation3], 4294967040 }
  0x10   : > { %905 = dma.done.wait (%p816_p2), [#allocation5], 1024  }
  0x11   : > { %907 = vsyncadd (%p816_p2), [#allocation5], 4294966272  ;;  %p380_p6 = scmp.lt.s32.totalorder %s752_s13, 1  ;;  %v417_v0 = vld [vmem:[#allocation2 + $0x8] sm:$0xff]  ;;  %v416_v1 = vld [vmem:[#allocation2] sm:$0xff]  ;;  %vm422_vm0 = vcmask 130048  }
  0x12   : > { %461 = vmatpush.msra.mxu0 %v417_v0  ;;  %791 = vmatpush.msra.mxu3 %v417_v0  ;;  %v503_v4 = vld [vmem:[#allocation4 + $0x38] sm:$0xff]  ;;  %v502_v5 = vld [vmem:[#allocation4 + $0x30] sm:$0xff]  ;;  %v501_v6 = vld [vmem:[#allocation4 + $0x28] sm:$0xff]  ;;  %vm508_vm1 = vcmask 523264  }
  0x13   : > { %s1162_s13 = smov (!%p380_p6, %s752_s13), 1  ;;  %541 = vmatpush.msra.mxu1 %v503_v4  ;;  %793 = vmatpush.msra.mxu2 %v503_v4  ;;  %v500_v8 = vld [vmem:[#allocation4 + $0x20] sm:$0xff]  ;;  %v499_v10 = vld [vmem:[#allocation4 + $0x18] sm:$0xff]  ;;  %v498_v15 = vld [vmem:[#allocation4 + $0x10] sm:$0xff] }
  0x14   : > { %s993_s24 = sshll.u32 %s1162_s13, 6  ;;  %462 = vmatpush.msra.mxu0 %v416_v1  ;;  %792 = vmatpush.msra.mxu3 %v416_v1  ;;  %v497_v16 = vld [vmem:[#allocation4 + $0x8] sm:$0xff]  ;;  %v496_v17 = vld [vmem:[#allocation4] sm:$0xff]  ;;  %v832_v18 = vld [vmem:[%s1153_s3] ss:$0 sm:$0xff] }
  0x15   : > { %s999_s27 = scalar_lea.vmem %s1150_s0, %s993_s24  ;;  %542 = vmatpush.msra.mxu1 %v502_v5  ;;  %794 = vmatpush.msra.mxu2 %v502_v5  ;;  %v1055_v43 = vld [vmem:[%s1155_s5] ss:$0 sm:$0xff]  ;;  %s389_s14 = scalar_lea.vmem %s1151_s1, %s993_s24 }
  0x16   : > { %v1002_v2 = vld [vmem:[%s999_s27] sm:$0xff]  ;;  %v1007_v3 = vld [vmem:[%s999_s27 + $0x28] sm:$0xff]  ;;  %v1015_v9 = vld [vmem:[%s999_s27 + $0x30] sm:$0xff]  ;;  %s1078_s21 = scalar_lea.vmem %s1159_s9, %s993_s24  ;;  %s1084_s25 = scalar_lea.vmem %s1158_s8, %s993_s24 }
  0x17   : > { %769 = vmatmul.msk.f32.vlgmr.msra.gmra.mxu0 %vm422_vm0, %v1002_v2  ;;  %774 = vmatmul.msk.f32.vlgmr.msra.gmra.mxu3 %vm422_vm0, %v1007_v3  ;;  %v1012_v7 = vld [vmem:[%s999_s27 + $0x8] sm:$0xff]  ;;  %v1022_v11 = vld [vmem:[%s999_s27 + $0x10] sm:$0xff]  ;;  %v1025_v12 = vld [vmem:[%s999_s27 + $0x38] sm:$0xff] }
  0x18   : > { %543 = vmatpush.msra.mxu1 %v501_v6  ;;  %795 = vmatpush.msra.mxu2 %v501_v6  ;;  %v1032_v13 = vld [vmem:[%s999_s27 + $0x18] sm:$0xff]  ;;  %v1037_v14 = vld [vmem:[%s999_s27 + $0x20] sm:$0xff]  ;;  %v409_v51 = vld [vmem:[%s389_s14 + $0x8] sm:$0xff] }
  0x19   : > { %v1064_v44 = vld [vmem:[%s1156_s6] ss:$0 sm:$0xff]  ;;  %v410_v52 = vld [vmem:[%s389_s14 + $0x10] sm:$0xff]  ;;  %v411_v53 = vld [vmem:[%s389_s14 + $0x18] sm:$0xff] }
  0x1a   : > { %544 = vmatpush.msra.mxu1 %v500_v8  ;;  %796 = vmatpush.msra.mxu2 %v500_v8  ;;  %v1070_v47 = vld [vmem:[%s1157_s7] ss:$0 sm:$0xff]  ;;  %v413_v57 = vld [vmem:[%s389_s14 + $0x28] sm:$0xff]  ;;  %v414_v58 = vld [vmem:[%s389_s14 + $0x30] sm:$0xff] }
  0x1b   : > { %v408_v48 = vld [vmem:[%s389_s14] sm:$0xff]  ;;  %v415_v59 = vld [vmem:[%s389_s14 + $0x38] sm:$0xff] }
  0x1c   : > { %545 = vmatpush.msra.mxu1 %v499_v10  ;;  %797 = vmatpush.msra.mxu2 %v499_v10  ;;  %v412_v54 = vld [vmem:[%s389_s14 + $0x20] sm:$0xff] }
  0x1e   : > { %546 = vmatpush.msra.mxu1 %v498_v15  ;;  %798 = vmatpush.msra.mxu2 %v498_v15 }
  0x1f   : > { %770 = vmatmul.msk.f32.gmra.mxu0 %vm422_vm0, %v1012_v7  ;;  %775 = vmatmul.msk.f32.gmra.mxu3 %vm422_vm0, %v1015_v9 }
  0x20   : > { %547 = vmatpush.msra.mxu1 %v497_v16  ;;  %799 = vmatpush.msra.mxu2 %v497_v16 }
  0x22   : > { %548 = vmatpush.msra.mxu1 %v496_v17  ;;  %800 = vmatpush.msra.mxu2 %v496_v17 }
  0x27   : > { %771 = vmatmul.msk.f32.gmra.mxu0 %vm422_vm0, %v1022_v11  ;;  %776 = vmatmul.msk.f32.gmra.mxu3 %vm422_vm0, %v1025_v12 }
  0x2f   : > { %772 = vmatmul.msk.f32.gmra.mxu0 %vm422_vm0, %v1032_v13 }
  0x37   : > { %773 = vmatmul.msk.f32.gmra.mxu0 %vm422_vm0, %v1037_v14 }
  0x94   : > { %v464_v19 = vpop.f32.mrf.mxu0 }
  0x95   : > { %v465_v20 = vadd.f32 %v832_v18, %v464_v19 }
  0x97   : > { %v488_v21 = vmax.f32 %v465_v20, 0.0 }
  0x99   : > { %777 = vmatmul.msk.f32.vlgmr.msra.gmra.mxu1 %vm508_vm1, %v488_v21 }
  0x9a   : > { %v479_v31 = vpop.f32.mrf.mxu3 }
  0x9b   : > { %v480_v35 = vadd.f32 %v832_v18, %v479_v31 }
  0x9c   : > { %v467_v22 = vpop.f32.mrf.mxu0 }
  0x9d   : > { %v468_v23 = vadd.f32 %v832_v18, %v467_v22  ;;  %v493_v37 = vmax.f32 %v480_v35, 0.0 }
  0x9f   : > { %v489_v24 = vmax.f32 %v468_v23, 0.0 }
  0xa1   : > { %778 = vmatmul.msk.f32.gmra.mxu1 %vm508_vm1, %v489_v24 }
  0xa2   : > { %v482_v36 = vpop.f32.mrf.mxu3 }
  0xa3   : > { %v483_v38 = vadd.f32 %v832_v18, %v482_v36 }
  0xa4   : > { %v470_v25 = vpop.f32.mrf.mxu0 }
  0xa5   : > { %v471_v26 = vadd.f32 %v832_v18, %v470_v25  ;;  %v494_v39 = vmax.f32 %v483_v38, 0.0 }
  0xa7   : > { %v490_v27 = vmax.f32 %v471_v26, 0.0 }
  0xa9   : > { %779 = vmatmul.msk.f32.gmra.mxu1 %vm508_vm1, %v490_v27 }
  0xaa   : > { %v485_v40 = vpop.f32.mrf.mxu3 }
  0xab   : > { %v486_v41 = vadd.f32 %v832_v18, %v485_v40 }
  0xac   : > { %v473_v28 = vpop.f32.mrf.mxu0 }
  0xad   : > { %v474_v29 = vadd.f32 %v832_v18, %v473_v28  ;;  %v495_v42 = vmax.f32 %v486_v41, 0.0 }
  0xaf   : > { %v491_v30 = vmax.f32 %v474_v29, 0.0 }
  0xb1   : > { %780 = vmatmul.msk.f32.gmra.mxu1 %vm508_vm1, %v491_v30 }
  0xb4   : > { %v476_v32 = vpop.f32.mrf.mxu0 }
  0xb5   : > { %v477_v33 = vadd.f32 %v832_v18, %v476_v32 }
  0xb7   : > { %v492_v34 = vmax.f32 %v477_v33, 0.0 }
  0xb9   : > { %781 = vmatmul.msk.f32.vlgmr.msra.gmra.mxu2 %vm508_vm1, %v492_v34 }
  0xc1   : > { %782 = vmatmul.msk.f32.gmra.mxu2 %vm508_vm1, %v493_v37 }
  0xc9   : > { %783 = vmatmul.msk.f32.gmra.mxu2 %vm508_vm1, %v494_v39 }
  0xd1   : > { %784 = vmatmul.msk.f32.gmra.mxu2 %vm508_vm1, %v495_v42 }
 0x116   : > { %v550_v45 = vpop.f32.mrf.mxu1 }
 0x117   : > { %v551_v46 = vadd.f32 %v1055_v43, %v550_v45 }
 0x119   : > { %v578_v49 = vmul.f32 %v1064_v44, %v551_v46  ;;  %v603_v50 = vadd.f32 %v551_v46, %v1002_v2 }
 0x11b   : > { %v586_v55 = vadd.f32 %v578_v49, %v408_v48  ;;  %v614_v56 = vmul.f32 %v1070_v47, %v603_v50 }
 0x11d   : > { %622 = vst.msk [vmem:[%s1078_s21] sm:$0xff] %vm422_vm0, %v614_v56 }
 0x11e   : > { %v553_v60 = vpop.f32.mrf.mxu1  ;;  %594 = vst.msk [vmem:[%s1084_s25] sm:$0xff] %vm422_vm0, %v586_v55 }
 0x11f   : > { %v554_v61 = vadd.f32 %v1055_v43, %v553_v60 }
 0x121   : > { %v579_v62 = vmul.f32 %v1064_v44, %v554_v61  ;;  %v604_v63 = vadd.f32 %v554_v61, %v1012_v7 }
 0x123   : > { %v587_v0 = vadd.f32 %v579_v62, %v409_v51  ;;  %v615_v1 = vmul.f32 %v1070_v47, %v604_v63 }
 0x125   : > { %623 = vst.msk [vmem:[%s1078_s21 + $0x8] sm:$0xff] %vm422_vm0, %v615_v1 }
 0x126   : > { %v556_v2 = vpop.f32.mrf.mxu1  ;;  %595 = vst.msk [vmem:[%s1084_s25 + $0x8] sm:$0xff] %vm422_vm0, %v587_v0 }
 0x127   : > { %v557_v4 = vadd.f32 %v1055_v43, %v556_v2 }
 0x129   : > { %v580_v5 = vmul.f32 %v1064_v44, %v557_v4  ;;  %v605_v6 = vadd.f32 %v557_v4, %v1022_v11 }
 0x12b   : > { %v588_v8 = vadd.f32 %v580_v5, %v410_v52  ;;  %v616_v10 = vmul.f32 %v1070_v47, %v605_v6 }
 0x12d   : > { %624 = vst.msk [vmem:[%s1078_s21 + $0x10] sm:$0xff] %vm422_vm0, %v616_v10 }
 0x12e   : > { %v559_v7 = vpop.f32.mrf.mxu1  ;;  %596 = vst.msk [vmem:[%s1084_s25 + $0x10] sm:$0xff] %vm422_vm0, %v588_v8 }
 0x12f   : > { %v560_v15 = vadd.f32 %v1055_v43, %v559_v7 }
 0x131   : > { %v581_v16 = vmul.f32 %v1064_v44, %v560_v15  ;;  %v606_v17 = vadd.f32 %v560_v15, %v1032_v13 }
 0x133   : > { %v589_v18 = vadd.f32 %v581_v16, %v411_v53  ;;  %v617_v19 = vmul.f32 %v1070_v47, %v606_v17 }
 0x135   : > { %625 = vst.msk [vmem:[%s1078_s21 + $0x18] sm:$0xff] %vm422_vm0, %v617_v19 }
 0x136   : > { %597 = vst.msk [vmem:[%s1084_s25 + $0x18] sm:$0xff] %vm422_vm0, %v589_v18 }
 0x13c   : > { %v562_v11 = vpop.f32.mrf.mxu2 }
 0x13d   : > { %v563_v20 = vadd.f32 %v1055_v43, %v562_v11 }
 0x13f   : > { %v582_v21 = vmul.f32 %v1064_v44, %v563_v20  ;;  %v607_v22 = vadd.f32 %v563_v20, %v1037_v14 }
 0x141   : > { %v590_v23 = vadd.f32 %v582_v21, %v412_v54  ;;  %v618_v24 = vmul.f32 %v1070_v47, %v607_v22 }
 0x143   : > { %626 = vst.msk [vmem:[%s1078_s21 + $0x20] sm:$0xff] %vm422_vm0, %v618_v24 }
 0x144   : > { %v565_v13 = vpop.f32.mrf.mxu2  ;;  %598 = vst.msk [vmem:[%s1084_s25 + $0x20] sm:$0xff] %vm422_vm0, %v590_v23 }
 0x145   : > { %v566_v25 = vadd.f32 %v1055_v43, %v565_v13 }
 0x147   : > { %v583_v26 = vmul.f32 %v1064_v44, %v566_v25  ;;  %v608_v27 = vadd.f32 %v566_v25, %v1007_v3 }
 0x149   : > { %v591_v28 = vadd.f32 %v583_v26, %v413_v57  ;;  %v619_v29 = vmul.f32 %v1070_v47, %v608_v27 }
 0x14b   : > { %627 = vst.msk [vmem:[%s1078_s21 + $0x28] sm:$0xff] %vm422_vm0, %v619_v29 }
 0x14c   : > { %v568_v14 = vpop.f32.mrf.mxu2  ;;  %599 = vst.msk [vmem:[%s1084_s25 + $0x28] sm:$0xff] %vm422_vm0, %v591_v28 }
 0x14d   : > { %v569_v30 = vadd.f32 %v1055_v43, %v568_v14 }
 0x14f   : > { %v584_v31 = vmul.f32 %v1064_v44, %v569_v30  ;;  %v609_v32 = vadd.f32 %v569_v30, %v1015_v9 }
 0x151   : > { %v592_v33 = vadd.f32 %v584_v31, %v414_v58  ;;  %v620_v34 = vmul.f32 %v1070_v47, %v609_v32 }
 0x153   : > { %628 = vst.msk [vmem:[%s1078_s21 + $0x30] sm:$0xff] %vm422_vm0, %v620_v34 }
 0x154   : > { %v571_v3 = vpop.f32.mrf.mxu2  ;;  %600 = vst.msk [vmem:[%s1084_s25 + $0x30] sm:$0xff] %vm422_vm0, %v592_v33 }
 0x155   : > { %v572_v35 = vadd.f32 %v1055_v43, %v571_v3 }
 0x157   : > { %v585_v36 = vmul.f32 %v1064_v44, %v572_v35  ;;  %v610_v37 = vadd.f32 %v572_v35, %v1025_v12 }
 0x159   : > { %v593_v38 = vadd.f32 %v585_v36, %v415_v59  ;;  %v621_v39 = vmul.f32 %v1070_v47, %v610_v37 }
 0x15b   : > { %601 = vst.msk [vmem:[%s1084_s25 + $0x38] sm:$0xff] %vm422_vm0, %v593_v38 }
 0x15c   : > { %629 = vst.msk [vmem:[%s1078_s21 + $0x38] sm:$0xff] %vm422_vm0, %v621_v39 }
 0x15d PF: > { %s22_s30 = sadd.s32 1, %s910_s30  }
 0x15e   : > { %p19_p7 = scmp.ge.s32.totalorder %s22_s30, 4  }
 0x160   :  { %21 = sbr.rel (!%p19_p7) target bundleno = 2 (0x2), region = 106 }
 0x165   :  { %667 = vsyncpa [#allocation3], 1 }
 0x166   :  { %669 = vsyncpa [#allocation3 + $0x1], 1 }
 0x167   :  { %670 = vsyncpa [#allocation5], 1 }

// kernel: run.9
= control target key start
LH: loop header
LB: loop body
LE: loop exit
PB: predicated region body
PF: predicated region fallthrough
CT: control target
= control target key end

     0   :  { %15 = vsyncpa [#allocation3], 0  ;;  %s892_s30 = smov 0   ;;  %s1066_s0 = inlined_call_operand.vmem [shape: f32[2,64,16], index: 0, kind: input, shape index: {}, may-alias: {0,9}]   ;;  %s1067_s1 = inlined_call_operand.vmem [shape: f32[2,64,16], index: 1, kind: input, shape index: {}, may-alias: {1,8}]   ;;  %s1068_s2 = inlined_call_operand.vmem [shape: f32[16,64], index: 2, kind: input, shape index: {}]   ;;  %s1069_s3 = inlined_call_operand.vmem [shape: f32[1,64], index: 3, kind: input, shape index: {}]   ;;  %s1070_s4 = inlined_call_operand.hbm [shape: f32[64,16], index: 4, kind: input, shape index: {}]   ;;  %s1071_s5 = inlined_call_operand.vmem [shape: f32[1,16], index: 5, kind: input, shape index: {}]   ;;  %s1072_s6 = inlined_call_operand.vmem [shape: f32[1,16], index: 6, kind: input, shape index: {}, may-alias: {6,7}]   ;;  %s1073_s7 = inlined_call_operand.vmem [shape: f32[1,16], index: 7, kind: input, shape index: {}, may-alias: {6,7}]   ;;  %s1074_s8 = inlined_call_operand.vmem [shape: f32[2,64,16], index: 8, kind: output, shape index: {0}, may-alias: {1,8}]   ;;  %s1075_s9 = inlined_call_operand.vmem [shape: f32[2,64,16], index: 9, kind: output, shape index: {1}, may-alias: {0,9}]  }
   0x1 LB: > { %s273_s12 = sshll.u32 %s1070_s4, 4  ;;  %s725_s13 = sadd.s32 4294967295, %s837_s30   ;;  %s837_s30 = sphi %s892_s30, %s21_s30   ;;  %s274_s12 = int_to_ptr.hbm [resolvable:$true] %s273_s12 }
   0x2   : > { %p727_p0 = scmp.ge.s32.totalorder %s837_s30, 1  ;;  %p256_p1 = scmp.lt.s32.totalorder %s837_s30, 3 }
   0x3   : > { %p780_p2 = scmp.eq.s32.totalorder %s725_s13, 0  ;;  %s839_s14 = smov [#allocation2]  }
   0x4   : > { %p257_p3 = pnand %p727_p0, %p256_p1  ;;  %s275_s15 = sshll.u32 %s839_s14, 4  ;;  %s276_s15 = int_to_ptr.vmem [resolvable:$true] %s275_s15 }
   0x5   : > { %s840_s16 = smov 128   ;;  %s841_s17 = smov 8  }
   0x6   : > { %p776_p4 = pneg %p257_p3  ;;  %316 = sbr.rel (%p257_p3) target bundleno = 344 (0x158), region = 52 }
   0x8   : > { %p777_p5 = pnand %p780_p2, %p776_p4 }
   0xa   : > { %779 = dma.hbm_to_vmem [thread:$0]  (!%p777_p5), %s274_s12, 1024, %s276_s15, [#allocation3], %s840_s16, %s840_s16, %s841_s17  }
   0xb   : > { %832 = dma.done.wait (%p780_p2), [#allocation3], 1024  }
   0xc   : > { %834 = vsyncadd (%p780_p2), [#allocation3], 4294966272  ;;  %p363_p6 = scmp.lt.s32.totalorder %s725_s13, 1  ;;  %v400_v0 = vld [vmem:[%s1068_s2 + $0x8] sm:$0xff]  ;;  %v399_v1 = vld [vmem:[%s1068_s2] sm:$0xff]  ;;  %vm405_vm0 = vcmask 130048  }
   0xd   : > { %444 = vmatpush.msra.mxu0 %v400_v0  ;;  %762 = vmatpush.msra.mxu3 %v400_v0  ;;  %v486_v4 = vld [vmem:[#allocation2 + $0x38] sm:$0xff]  ;;  %v485_v5 = vld [vmem:[#allocation2 + $0x30] sm:$0xff]  ;;  %v484_v6 = vld [vmem:[#allocation2 + $0x28] sm:$0xff]  ;;  %vm491_vm1 = vcmask 523264  }
   0xe   : > { %s1077_s13 = smov (!%p363_p6, %s725_s13), 1  ;;  %524 = vmatpush.msra.mxu1 %v486_v4  ;;  %764 = vmatpush.msra.mxu2 %v486_v4  ;;  %v483_v8 = vld [vmem:[#allocation2 + $0x20] sm:$0xff]  ;;  %v482_v10 = vld [vmem:[#allocation2 + $0x18] sm:$0xff]  ;;  %v481_v15 = vld [vmem:[#allocation2 + $0x10] sm:$0xff] }
   0xf   : > { %s903_s18 = sshll.u32 %s1077_s13, 6  ;;  %445 = vmatpush.msra.mxu0 %v399_v1  ;;  %763 = vmatpush.msra.mxu3 %v399_v1  ;;  %v480_v16 = vld [vmem:[#allocation2 + $0x8] sm:$0xff]  ;;  %v479_v17 = vld [vmem:[#allocation2] sm:$0xff] }
  0x10   : > { %s909_s21 = scalar_lea.vmem %s1066_s0, %s903_s18  ;;  %525 = vmatpush.msra.mxu1 %v485_v5  ;;  %765 = vmatpush.msra.mxu2 %v485_v5  ;;  %v793_v18 = vld [vmem:[%s1069_s3] ss:$0 sm:$0xff]  ;;  %s372_s12 = scalar_lea.vmem %s1067_s1, %s903_s18 }
  0x11   : > { %v918_v2 = vld [vmem:[%s909_s21] sm:$0xff]  ;;  %v923_v3 = vld [vmem:[%s909_s21 + $0x28] sm:$0xff]  ;;  %v931_v9 = vld [vmem:[%s909_s21 + $0x30] sm:$0xff]  ;;  %s994_s20 = scalar_lea.vmem %s1075_s9, %s903_s18  ;;  %s1000_s23 = scalar_lea.vmem %s1074_s8, %s903_s18 }
  0x12   : > { %740 = vmatmul.msk.f32.vlgmr.msra.gmra.mxu0 %vm405_vm0, %v918_v2  ;;  %745 = vmatmul.msk.f32.vlgmr.msra.gmra.mxu3 %vm405_vm0, %v923_v3  ;;  %v928_v7 = vld [vmem:[%s909_s21 + $0x8] sm:$0xff]  ;;  %v938_v11 = vld [vmem:[%s909_s21 + $0x10] sm:$0xff]  ;;  %v941_v12 = vld [vmem:[%s909_s21 + $0x38] sm:$0xff] }
  0x13   : > { %526 = vmatpush.msra.mxu1 %v484_v6  ;;  %766 = vmatpush.msra.mxu2 %v484_v6  ;;  %v948_v13 = vld [vmem:[%s909_s21 + $0x18] sm:$0xff]  ;;  %v953_v14 = vld [vmem:[%s909_s21 + $0x20] sm:$0xff]  ;;  %v392_v51 = vld [vmem:[%s372_s12 + $0x8] sm:$0xff] }
  0x14   : > { %v971_v43 = vld [vmem:[%s1071_s5] ss:$0 sm:$0xff]  ;;  %v393_v52 = vld [vmem:[%s372_s12 + $0x10] sm:$0xff]  ;;  %v394_v53 = vld [vmem:[%s372_s12 + $0x18] sm:$0xff] }
  0x15   : > { %527 = vmatpush.msra.mxu1 %v483_v8  ;;  %767 = vmatpush.msra.mxu2 %v483_v8  ;;  %v980_v44 = vld [vmem:[%s1072_s6] ss:$0 sm:$0xff]  ;;  %v396_v57 = vld [vmem:[%s372_s12 + $0x28] sm:$0xff]  ;;  %v397_v58 = vld [vmem:[%s372_s12 + $0x30] sm:$0xff] }
  0x16   : > { %v986_v47 = vld [vmem:[%s1073_s7] ss:$0 sm:$0xff]  ;;  %v398_v59 = vld [vmem:[%s372_s12 + $0x38] sm:$0xff] }
  0x17   : > { %528 = vmatpush.msra.mxu1 %v482_v10  ;;  %768 = vmatpush.msra.mxu2 %v482_v10  ;;  %v391_v48 = vld [vmem:[%s372_s12] sm:$0xff] }
  0x18   : > { %v395_v54 = vld [vmem:[%s372_s12 + $0x20] sm:$0xff] }
  0x19   : > { %529 = vmatpush.msra.mxu1 %v481_v15  ;;  %769 = vmatpush.msra.mxu2 %v481_v15 }
  0x1a   : > { %741 = vmatmul.msk.f32.gmra.mxu0 %vm405_vm0, %v928_v7  ;;  %746 = vmatmul.msk.f32.gmra.mxu3 %vm405_vm0, %v931_v9 }
  0x1b   : > { %530 = vmatpush.msra.mxu1 %v480_v16  ;;  %770 = vmatpush.msra.mxu2 %v480_v16 }
  0x1d   : > { %531 = vmatpush.msra.mxu1 %v479_v17  ;;  %771 = vmatpush.msra.mxu2 %v479_v17 }
  0x22   : > { %742 = vmatmul.msk.f32.gmra.mxu0 %vm405_vm0, %v938_v11  ;;  %747 = vmatmul.msk.f32.gmra.mxu3 %vm405_vm0, %v941_v12 }
  0x2a   : > { %743 = vmatmul.msk.f32.gmra.mxu0 %vm405_vm0, %v948_v13 }
  0x32   : > { %744 = vmatmul.msk.f32.gmra.mxu0 %vm405_vm0, %v953_v14 }
  0x8f   : > { %v447_v19 = vpop.f32.mrf.mxu0 }
  0x90   : > { %v448_v20 = vadd.f32 %v793_v18, %v447_v19 }
  0x92   : > { %v471_v21 = vmax.f32 %v448_v20, 0.0 }
  0x94   : > { %748 = vmatmul.msk.f32.vlgmr.msra.gmra.mxu1 %vm491_vm1, %v471_v21 }
  0x95   : > { %v462_v31 = vpop.f32.mrf.mxu3 }
  0x96   : > { %v463_v35 = vadd.f32 %v793_v18, %v462_v31 }
  0x97   : > { %v450_v22 = vpop.f32.mrf.mxu0 }
  0x98   : > { %v451_v23 = vadd.f32 %v793_v18, %v450_v22  ;;  %v476_v37 = vmax.f32 %v463_v35, 0.0 }
  0x9a   : > { %v472_v24 = vmax.f32 %v451_v23, 0.0 }
  0x9c   : > { %749 = vmatmul.msk.f32.gmra.mxu1 %vm491_vm1, %v472_v24 }
  0x9d   : > { %v465_v36 = vpop.f32.mrf.mxu3 }
  0x9e   : > { %v466_v38 = vadd.f32 %v793_v18, %v465_v36 }
  0x9f   : > { %v453_v25 = vpop.f32.mrf.mxu0 }
  0xa0   : > { %v454_v26 = vadd.f32 %v793_v18, %v453_v25  ;;  %v477_v39 = vmax.f32 %v466_v38, 0.0 }
  0xa2   : > { %v473_v27 = vmax.f32 %v454_v26, 0.0 }
  0xa4   : > { %750 = vmatmul.msk.f32.gmra.mxu1 %vm491_vm1, %v473_v27 }
  0xa5   : > { %v468_v40 = vpop.f32.mrf.mxu3 }
  0xa6   : > { %v469_v41 = vadd.f32 %v793_v18, %v468_v40 }
  0xa7   : > { %v456_v28 = vpop.f32.mrf.mxu0 }
  0xa8   : > { %v457_v29 = vadd.f32 %v793_v18, %v456_v28  ;;  %v478_v42 = vmax.f32 %v469_v41, 0.0 }
  0xaa   : > { %v474_v30 = vmax.f32 %v457_v29, 0.0 }
  0xac   : > { %751 = vmatmul.msk.f32.gmra.mxu1 %vm491_vm1, %v474_v30 }
  0xaf   : > { %v459_v32 = vpop.f32.mrf.mxu0 }
  0xb0   : > { %v460_v33 = vadd.f32 %v793_v18, %v459_v32 }
  0xb2   : > { %v475_v34 = vmax.f32 %v460_v33, 0.0 }
  0xb4   : > { %752 = vmatmul.msk.f32.vlgmr.msra.gmra.mxu2 %vm491_vm1, %v475_v34 }
  0xbc   : > { %753 = vmatmul.msk.f32.gmra.mxu2 %vm491_vm1, %v476_v37 }
  0xc4   : > { %754 = vmatmul.msk.f32.gmra.mxu2 %vm491_vm1, %v477_v39 }
  0xcc   : > { %755 = vmatmul.msk.f32.gmra.mxu2 %vm491_vm1, %v478_v42 }
 0x111   : > { %v533_v45 = vpop.f32.mrf.mxu1 }
 0x112   : > { %v534_v46 = vadd.f32 %v971_v43, %v533_v45 }
 0x114   : > { %v561_v49 = vmul.f32 %v980_v44, %v534_v46  ;;  %v586_v50 = vadd.f32 %v534_v46, %v918_v2 }
 0x116   : > { %v569_v55 = vadd.f32 %v561_v49, %v391_v48  ;;  %v597_v56 = vmul.f32 %v986_v47, %v586_v50 }
 0x118   : > { %605 = vst.msk [vmem:[%s994_s20] sm:$0xff] %vm405_vm0, %v597_v56 }
 0x119   : > { %v536_v60 = vpop.f32.mrf.mxu1  ;;  %577 = vst.msk [vmem:[%s1000_s23] sm:$0xff] %vm405_vm0, %v569_v55 }
 0x11a   : > { %v537_v61 = vadd.f32 %v971_v43, %v536_v60 }
 0x11c   : > { %v562_v62 = vmul.f32 %v980_v44, %v537_v61  ;;  %v587_v63 = vadd.f32 %v537_v61, %v928_v7 }
 0x11e   : > { %v570_v0 = vadd.f32 %v562_v62, %v392_v51  ;;  %v598_v1 = vmul.f32 %v986_v47, %v587_v63 }
 0x120   : > { %606 = vst.msk [vmem:[%s994_s20 + $0x8] sm:$0xff] %vm405_vm0, %v598_v1 }
 0x121   : > { %v539_v2 = vpop.f32.mrf.mxu1  ;;  %578 = vst.msk [vmem:[%s1000_s23 + $0x8] sm:$0xff] %vm405_vm0, %v570_v0 }
 0x122   : > { %v540_v4 = vadd.f32 %v971_v43, %v539_v2 }
 0x124   : > { %v563_v5 = vmul.f32 %v980_v44, %v540_v4  ;;  %v588_v6 = vadd.f32 %v540_v4, %v938_v11 }
 0x126   : > { %v571_v8 = vadd.f32 %v563_v5, %v393_v52  ;;  %v599_v10 = vmul.f32 %v986_v47, %v588_v6 }
 0x128   : > { %607 = vst.msk [vmem:[%s994_s20 + $0x10] sm:$0xff] %vm405_vm0, %v599_v10 }
 0x129   : > { %v542_v7 = vpop.f32.mrf.mxu1  ;;  %579 = vst.msk [vmem:[%s1000_s23 + $0x10] sm:$0xff] %vm405_vm0, %v571_v8 }
 0x12a   : > { %v543_v15 = vadd.f32 %v971_v43, %v542_v7 }
 0x12c   : > { %v564_v16 = vmul.f32 %v980_v44, %v543_v15  ;;  %v589_v17 = vadd.f32 %v543_v15, %v948_v13 }
 0x12e   : > { %v572_v18 = vadd.f32 %v564_v16, %v394_v53  ;;  %v600_v19 = vmul.f32 %v986_v47, %v589_v17 }
 0x130   : > { %608 = vst.msk [vmem:[%s994_s20 + $0x18] sm:$0xff] %vm405_vm0, %v600_v19 }
 0x131   : > { %580 = vst.msk [vmem:[%s1000_s23 + $0x18] sm:$0xff] %vm405_vm0, %v572_v18 }
 0x137   : > { %v545_v11 = vpop.f32.mrf.mxu2 }
 0x138   : > { %v546_v20 = vadd.f32 %v971_v43, %v545_v11 }
 0x13a   : > { %v565_v21 = vmul.f32 %v980_v44, %v546_v20  ;;  %v590_v22 = vadd.f32 %v546_v20, %v953_v14 }
 0x13c   : > { %v573_v23 = vadd.f32 %v565_v21, %v395_v54  ;;  %v601_v24 = vmul.f32 %v986_v47, %v590_v22 }
 0x13e   : > { %609 = vst.msk [vmem:[%s994_s20 + $0x20] sm:$0xff] %vm405_vm0, %v601_v24 }
 0x13f   : > { %v548_v13 = vpop.f32.mrf.mxu2  ;;  %581 = vst.msk [vmem:[%s1000_s23 + $0x20] sm:$0xff] %vm405_vm0, %v573_v23 }
 0x140   : > { %v549_v25 = vadd.f32 %v971_v43, %v548_v13 }
 0x142   : > { %v566_v26 = vmul.f32 %v980_v44, %v549_v25  ;;  %v591_v27 = vadd.f32 %v549_v25, %v923_v3 }
 0x144   : > { %v574_v28 = vadd.f32 %v566_v26, %v396_v57  ;;  %v602_v29 = vmul.f32 %v986_v47, %v591_v27 }
 0x146   : > { %610 = vst.msk [vmem:[%s994_s20 + $0x28] sm:$0xff] %vm405_vm0, %v602_v29 }
 0x147   : > { %v551_v14 = vpop.f32.mrf.mxu2  ;;  %582 = vst.msk [vmem:[%s1000_s23 + $0x28] sm:$0xff] %vm405_vm0, %v574_v28 }
 0x148   : > { %v552_v30 = vadd.f32 %v971_v43, %v551_v14 }
 0x14a   : > { %v567_v31 = vmul.f32 %v980_v44, %v552_v30  ;;  %v592_v32 = vadd.f32 %v552_v30, %v931_v9 }
 0x14c   : > { %v575_v33 = vadd.f32 %v567_v31, %v397_v58  ;;  %v603_v34 = vmul.f32 %v986_v47, %v592_v32 }
 0x14e   : > { %611 = vst.msk [vmem:[%s994_s20 + $0x30] sm:$0xff] %vm405_vm0, %v603_v34 }
 0x14f   : > { %v554_v3 = vpop.f32.mrf.mxu2  ;;  %583 = vst.msk [vmem:[%s1000_s23 + $0x30] sm:$0xff] %vm405_vm0, %v575_v33 }
 0x150   : > { %v555_v35 = vadd.f32 %v971_v43, %v554_v3 }
 0x152   : > { %v568_v36 = vmul.f32 %v980_v44, %v555_v35  ;;  %v593_v37 = vadd.f32 %v555_v35, %v941_v12 }
 0x154   : > { %v576_v38 = vadd.f32 %v568_v36, %v398_v59  ;;  %v604_v39 = vmul.f32 %v986_v47, %v593_v37 }
 0x156   : > { %584 = vst.msk [vmem:[%s1000_s23 + $0x38] sm:$0xff] %vm405_vm0, %v576_v38 }
 0x157   : > { %612 = vst.msk [vmem:[%s994_s20 + $0x38] sm:$0xff] %vm405_vm0, %v604_v39 }
 0x158 PF: > { %s21_s30 = sadd.s32 1, %s837_s30  }
 0x159   : > { %p18_p7 = scmp.ge.s32.totalorder %s21_s30, 4  }
 0x15b   :  { %20 = sbr.rel (!%p18_p7) target bundleno = 1 (0x1), region = 102 }
 0x160   :  { %650 = vsyncpa [#allocation3], 1 }
 0x161   :  { %652 = vsyncpa [#allocation3 + $0x1], 1 }

// kernel: run.6
= control target key start
LH: loop header
LB: loop body
LE: loop exit
PB: predicated region body
PF: predicated region fallthrough
CT: control target
= control target key end

     0   :  { %16 = vsyncpa [#allocation4], 0  ;;  %s2218_s0 = inlined_call_operand.vmem [shape: f32[2,64,16], index: 0, kind: input, shape index: {}, may-alias: {0,10}]   ;;  %s2219_s1 = inlined_call_operand.vmem [shape: f32[2,64,16], index: 1, kind: input, shape index: {}, may-alias: {1,9}]   ;;  %s2220_s2 = inlined_call_operand.hbm [shape: f32[64,96], index: 2, kind: input, shape index: {}]   ;;  %s2221_s3 = inlined_call_operand.hbm [shape: f32[16,16], index: 3, kind: input, shape index: {}]   ;;  %s2222_s4 = inlined_call_operand.vmem [shape: f32[1,16], index: 4, kind: input, shape index: {}]   ;;  %s2223_s5 = inlined_call_operand.hbm [shape: f32[96,16], index: 5, kind: input, shape index: {}]   ;;  %s2224_s6 = inlined_call_operand.vmem [shape: f32[1,16], index: 6, kind: input, shape index: {}]   ;;  %s2225_s7 = inlined_call_operand.vmem [shape: f32[1,16], index: 7, kind: input, shape index: {}, may-alias: {7,8}]   ;;  %s2226_s8 = inlined_call_operand.vmem [shape: f32[1,16], index: 8, kind: input, shape index: {}, may-alias: {7,8}]   ;;  %s2227_s9 = inlined_call_operand.vmem [shape: f32[2,64,16], index: 9, kind: output, shape index: {0}, may-alias: {1,9}]   ;;  %s2228_s10 = inlined_call_operand.vmem [shape: f32[2,64,16], index: 10, kind: output, shape index: {1}, may-alias: {0,10}]  }
   0x1   :  { %17 = vsyncpa [#allocation6], 0  ;;  %s1734_s13 = smov 0  }
   0x2 LB: > { %s1740_s14 = sadd.s32 4294967295, %s1666_s13   ;;  %p1426_p0 = scmp.ge.s32.totalorder %s1666_s13, 1  ;;  %s1666_s13 = sphi %s1734_s13, %s23_s13  }
   0x3   : > { %p279_p1 = scmp.lt.s32.totalorder %s1666_s13, 3  ;;  %p1533_p2 = scmp.eq.s32.totalorder %s1740_s14, 0 }
   0x4   : > { %s304_s17 = sshll.u32 %s2221_s3, 4  ;;  %s290_s21 = sshll.u32 %s2220_s2, 4  ;;  %s305_s17 = int_to_ptr.hbm [resolvable:$true] %s304_s17  ;;  %s291_s21 = int_to_ptr.hbm [resolvable:$true] %s290_s21 }
   0x5   : > { %p1748_p3 = pnand %p1426_p0, %p279_p1  ;;  %s1668_s22 = smov [#allocation5]  }
   0x6   : > { %s306_s23 = sshll.u32 %s1668_s22, 4  ;;  %s1669_s24 = smov [#allocation3]   ;;  %s307_s23 = int_to_ptr.vmem [resolvable:$true] %s306_s23 }
   0x7   : > { %p1523_p4 = pneg %p1748_p3  ;;  %s292_s25 = sshll.u32 %s1669_s24, 4  ;;  %s293_s25 = int_to_ptr.vmem [resolvable:$true] %s292_s25 }
   0x8   : > { %s321_s28 = sshll.u32 %s2223_s5, 4  ;;  %s1670_s29 = smov 128   ;;  %s322_s28 = int_to_ptr.hbm [resolvable:$true] %s321_s28 }
   0x9   : > { %p1524_p5 = pnand %p1533_p2, %p1523_p4  ;;  %s1671_s30 = smov 8  }
   0xa   : > { %s1672_s11 = smov [#allocation7]   ;;  %364 = sbr.rel (%p1748_p3) target bundleno = 436 (0x1b4), region = 56 }
   0xb   : > { %1529 = dma.hbm_to_vmem [thread:$0]  (!%p1524_p5), %s305_s17, 256, %s307_s23, [#allocation6], %s1670_s29, %s1670_s29, %s1671_s30  }
   0xc   : > { %1526 = dma.hbm_to_vmem [thread:$0]  (!%p1524_p5), %s291_s21, 1024, %s293_s25, [#allocation4], %s1670_s29, %s1670_s29, %s1671_s30  }
   0xd   : > { %s323_s12 = sshll.u32 %s1672_s11, 4  ;;  %s324_s12 = int_to_ptr.vmem [resolvable:$true] %s323_s12 }
   0xe   : > { %1532 = dma.hbm_to_vmem [thread:$0]  (!%p1524_p5), %s322_s28, 1536, %s324_s12, [#allocation6], %s1670_s29, %s1670_s29, %s1671_s30  }
   0xf   : > { %1657 = dma.done.wait (%p1533_p2), [#allocation4], 1024  }
  0x10   : > { %1659 = vsyncadd (%p1533_p2), [#allocation4], 4294966272 }
  0x11   : > { %1661 = dma.done.wait (%p1533_p2), [#allocation6], 1792  }
  0x12   : > { %1663 = vsyncadd (%p1533_p2), [#allocation6], 4294965504  ;;  %p423_p6 = scmp.lt.s32.totalorder %s1740_s14, 1  ;;  %v1782_v0 = vld [vmem:[#allocation3 + $0x30] sm:$0xff]  ;;  %v1786_v2 = vld [vmem:[#allocation3] sm:$0xff]  ;;  %s1673_s19 = smov 112  }
  0x13   : > { %v1784_v1 = vld [vmem:[#allocation3 + $0x10] sm:$0xff]  ;;  %682 = vrot.lane.b32.xlu2 %v1782_v0, %s1673_s19  ;;  %v460_v3 = vld [vmem:[#allocation5 + $0x8] sm:$0xff]  ;;  %v459_v4 = vld [vmem:[#allocation5] sm:$0xff]  ;;  %670 = vrot.lane.b32.xlu0 %v1786_v2, %s1673_s19  ;;  %vm465_vm0 = vcmask 130048   ;;  %s1675_s20 = smov 80   ;;  %s1676_s21 = smov 48  }
  0x14   : > { %s2231_s14 = smov (!%p423_p6, %s1740_s14), 1  ;;  %674 = vrot.lane.b32.xlu1 %v1784_v1, %s1673_s19  ;;  %504 = vmatpush.msra.mxu0 %v460_v3  ;;  %v1797_v6 = vld [vmem:[#allocation3 + $0x20] sm:$0xff]  ;;  %v1804_v8 = vld [vmem:[#allocation3 + $0x18] sm:$0xff]  ;;  %v1808_v9 = vld [vmem:[#allocation3 + $0x8] sm:$0xff]  ;;  %s1677_s22 = smov 64   ;;  %v1678_v18 = vmov 0.0  }
  0x15   : > { %s1774_s15 = sshll.u32 %s2231_s14, 6  ;;  %1505 = vmatpush.msra.mxu3 %v460_v3  ;;  %v1824_v12 = vld [vmem:[#allocation3 + $0x28] sm:$0xff]  ;;  %v1828_v13 = vld [vmem:[#allocation3 + $0x38] sm:$0xff]  ;;  %s1674_s14 = smov 96   ;;  %532 = vst.msk [vmem:[#allocation2 + $0x8] sm:$0xff] %vm465_vm0, %v1678_v18  ;;  %v579_v24 = vld [vmem:[#allocation7] sm:$0xff] }
  0x16   : > { %s1780_s18 = scalar_lea.vmem %s2218_s0, %s1774_s15  ;;  %505 = vmatpush.msra.mxu0 %v459_v4  ;;  %531 = vst.msk [vmem:[#allocation2] sm:$0xff] %vm465_vm0, %v1678_v18  ;;  %v580_v21 = vld [vmem:[#allocation7 + $0x8] sm:$0xff]  ;;  %v703_v22 = vld [vmem:[#allocation7 + $0x18] sm:$0xff]  ;;  %v702_v25 = vld [vmem:[#allocation7 + $0x10] sm:$0xff]  ;;  %s432_s29 = scalar_lea.vmem %s2219_s1, %s1774_s15 }
  0x17   : > { %v1795_v5 = vld [vmem:[%s1780_s18] sm:$0xff]  ;;  %1506 = vmatpush.msra.mxu3 %v459_v4  ;;  %v1802_v7 = vld [vmem:[%s1780_s18 + $0x30] sm:$0xff]  ;;  %v1817_v10 = vld [vmem:[%s1780_s18 + $0x8] sm:$0xff]  ;;  %533 = vst.msk [vmem:[#allocation2 + $0x10] sm:$0xff] %vm465_vm0, %v1678_v18  ;;  %619 = vmatpush.msra.mxu1 %v580_v21 }
  0x18   : > { %1443 = vmatmul.msk.f32.vlgmr.msra.gmra.mxu0 %vm465_vm0, %v1795_v5  ;;  %1449 = vmatmul.msk.f32.vlgmr.msra.gmra.mxu3 %vm465_vm0, %v1802_v7  ;;  %v1822_v11 = vld [vmem:[%s1780_s18 + $0x38] sm:$0xff]  ;;  %v1837_v14 = vld [vmem:[%s1780_s18 + $0x10] sm:$0xff]  ;;  %v1859_v16 = vld [vmem:[%s1780_s18 + $0x20] sm:$0xff]  ;;  %534 = vst.msk [vmem:[#allocation2 + $0x18] sm:$0xff] %vm465_vm0, %v1678_v18 }
  0x19   : > { %v1848_v15 = vld [vmem:[%s1780_s18 + $0x18] sm:$0xff]  ;;  %v1870_v17 = vld [vmem:[%s1780_s18 + $0x28] sm:$0xff]  ;;  %535 = vst.msk [vmem:[#allocation2 + $0x20] sm:$0xff] %vm465_vm0, %v1678_v18  ;;  %742 = vmatpush.msra.mxu2 %v703_v22  ;;  %1507 = vmatpush.msrb.mxu3 %v580_v21  ;;  %v933_v27 = vld [vmem:[#allocation7 + $0x38] sm:$0xff] }
  0x1a   : > { %536 = vst.msk [vmem:[#allocation2 + $0x28] sm:$0xff] %vm465_vm0, %v1678_v18  ;;  %620 = vmatpush.msra.mxu1 %v579_v24  ;;  %972 = vmatpush.msrb.mxu0 %v933_v27  ;;  %v932_v29 = vld [vmem:[#allocation7 + $0x30] sm:$0xff]  ;;  %v1941_v37 = vld [vmem:[%s2222_s4] ss:$0 sm:$0xff]  ;;  %v1047_v3 = vld [vmem:[#allocation7 + $0x40] sm:$0xff] }
  0x1b   : > { %678 = vrot.lane.b32.xlu2 %v1797_v6, %s1673_s19  ;;  %672 = vrot.lane.b32.xlu0 %v1808_v9, %s1673_s19  ;;  %537 = vst.msk [vmem:[#allocation2 + $0x30] sm:$0xff] %vm465_vm0, %v1678_v18  ;;  %v1163_v63 = vld [vmem:[#allocation7 + $0x58] sm:$0xff]  ;;  %v1162_v21 = vld [vmem:[#allocation7 + $0x50] sm:$0xff] }
  0x1c   : > { %676 = vrot.lane.b32.xlu1 %v1804_v8, %s1673_s19  ;;  %538 = vst.msk [vmem:[#allocation2 + $0x38] sm:$0xff] %vm465_vm0, %v1678_v18  ;;  %743 = vmatpush.msra.mxu2 %v702_v25  ;;  %v654_v30 = vld [vmem:[#allocation2 + $0x8] sm:$0xff] }
  0x1d   : > { %539 = vst.msk [vmem:[#allocation2 + $0x40] sm:$0xff] %vm465_vm0, %v1678_v18  ;;  %v555_v23 = vld [vmem:[#allocation2 + $0x7] sm:$0xff]  ;;  %1508 = vmatpush.msrb.mxu3 %v579_v24  ;;  %973 = vmatpush.msrb.mxu0 %v932_v29 }
  0x1e   : > { %540 = vst.msk [vmem:[#allocation2 + $0x48] sm:$0xff] %vm465_vm0, %v1678_v18  ;;  %v571_v26 = vmul.f32 %v1786_v2, %v555_v23  ;;  %1202 = vmatpush.msrb.mxu2 %v1163_v63 }
  0x1f   : > { %541 = vst.msk [vmem:[#allocation2 + $0x50] sm:$0xff] %vm465_vm0, %v1678_v18  ;;  %1509 = vmatpush.msra.mxu3 %v703_v22 }
  0x20   : > { %1444 = vmatmul.msk.f32.gmra.mxu0 %vm465_vm0, %v1817_v10  ;;  %1450 = vmatmul.msk.f32.gmra.mxu3 %vm465_vm0, %v1822_v11 }
  0x21   : > { %1451 = vmatmul.msk.f32.vlgmr.msra.gmra.mxu1 %vm465_vm0, %v571_v26  ;;  %1510 = vmatpush.msra.mxu3 %v702_v25 }
  0x22   : > { %1203 = vmatpush.msrb.mxu2 %v1162_v21 }
  0x23   : > { %785 = vrot.lane.b32.xlu2 %v1786_v2, %s1674_s14  ;;  %684 = vrot.lane.b32.xlu0 %v1828_v13, %s1673_s19 }
  0x24   : > { %680 = vrot.lane.b32.xlu1 %v1824_v12, %s1673_s19  ;;  %s2125_s19 = scalar_lea.vmem %s2228_s10, %s1774_s15 }
  0x28   : > { %1445 = vmatmul.msk.f32.gmra.mxu0 %vm465_vm0, %v1837_v14 }
  0x2b   : > { %900 = vrot.lane.b32.xlu2 %v1786_v2, %s1675_s20  ;;  %1130 = vrot.lane.b32.xlu0 %v1786_v2, %s1676_s21 }
  0x2c   : > { %787 = vrot.lane.b32.xlu1 %v1808_v9, %s1674_s14 }
  0x30   : > { %1446 = vmatmul.msk.f32.gmra.mxu0 %vm465_vm0, %v1848_v15 }
  0x33   : > { %789 = vrot.lane.b32.xlu2 %v1784_v1, %s1674_s14  ;;  %1015 = vrot.lane.b32.xlu0 %v1786_v2, %s1677_s22  ;;  %v1048_v2 = vld [vmem:[#allocation7 + $0x48] sm:$0xff] }
  0x34   : > { %1132 = vrot.lane.b32.xlu1 %v1808_v9, %s1676_s21  ;;  %1087 = vmatpush.msrb.mxu1 %v1048_v2  ;;  %v818_v2 = vld [vmem:[#allocation7 + $0x28] sm:$0xff] }
  0x36   : > { %1088 = vmatpush.msrb.mxu1 %v1047_v3  ;;  %v817_v3 = vld [vmem:[#allocation7 + $0x20] sm:$0xff] }
  0x38   : > { %1447 = vmatmul.msk.f32.gmra.mxu0 %vm465_vm0, %v1859_v16 }
  0x3b   : > { %1134 = vrot.lane.b32.xlu2 %v1784_v1, %s1676_s21  ;;  %902 = vrot.lane.b32.xlu0 %v1808_v9, %s1675_s20 }
  0x3c   : > { %1017 = vrot.lane.b32.xlu1 %v1808_v9, %s1677_s22 }
  0x40   : > { %1448 = vmatmul.msk.f32.gmra.mxu0 %vm465_vm0, %v1870_v17 }
  0x43   : > { %1019 = vrot.lane.b32.xlu2 %v1784_v1, %s1677_s22  ;;  %791 = vrot.lane.b32.xlu0 %v1804_v8, %s1674_s14 }
  0x44   : > { %904 = vrot.lane.b32.xlu1 %v1784_v1, %s1675_s20 }
  0x4b   : > { %906 = vrot.lane.b32.xlu2 %v1804_v8, %s1675_s20  ;;  %1136 = vrot.lane.b32.xlu0 %v1804_v8, %s1676_s21 }
  0x4c   : > { %793 = vrot.lane.b32.xlu1 %v1797_v6, %s1674_s14 }
  0x53   : > { %795 = vrot.lane.b32.xlu2 %v1824_v12, %s1674_s14  ;;  %1021 = vrot.lane.b32.xlu0 %v1804_v8, %s1677_s22 }
  0x54   : > { %1138 = vrot.lane.b32.xlu1 %v1797_v6, %s1676_s21 }
  0x5b   : > { %1140 = vrot.lane.b32.xlu2 %v1824_v12, %s1676_s21  ;;  %908 = vrot.lane.b32.xlu0 %v1797_v6, %s1675_s20 }
  0x5c   : > { %1023 = vrot.lane.b32.xlu1 %v1797_v6, %s1677_s22 }
  0x63   : > { %1025 = vrot.lane.b32.xlu2 %v1824_v12, %s1677_s22  ;;  %797 = vrot.lane.b32.xlu0 %v1782_v0, %s1674_s14 }
  0x64   : > { %910 = vrot.lane.b32.xlu1 %v1824_v12, %s1675_s20 }
  0x6b   : > { %912 = vrot.lane.b32.xlu2 %v1782_v0, %s1675_s20  ;;  %1142 = vrot.lane.b32.xlu0 %v1782_v0, %s1676_s21 }
  0x6c   : > { %799 = vrot.lane.b32.xlu1 %v1828_v13, %s1674_s14 }
  0x6d   : > { %v1917_v19 = vpop.permute.xlu2 %682 }
  0x73   : > { %914 = vrot.lane.b32.xlu2 %v1828_v13, %s1675_s20  ;;  %1027 = vrot.lane.b32.xlu0 %v1782_v0, %s1677_s22 }
  0x74   : > { %1144 = vrot.lane.b32.xlu1 %v1828_v13, %s1676_s21  ;;  %s2133_s21 = scalar_lea.vmem %s2227_s9, %s1774_s15 }
  0x75   : > { %v1929_v20 = vpop.permute.xlu2 %678 }
  0x7b   : > { %1029 = vrot.lane.b32.xlu0 %v1828_v13, %s1677_s22 }
  0x7d   : > { %v1935_v28 = vpop.permute.xlu2 %785 }
  0x85   : > { %v671_v32 = vpop.permute.xlu0 %670  ;;  %v901_v34 = vpop.permute.xlu2 %900 }
  0x86   : > { %v675_v31 = vpop.permute.xlu1 %674  ;;  %v694_v33 = vmul.f32 %v671_v32, %v654_v30 }
  0x88   : > { %1459 = vmatmul.msk.f32.vlgmr.msra.gmra.mxu2 %vm465_vm0, %v694_v33 }
  0x8d   : > { %v673_v36 = vpop.permute.xlu0 %672  ;;  %v1943_v38 = vpop.permute.xlu2 %789 }
  0x8e   : > { %v677_v35 = vpop.permute.xlu1 %676 }
  0x95   : > { %v507_v39 = vpop.f32.mrf.mxu0  ;;  %v1948_v42 = vpop.permute.xlu0 %684 }
  0x96   : > { %v508_v40 = vadd.f32 %v1941_v37, %v507_v39  ;;  %v1946_v41 = vpop.permute.xlu1 %680  ;;  %v1951_v44 = vpop.permute.xlu2 %1134 }
  0x98   : > { %542 = vst.msk [vmem:[#allocation2 + $0x10] sm:$0xff] %vm465_vm0, %v508_v40 }
  0x9b   : > { %v525_v50 = vpop.f32.mrf.mxu3 }
  0x9c   : > { %v526_v54 = vadd.f32 %v1941_v37, %v525_v50 }
  0x9d   : > { %v510_v43 = vpop.f32.mrf.mxu0  ;;  %v1956_v47 = vpop.permute.xlu0 %1130 }
  0x9e   : > { %v511_v45 = vadd.f32 %v1941_v37, %v510_v43  ;;  %v1954_v46 = vpop.permute.xlu1 %787  ;;  %548 = vst.msk [vmem:[#allocation2 + $0x40] sm:$0xff] %vm465_vm0, %v526_v54  ;;  %v1977_v4 = vpop.permute.xlu2 %1019 }
  0x9f   : > { %v556_v48 = vld [vmem:[#allocation2 + $0xf] sm:$0xff] }
  0xa0   : > { %v1958_v49 = vld [vmem:[#allocation2 + $0x10] sm:$0xff]  ;;  %543 = vst.msk [vmem:[#allocation2 + $0x18] sm:$0xff] %vm465_vm0, %v511_v45  ;;  %v572_v51 = vmul.f32 %v1808_v9, %v556_v48  ;;  %v924_v53 = vmul.f32 %v901_v34, %v556_v48 }
  0xa1   : > { %v695_v52 = vmul.f32 %v673_v36, %v1958_v49 }
  0xa2   : > { %1452 = vmatmul.msk.f32.gmra.mxu1 %vm465_vm0, %v572_v51  ;;  %1475 = vmatmul.msk.f32.vlgmr.msrb.gmra.mxu0 %vm465_vm0, %v924_v53 }
  0xa3   : > { %1460 = vmatmul.msk.f32.gmra.mxu2 %vm465_vm0, %v695_v52  ;;  %v528_v61 = vpop.f32.mrf.mxu3 }
  0xa4   : > { %v529_v18 = vadd.f32 %v1941_v37, %v528_v61 }
  0xa5   : > { %v513_v55 = vpop.f32.mrf.mxu0  ;;  %v1971_v58 = vpop.permute.xlu0 %1015 }
  0xa6   : > { %v514_v56 = vadd.f32 %v1941_v37, %v513_v55  ;;  %v1969_v57 = vpop.permute.xlu1 %1132  ;;  %549 = vst.msk [vmem:[#allocation2 + $0x48] sm:$0xff] %vm465_vm0, %v529_v18 }
  0xa7   : > { %v557_v59 = vld [vmem:[#allocation2 + $0x17] sm:$0xff] }
  0xa8   : > { %v1973_v60 = vld [vmem:[#allocation2 + $0x18] sm:$0xff]  ;;  %544 = vst.msk [vmem:[#allocation2 + $0x20] sm:$0xff] %vm465_vm0, %v514_v56  ;;  %v573_v62 = vmul.f32 %v1784_v1, %v557_v59 }
  0xa9   : > { %v696_v9 = vmul.f32 %v675_v31, %v1973_v60  ;;  %v907_v31 = vpop.permute.xlu2 %906 }
  0xaa   : > { %1453 = vmatmul.msk.f32.gmra.mxu1 %vm465_vm0, %v573_v62  ;;  %v1039_v62 = vmul.f32 %v1971_v58, %v1958_v49 }
  0xab   : > { %1461 = vmatmul.msk.f32.gmra.mxu2 %vm465_vm0, %v696_v9 }
  0xad   : > { %v516_v1 = vpop.f32.mrf.mxu0  ;;  %v903_v24 = vpop.permute.xlu0 %902 }
  0xae   : > { %v517_v22 = vadd.f32 %v1941_v37, %v516_v1  ;;  %v1018_v23 = vpop.permute.xlu1 %1017  ;;  %v925_v27 = vmul.f32 %v903_v24, %v557_v59 }
  0xaf   : > { %v558_v25 = vld [vmem:[#allocation2 + $0x1f] sm:$0xff]  ;;  %v1040_v58 = vmul.f32 %v1018_v23, %v1973_v60 }
  0xb0   : > { %v1985_v26 = vld [vmem:[#allocation2 + $0x20] sm:$0xff]  ;;  %545 = vst.msk [vmem:[#allocation2 + $0x28] sm:$0xff] %vm465_vm0, %v517_v22  ;;  %v574_v29 = vmul.f32 %v1804_v8, %v558_v25  ;;  %1476 = vmatmul.msk.f32.gmra.mxu0 %vm465_vm0, %v925_v27 }
  0xb1   : > { %v697_v30 = vmul.f32 %v677_v35, %v1985_v26  ;;  %v2005_v45 = vpop.permute.xlu2 %795  ;;  %v1123_v9 = vld [vmem:[#allocation2 + $0x19] sm:$0xff]  ;;  %v1041_v60 = vmul.f32 %v1977_v4, %v1985_v26  ;;  %v899_v26 = vld [vmem:[#allocation2 + $0x47] sm:$0xff] }
  0xb2   : > { %1454 = vmatmul.msk.f32.gmra.mxu1 %vm465_vm0, %v574_v29 }
  0xb3   : > { %1462 = vmatmul.msk.f32.gmra.mxu2 %vm465_vm0, %v697_v30 }
  0xb5   : > { %v519_v32 = vpop.f32.mrf.mxu0  ;;  %v1994_v39 = vpop.permute.xlu0 %791 }
  0xb6   : > { %v520_v33 = vadd.f32 %v1941_v37, %v519_v32  ;;  %v905_v34 = vpop.permute.xlu1 %904 }
  0xb7   : > { %v926_v36 = vmul.f32 %v905_v34, %v558_v25  ;;  %v559_v40 = vld [vmem:[#allocation2 + $0x27] sm:$0xff] }
  0xb8   : > { %v1996_v43 = vld [vmem:[#allocation2 + $0x28] sm:$0xff]  ;;  %546 = vst.msk [vmem:[#allocation2 + $0x30] sm:$0xff] %vm465_vm0, %v520_v33  ;;  %v575_v8 = vmul.f32 %v1797_v6, %v559_v40  ;;  %v927_v55 = vmul.f32 %v907_v31, %v559_v40  ;;  %v661_v31 = vld [vmem:[#allocation2 + $0x40] sm:$0xff] }
  0xb9   : > { %v698_v35 = vmul.f32 %v1929_v20, %v1996_v43  ;;  %1477 = vmatmul.msk.f32.gmra.mxu0 %vm465_vm0, %v926_v36  ;;  %v2021_v59 = vpop.permute.xlu2 %1140  ;;  %v780_v24 = vld [vmem:[#allocation2 + $0x21] sm:$0xff]  ;;  %v777_v40 = vld [vmem:[#allocation2 + $0x9] sm:$0xff] }
  0xba   : > { %1455 = vmatmul.msk.f32.gmra.mxu1 %vm465_vm0, %v575_v8  ;;  %v1156_v23 = vmul.f32 %v1951_v44, %v780_v24 }
  0xbb   : > { %1463 = vmatmul.msk.f32.gmra.mxu2 %vm465_vm0, %v698_v35 }
  0xbd   : > { %v522_v48 = vpop.f32.mrf.mxu0  ;;  %v1137_v52 = vpop.permute.xlu0 %1136 }
  0xbe   : > { %v523_v50 = vadd.f32 %v1941_v37, %v522_v48  ;;  %v2008_v51 = vpop.permute.xlu1 %793  ;;  %v2019_v37 = vld [vmem:[#allocation2 + $0x11] sm:$0xff] }
  0xbf   : > { %v560_v53 = vld [vmem:[#allocation2 + $0x2f] sm:$0xff] }
  0xc0   : > { %v2010_v54 = vld [vmem:[#allocation2 + $0x30] sm:$0xff]  ;;  %547 = vst.msk [vmem:[#allocation2 + $0x38] sm:$0xff] %vm465_vm0, %v523_v50  ;;  %v576_v6 = vmul.f32 %v1824_v12, %v560_v53  ;;  %v809_v50 = vmul.f32 %v1935_v28, %v777_v40 }
  0xc1   : > { %v699_v20 = vmul.f32 %v1946_v41, %v2010_v54  ;;  %1478 = vmatmul.msk.f32.gmra.mxu0 %vm465_vm0, %v927_v55  ;;  %v1154_v41 = vmul.f32 %v1956_v47, %v2019_v37  ;;  %v1155_v47 = vmul.f32 %v1969_v57, %v1123_v9  ;;  %v781_v30 = vld [vmem:[#allocation2 + $0x29] sm:$0xff] }
  0xc2   : > { %1456 = vmatmul.msk.f32.gmra.mxu1 %vm465_vm0, %v576_v6  ;;  %v1157_v4 = vmul.f32 %v1137_v52, %v781_v30 }
  0xc3   : > { %1464 = vmatmul.msk.f32.gmra.mxu2 %vm465_vm0, %v699_v20  ;;  %v784_v20 = vld [vmem:[#allocation2 + $0x41] sm:$0xff] }
  0xc5   : > { %v1022_v61 = vpop.permute.xlu0 %1021 }
  0xc6   : > { %v1139_v56 = vpop.permute.xlu1 %1138  ;;  %v1042_v34 = vmul.f32 %v1022_v61, %v1996_v43  ;;  %v811_v61 = vmul.f32 %v1123_v9, %v1943_v38  ;;  %v813_v38 = vmul.f32 %v2008_v51, %v781_v30 }
  0xc7   : > { %v561_v12 = vld [vmem:[#allocation2 + $0x37] sm:$0xff]  ;;  %v898_v18 = vld [vmem:[#allocation2 + $0x3f] sm:$0xff] }
  0xc8   : > { %v577_v63 = vmul.f32 %v1782_v0, %v561_v12  ;;  %v1026_v0 = vpop.permute.xlu2 %1025  ;;  %v578_v22 = vmul.f32 %v898_v18, %v1828_v13  ;;  %v1012_v25 = vld [vmem:[#allocation2 + $0x38] sm:$0xff] }
  0xc9   : > { %v700_v57 = vmul.f32 %v1012_v25, %v1917_v19  ;;  %v701_v19 = vmul.f32 %v1948_v42, %v661_v31  ;;  %v1126_v36 = vld [vmem:[#allocation2 + $0x31] sm:$0xff]  ;;  %v783_v42 = vld [vmem:[#allocation2 + $0x39] sm:$0xff]  ;;  %v1044_v52 = vmul.f32 %v1026_v0, %v1012_v25 }
  0xca   : > { %1483 = vmatmul.msk.f32.vlgmr.msrb.gmra.mxu1 %vm465_vm0, %v1039_v62  ;;  %1457 = vmatmul.msk.f32.vlgmr.msrb.gmra.mxu3 %vm465_vm0, %v577_v63  ;;  %v1158_v48 = vmul.f32 %v1139_v56, %v1126_v36  ;;  %v1129_v62 = vld [vmem:[#allocation2 + $0x49] sm:$0xff]  ;;  %v812_v63 = vmul.f32 %v1994_v39, %v780_v24  ;;  %v622_v39 = vpop.f32.mrf.mxu1 }
  0xcb   : > { %1491 = vmatmul.msk.f32.vlgmr.msrb.gmra.mxu2 %vm465_vm0, %v1154_v41  ;;  %857 = vmatpush.msrb.mxu3 %v818_v2  ;;  %v814_v2 = vmul.f32 %v1126_v36, %v2005_v45 }
  0xcd   : > { %858 = vmatpush.msrb.mxu3 %v817_v3  ;;  %v909_v49 = vpop.permute.xlu0 %908 }
  0xce   : > { %v1024_v21 = vpop.permute.xlu1 %1023  ;;  %v928_v1 = vmul.f32 %v909_v49, %v560_v53  ;;  %v810_v53 = vmul.f32 %v1954_v46, %v2019_v37  ;;  %v1014_v37 = vld [vmem:[#allocation2 + $0x48] sm:$0xff] }
  0xcf   : > { %v1043_v8 = vmul.f32 %v1024_v21, %v2010_v54  ;;  %v1159_v54 = vmul.f32 %v2021_v59, %v783_v42 }
  0xd0   : > { %1479 = vmatmul.msk.f32.gmra.mxu0 %vm465_vm0, %v928_v1  ;;  %v913_v13 = vpop.permute.xlu2 %912 }
  0xd1   : > { %v930_v33 = vmul.f32 %v913_v13, %v898_v18  ;;  %v2101_v13 = vld [vmem:[%s2224_s6] ss:$0 sm:$0xff] }
  0xd2   : > { %1484 = vmatmul.msk.f32.gmra.mxu1 %vm465_vm0, %v1040_v58  ;;  %1458 = vmatmul.msk.f32.gmra.mxu3 %vm465_vm0, %v578_v22 }
  0xd3   : > { %1492 = vmatmul.msk.f32.gmra.mxu2 %vm465_vm0, %v1155_v47 }
  0xd5   : > { %v798_v32 = vpop.permute.xlu0 %797 }
  0xd6   : > { %v911_v27 = vpop.permute.xlu1 %910  ;;  %v815_v3 = vmul.f32 %v798_v32, %v783_v42 }
  0xd7   : > { %v929_v29 = vmul.f32 %v911_v27, %v561_v12 }
  0xd8   : > { %v915_v44 = vpop.permute.xlu2 %914 }
  0xd9   : > { %1480 = vmatmul.msk.f32.gmra.mxu0 %vm465_vm0, %v929_v29  ;;  %v931_v35 = vmul.f32 %v915_v44, %v899_v26 }
  0xda   : > { %1485 = vmatmul.msk.f32.gmra.mxu1 %vm465_vm0, %v1041_v60  ;;  %1465 = vmatmul.msk.f32.vlgmr.msra.gmra.mxu3 %vm465_vm0, %v700_v57 }
  0xdb   : > { %1493 = vmatmul.msk.f32.gmra.mxu2 %vm465_vm0, %v1156_v23 }
  0xdd   : > { %v1143_v43 = vpop.permute.xlu0 %1142 }
  0xde   : > { %v800_v28 = vpop.permute.xlu1 %799  ;;  %v1160_v56 = vmul.f32 %v1143_v43, %v784_v20  ;;  %v2117_v43 = vld [vmem:[%s2226_s8] ss:$0 sm:$0xff] }
  0xdf   : > { %v816_v9 = vmul.f32 %v800_v28, %v784_v20  ;;  %v453_v20 = vld [vmem:[%s432_s29 + $0x10] sm:$0xff] }
  0xe1   : > { %1481 = vmatmul.msk.f32.gmra.mxu0 %vm465_vm0, %v930_v33 }
  0xe2   : > { %1486 = vmatmul.msk.f32.gmra.mxu1 %vm465_vm0, %v1042_v34  ;;  %1466 = vmatmul.msk.f32.gmra.mxu3 %vm465_vm0, %v701_v19 }
  0xe3   : > { %1494 = vmatmul.msk.f32.gmra.mxu2 %vm465_vm0, %v1157_v4 }
  0xe5   : > { %v1028_v6 = vpop.permute.xlu0 %1027 }
  0xe6   : > { %v1045_v55 = vmul.f32 %v1028_v6, %v661_v31  ;;  %v1145_v59 = vpop.permute.xlu1 %1144  ;;  %v646_v31 = vadd.f32 %v2101_v13, %v622_v39 }
  0xe7   : > { %v1161_v41 = vmul.f32 %v1145_v59, %v1129_v62  ;;  %v2138_v59 = vld [vmem:[%s432_s29 + $0x30] sm:$0xff]  ;;  %v2140_v62 = vld [vmem:[%s432_s29 + $0x38] sm:$0xff] }
  0xe9   : > { %1482 = vmatmul.msk.f32.gmra.mxu0 %vm465_vm0, %v931_v35 }
  0xea   : > { %1487 = vmatmul.msk.f32.gmra.mxu1 %vm465_vm0, %v1043_v8  ;;  %1467 = vmatmul.msk.f32.vlgmr.msrb.gmra.mxu3 %vm465_vm0, %v809_v50  ;;  %v2112_v8 = vld [vmem:[%s2225_s7] ss:$0 sm:$0xff] }
  0xeb   : > { %1495 = vmatmul.msk.f32.gmra.mxu2 %vm465_vm0, %v1158_v48  ;;  %v451_v50 = vld [vmem:[%s432_s29] sm:$0xff] }
  0xed   : > { %v1030_v46 = vpop.permute.xlu0 %1029 }
  0xee   : > { %v1046_v12 = vmul.f32 %v1030_v46, %v1014_v37  ;;  %v2136_v37 = vld [vmem:[%s432_s29 + $0x28] sm:$0xff] }
  0xf2   : > { %1488 = vmatmul.msk.f32.gmra.mxu1 %vm465_vm0, %v1044_v52  ;;  %1468 = vmatmul.msk.f32.gmra.mxu3 %vm465_vm0, %v810_v53 }
  0xf3   : > { %1496 = vmatmul.msk.f32.gmra.mxu2 %vm465_vm0, %v1159_v54  ;;  %v452_v54 = vld [vmem:[%s432_s29 + $0x8] sm:$0xff] }
  0xfa   : > { %1489 = vmatmul.msk.f32.gmra.mxu1 %vm465_vm0, %v1045_v55  ;;  %1469 = vmatmul.msk.f32.gmra.mxu3 %vm465_vm0, %v811_v61  ;;  %v454_v55 = vld [vmem:[%s432_s29 + $0x18] sm:$0xff] }
  0xfb   : > { %1497 = vmatmul.msk.f32.gmra.mxu2 %vm465_vm0, %v1160_v56  ;;  %v2127_v56 = vld [vmem:[%s432_s29 + $0x20] sm:$0xff] }
 0x102   : > { %1490 = vmatmul.msk.f32.gmra.mxu1 %vm465_vm0, %v1046_v12  ;;  %1470 = vmatmul.msk.f32.gmra.mxu3 %vm465_vm0, %v812_v63 }
 0x103   : > { %1498 = vmatmul.msk.f32.gmra.mxu2 %vm465_vm0, %v1161_v41 }
 0x10a   : > { %1471 = vmatmul.msk.f32.gmra.mxu3 %vm465_vm0, %v813_v38 }
 0x10b   : > { %v745_v18 = vpop.f32.mrf.mxu2 }
 0x10c   : > { %v769_v32 = vadd.f32 %v745_v18, %v646_v31 }
 0x112   : > { %1472 = vmatmul.msk.f32.gmra.mxu3 %vm465_vm0, %v814_v2 }
 0x11a   : > { %1473 = vmatmul.msk.f32.gmra.mxu3 %vm465_vm0, %v815_v3 }
 0x11f   : > { %v625_v21 = vpop.f32.mrf.mxu1  ;;  %v975_v60 = vpop.f32.mrf.mxu0 }
 0x120   : > { %v647_v36 = vadd.f32 %v2101_v13, %v625_v21 }
 0x122   : > { %1474 = vmatmul.msk.f32.gmra.mxu3 %vm465_vm0, %v816_v9 }
 0x126   : > { %v748_v49 = vpop.f32.mrf.mxu2 }
 0x127   : > { %v628_v58 = vpop.f32.mrf.mxu1  ;;  %v770_v35 = vadd.f32 %v748_v49, %v647_v36 }
 0x128   : > { %v648_v41 = vadd.f32 %v2101_v13, %v628_v58 }
 0x12d   : > { %v978_v33 = vpop.f32.mrf.mxu0 }
 0x12e   : > { %v751_v1 = vpop.f32.mrf.mxu2 }
 0x12f   : > { %v2078_v47 = vpop.f32.mrf.mxu1  ;;  %v771_v2 = vadd.f32 %v751_v1, %v648_v41 }
 0x136   : > { %v2080_v51 = vpop.f32.mrf.mxu2  ;;  %v981_v28 = vpop.f32.mrf.mxu0 }
 0x137   : > { %v2084_v45 = vpop.f32.mrf.mxu1 }
 0x13e   : > { %v2086_v22 = vpop.f32.mrf.mxu2 }
 0x13f   : > { %v2090_v25 = vpop.f32.mrf.mxu1 }
 0x146   : > { %v2092_v27 = vpop.f32.mrf.mxu2 }
 0x147   : > { %v1090_v57 = vpop.f32.mrf.mxu1 }
 0x14d   : > { %v2082_v0 = vpop.f32.mrf.mxu3 }
 0x14e   : > { %v1205_v30 = vpop.f32.mrf.mxu2 }
 0x14f   : > { %v1093_v19 = vpop.f32.mrf.mxu1 }
 0x155   : > { %v2088_v24 = vpop.f32.mrf.mxu3 }
 0x156   : > { %v1208_v26 = vpop.f32.mrf.mxu2 }
 0x157   : > { %v1096_v12 = vpop.f32.mrf.mxu1 }
 0x15d   : > { %v2094_v29 = vpop.f32.mrf.mxu3 }
 0x15e   : > { %v1211_v38 = vpop.f32.mrf.mxu2 }
 0x15f   : > { %v1099_v1 = vpop.f32.mrf.mxu1 }
 0x165   : > { %v2096_v23 = vpop.f32.mrf.mxu3 }
 0x16d   : > { %v860_v34 = vpop.f32.mrf.mxu3 }
 0x16e   : > { %v884_v4 = vadd.f32 %v860_v34, %v769_v32 }
 0x170   : > { %v999_v44 = vadd.f32 %v975_v60, %v884_v4 }
 0x172   : > { %v1114_v40 = vadd.f32 %v1090_v57, %v999_v44  ;;  %v984_v57 = vpop.f32.mrf.mxu0 }
 0x174   : > { %v1229_v48 = vadd.f32 %v1205_v30, %v1114_v40  ;;  %v649_v30 = vadd.f32 %v2101_v13, %v2078_v47 }
 0x175   : > { %v863_v42 = vpop.f32.mrf.mxu3 }
 0x176   : > { %v1241_v52 = vmul.f32 %v2112_v8, %v1229_v48  ;;  %v1266_v53 = vadd.f32 %v1229_v48, %v1795_v5  ;;  %v885_v6 = vadd.f32 %v863_v42, %v770_v35  ;;  %v772_v32 = vadd.f32 %v2080_v51, %v649_v30 }
 0x177   : > { %v650_v35 = vadd.f32 %v2101_v13, %v2084_v45 }
 0x178   : > { %v1249_v5 = vadd.f32 %v1241_v52, %v451_v50  ;;  %v1277_v61 = vmul.f32 %v2117_v43, %v1266_v53  ;;  %v1000_v46 = vadd.f32 %v978_v33, %v885_v6  ;;  %v1214_v33 = vpop.f32.mrf.mxu2 }
 0x179   : > { %v773_v48 = vadd.f32 %v2086_v22, %v650_v35 }
 0x17a   : > { %1285 = vst.msk [vmem:[%s2125_s19] sm:$0xff] %vm465_vm0, %v1277_v61  ;;  %v1115_v63 = vadd.f32 %v1093_v19, %v1000_v46  ;;  %v987_v40 = vpop.f32.mrf.mxu0 }
 0x17b   : > { %1257 = vst.msk [vmem:[%s2133_s21] sm:$0xff] %vm465_vm0, %v1249_v5  ;;  %v651_v5 = vadd.f32 %v2101_v13, %v2090_v25 }
 0x17c   : > { %v1230_v3 = vadd.f32 %v1208_v26, %v1115_v63 }
 0x17d   : > { %v866_v9 = vpop.f32.mrf.mxu3  ;;  %v774_v46 = vadd.f32 %v2092_v27, %v651_v5 }
 0x17e   : > { %v1242_v39 = vmul.f32 %v2112_v8, %v1230_v3  ;;  %v1267_v18 = vadd.f32 %v1230_v3, %v1817_v10  ;;  %v886_v21 = vadd.f32 %v866_v9, %v771_v2 }
 0x180   : > { %v1250_v49 = vadd.f32 %v1242_v39, %v452_v54  ;;  %v1278_v60 = vmul.f32 %v2117_v43, %v1267_v18  ;;  %v1001_v58 = vadd.f32 %v981_v28, %v886_v21  ;;  %v1217_v6 = vpop.f32.mrf.mxu2  ;;  %v652_v39 = vadd.f32 %v2101_v13, %v2082_v0 }
 0x182   : > { %1286 = vst.msk [vmem:[%s2125_s19 + $0x8] sm:$0xff] %vm465_vm0, %v1278_v60  ;;  %v1116_v31 = vadd.f32 %v1096_v12, %v1001_v58  ;;  %v990_v61 = vpop.f32.mrf.mxu0 }
 0x183   : > { %1258 = vst.msk [vmem:[%s2133_s21 + $0x8] sm:$0xff] %vm465_vm0, %v1250_v49 }
 0x184   : > { %v1231_v10 = vadd.f32 %v1211_v38, %v1116_v31 }
 0x185   : > { %v869_v34 = vpop.f32.mrf.mxu3 }
 0x186   : > { %v1243_v4 = vmul.f32 %v2112_v8, %v1231_v10  ;;  %v1268_v19 = vadd.f32 %v1231_v10, %v1837_v14  ;;  %v887_v44 = vadd.f32 %v869_v34, %v772_v32  ;;  %v1102_v14 = vpop.f32.mrf.mxu1 }
 0x188   : > { %v1251_v26 = vadd.f32 %v1243_v4, %v453_v20  ;;  %v1279_v47 = vmul.f32 %v2117_v43, %v1268_v19  ;;  %v1002_v36 = vadd.f32 %v984_v57, %v887_v44  ;;  %v1220_v9 = vpop.f32.mrf.mxu2 }
 0x18a   : > { %1287 = vst.msk [vmem:[%s2125_s19 + $0x10] sm:$0xff] %vm465_vm0, %v1279_v47  ;;  %v1117_v51 = vadd.f32 %v1099_v1, %v1002_v36  ;;  %v993_v21 = vpop.f32.mrf.mxu0  ;;  %v653_v1 = vadd.f32 %v2101_v13, %v2088_v24 }
 0x18b   : > { %1259 = vst.msk [vmem:[%s2133_s21 + $0x10] sm:$0xff] %vm465_vm0, %v1251_v26 }
 0x18c   : > { %v1232_v50 = vadd.f32 %v1214_v33, %v1117_v51 }
 0x18d   : > { %v872_v42 = vpop.f32.mrf.mxu3 }
 0x18e   : > { %v1244_v52 = vmul.f32 %v2112_v8, %v1232_v50  ;;  %v1269_v53 = vadd.f32 %v1232_v50, %v1848_v15  ;;  %v888_v54 = vadd.f32 %v872_v42, %v773_v48  ;;  %v1105_v38 = vpop.f32.mrf.mxu1 }
 0x190   : > { %v1252_v28 = vadd.f32 %v1244_v52, %v454_v55  ;;  %v1280_v45 = vmul.f32 %v2117_v43, %v1269_v53  ;;  %v1003_v20 = vadd.f32 %v987_v40, %v888_v54  ;;  %v1223_v32 = vpop.f32.mrf.mxu2 }
 0x192   : > { %1288 = vst.msk [vmem:[%s2125_s19 + $0x18] sm:$0xff] %vm465_vm0, %v1280_v45  ;;  %v1118_v22 = vadd.f32 %v1102_v14, %v1003_v20  ;;  %v996_v24 = vpop.f32.mrf.mxu0 }
 0x193   : > { %1260 = vst.msk [vmem:[%s2133_s21 + $0x18] sm:$0xff] %vm465_vm0, %v1252_v28 }
 0x194   : > { %v1233_v15 = vadd.f32 %v1217_v6, %v1118_v22 }
 0x195   : > { %v875_v12 = vpop.f32.mrf.mxu3 }
 0x196   : > { %v1245_v55 = vmul.f32 %v2112_v8, %v1233_v15  ;;  %v1270_v41 = vadd.f32 %v1233_v15, %v1859_v16  ;;  %v889_v63 = vadd.f32 %v875_v12, %v774_v46  ;;  %v775_v16 = vadd.f32 %v2094_v29, %v652_v39  ;;  %v1108_v31 = vpop.f32.mrf.mxu1 }
 0x198   : > { %v1253_v25 = vadd.f32 %v1245_v55, %v2127_v56  ;;  %v1281_v2 = vmul.f32 %v2117_v43, %v1270_v41  ;;  %v1004_v3 = vadd.f32 %v990_v61, %v889_v63 }
 0x19a   : > { %1289 = vst.msk [vmem:[%s2125_s19 + $0x20] sm:$0xff] %vm465_vm0, %v1281_v2  ;;  %v1119_v27 = vadd.f32 %v1105_v38, %v1004_v3 }
 0x19b   : > { %1261 = vst.msk [vmem:[%s2133_s21 + $0x20] sm:$0xff] %vm465_vm0, %v1253_v25 }
 0x19c   : > { %v1234_v18 = vadd.f32 %v1220_v9, %v1119_v27 }
 0x19d   : > { %v878_v49 = vpop.f32.mrf.mxu3 }
 0x19e   : > { %v1246_v56 = vmul.f32 %v2112_v8, %v1234_v18  ;;  %v1271_v60 = vadd.f32 %v1234_v18, %v1870_v17  ;;  %v890_v58 = vadd.f32 %v878_v49, %v775_v16  ;;  %v776_v17 = vadd.f32 %v2096_v23, %v653_v1  ;;  %v1111_v26 = vpop.f32.mrf.mxu1  ;;  %v1226_v23 = vpop.f32.mrf.mxu2 }
 0x1a0   : > { %v1254_v57 = vadd.f32 %v1246_v56, %v2136_v37  ;;  %v1282_v0 = vmul.f32 %v2117_v43, %v1271_v60  ;;  %v1005_v30 = vadd.f32 %v993_v21, %v890_v58 }
 0x1a2   : > { %1290 = vst.msk [vmem:[%s2125_s19 + $0x28] sm:$0xff] %vm465_vm0, %v1282_v0  ;;  %v1120_v29 = vadd.f32 %v1108_v31, %v1005_v30 }
 0x1a3   : > { %1262 = vst.msk [vmem:[%s2133_s21 + $0x28] sm:$0xff] %vm465_vm0, %v1254_v57 }
 0x1a4   : > { %v1235_v10 = vadd.f32 %v1223_v32, %v1120_v29 }
 0x1a5   : > { %v881_v33 = vpop.f32.mrf.mxu3 }
 0x1a6   : > { %v1247_v37 = vmul.f32 %v2112_v8, %v1235_v10  ;;  %v1272_v34 = vadd.f32 %v1235_v10, %v1802_v7  ;;  %v891_v4 = vadd.f32 %v881_v33, %v776_v17 }
 0x1a8   : > { %v1255_v13 = vadd.f32 %v1247_v37, %v2138_v59  ;;  %v1283_v19 = vmul.f32 %v2117_v43, %v1272_v34  ;;  %v1006_v44 = vadd.f32 %v996_v24, %v891_v4 }
 0x1aa   : > { %1291 = vst.msk [vmem:[%s2125_s19 + $0x30] sm:$0xff] %vm465_vm0, %v1283_v19  ;;  %v1121_v47 = vadd.f32 %v1111_v26, %v1006_v44 }
 0x1ab   : > { %1263 = vst.msk [vmem:[%s2133_s21 + $0x30] sm:$0xff] %vm465_vm0, %v1255_v13 }
 0x1ac   : > { %v1236_v36 = vadd.f32 %v1226_v23, %v1121_v47 }
 0x1ae   : > { %v1248_v40 = vmul.f32 %v2112_v8, %v1236_v36  ;;  %v1273_v7 = vadd.f32 %v1236_v36, %v1822_v11 }
 0x1b0   : > { %v1256_v35 = vadd.f32 %v1248_v40, %v2140_v62  ;;  %v1284_v51 = vmul.f32 %v2117_v43, %v1273_v7 }
 0x1b2   : > { %1264 = vst.msk [vmem:[%s2133_s21 + $0x38] sm:$0xff] %vm465_vm0, %v1256_v35 }
 0x1b3   : > { %1292 = vst.msk [vmem:[%s2125_s19 + $0x38] sm:$0xff] %vm465_vm0, %v1284_v51 }
 0x1b4 PF: > { %s23_s13 = sadd.s32 1, %s1666_s13  }
 0x1b5   : > { %p20_p7 = scmp.ge.s32.totalorder %s23_s13, 4  }
 0x1b7   :  { %22 = sbr.rel (!%p20_p7) target bundleno = 2 (0x2), region = 114 }
 0x1bc   :  { %1330 = vsyncpa [#allocation4], 1 }
 0x1bd   :  { %1332 = vsyncpa [#allocation4 + $0x1], 1 }
 0x1be   :  { %1333 = vsyncpa [#allocation6], 1 }

</bundles_post_ra>
